<compile_context>
chip_gen: v7x
topology: tpu7x:2x2x1
jax: 0.10.0
libtpu: 0.0.40
codegen_flags: <defaults>
</compile_context>

<pallas_src>
import math

import jax
import jax.numpy as jnp
from jax import lax
from jax.experimental import pallas as pl
from jax.experimental.pallas import tpu as pltpu


def _make_kernel(TT, Ts, Sp, C, k, kh, dil, pad, Lp, eps, compute_dtype):
    """TT: Tt-tile rows, Sp: padded column width, kh: # non-masked kernel rows,
    Lp: left column pad (multiple of 8), pad: conv padding = dil*(k-1)//2."""

    def gated_conv(buf_arr, w_ref):
        # buf_arr: (pad+TT, Sp, C) in compute_dtype, w_ref: (kh, k*C, 2C)
        acc = None
        for dy in range(kh):
            rows = buf_arr[dy * dil:dy * dil + TT]               # (TT, Sp, C)
            slab = jnp.concatenate(
                [rows[:, Lp - pad + dx * dil:Lp - pad + dx * dil + Ts, :]
                 for dx in range(k)],
                axis=-1,
            ).reshape(TT * Ts, k * C)                            # im2col along kw
            term = jnp.dot(slab, w_ref[dy], preferred_element_type=jnp.float32)
            acc = term if acc is None else acc + term            # no zeros-init
        gate = jax.nn.sigmoid(acc[:, :C])                        # chunk(2): 1st half gates
        return acc[:, C:] * gate

    def kernel(x_ref, w1_ref, w2_ref, gamma_ref, beta_ref, out_ref, xbuf, h1buf):
        j = pl.program_id(1)

        if pad > 0:
            @pl.when(j == 0)
            def _init():
                # fresh batch: row-carry = zero padding; h1buf border columns = zeros.
                xbuf[0:pad] = jnp.zeros((pad, Sp, C), compute_dtype)
                h1buf[...] = jnp.zeros((pad + TT, Sp, C), compute_dtype)

            @pl.when(j > 0)
            def _carry():
                # carry the last `pad` rows of the previous tile (causal lookback).
                xbuf[0:pad] = xbuf[TT:TT + pad]
                h1buf[0:pad] = h1buf[TT:TT + pad]

        xbuf[pad:pad + TT] = x_ref[0]                            # current tile (col-padded)
        x_all = xbuf[...]                                        # (pad+TT, Sp, C)

        # --- GatedConv2d #1 + ReLU ------------------------------------------------
        h1 = jax.nn.relu(gated_conv(x_all, w1_ref))              # (TT*Ts, C) f32
        h1buf[pad:pad + TT, Lp:Lp + Ts, :] = (
            h1.reshape(TT, Ts, C).astype(compute_dtype))

        # --- GatedConv2d #2 + ReLU ------------------------------------------------
        h2 = jax.nn.relu(gated_conv(h1buf[...], w2_ref))         # (TT*Ts, C) f32

        # --- residual + ReLU (InitGatedBlock: no extra scaling) ---------------------
        res = x_all[pad:pad + TT, Lp:Lp + Ts, :].astype(jnp.float32).reshape(TT * Ts, C)
        z = jax.nn.relu(h2 + res)

        # --- LayerNormalization over channels (unbiased std, eps added to sigma) ---
        mu = jnp.mean(z, axis=-1, keepdims=True)
        d = z - mu
        sigma = jnp.sqrt(jnp.sum(d * d, axis=-1, keepdims=True) / (C - 1))
        inv = 1.0 / (sigma + eps)                                # hoisted reciprocal
        ln = d * inv * gamma_ref[...] + beta_ref[...]

        # TODO(synk): dropout is identity here (eval mode / training=False).
        out_ref[0] = ln.reshape(TT, Ts, C).astype(out_ref.dtype)

    return kernel


def _auto_tt_tile(Tt, Ts, Sp, C, pad, itemsize, budget_bytes=6 << 20):
    valid = [d for d in range(1, Tt + 1) if Tt % d == 0 and d >= max(pad, 1)]
    if not valid:
        return Tt
    best = valid[0]
    for d in valid:
        foot = (2 * d * Sp * C * itemsize          # input block, double-buffered
                + 2 * d * Ts * C * 4               # output block, double-buffered
                + 2 * (pad + d) * Sp * C * itemsize  # x / h1 carry scratches
                + 8 * d * Ts * C * 4)              # in-kernel f32 temporaries (rough)
        if foot <= budget_bytes:
            best = d
    return best


def init_gated_block(x_nchw, w1, w2, gamma, beta, *, kernel_size, dilation,
                     eps=1e-3, compute_dtype=jnp.bfloat16, tt_tile=None):
    N, C, Tt, Ts = x_nchw.shape
    k = kernel_size
    assert k % 2 == 1, "odd kernel_size expected"
    pad = dilation * (k - 1) // 2
    kh = k // 2 + 1                                  # non-masked ("causal") kernel rows
    Lp = ((pad + 7) // 8) * 8 if pad > 0 else 0      # sublane-aligned left column pad
    Sp = Lp + Ts + pad
    itemsize = jnp.dtype(compute_dtype).itemsize

    if tt_tile is None:
        tt_tile = _auto_tt_tile(Tt, Ts, Sp, C, pad, itemsize)
    TT = int(tt_tile)
    assert Tt % TT == 0 and TT >= max(pad, 1), (Tt, TT, pad)
    J = Tt // TT

    # NCHW -> NHWC, column-pad only (rows are handled by the in-kernel causal carry).
    x_nhwc = jnp.transpose(x_nchw, (0, 2, 3, 1)).astype(compute_dtype)
    xpad = jnp.pad(x_nhwc, ((0, 0), (0, 0), (Lp, pad), (0, 0)))

    # keep only the non-masked kernel rows; fuse (kw, Cin) -> K = k*C for im2col matmuls.
    w1r = w1[:kh].reshape(kh, k * C, 2 * C).astype(compute_dtype)
    w2r = w2[:kh].reshape(kh, k * C, 2 * C).astype(compute_dtype)
    gamma2 = jnp.asarray(gamma, jnp.float32).reshape(1, C)
    beta2 = jnp.asarray(beta, jnp.float32).reshape(1, C)

    kernel = _make_kernel(TT, Ts, Sp, C, k, kh, dilation, pad, Lp, eps, compute_dtype)

    # scoped-VMEM budget sized to the chosen tiles (v7x-safe cap).
    est = (2 * TT * Sp * C * itemsize + 2 * TT * Ts * C * 4
           + 2 * 2 * kh * k * C * 2 * C * itemsize
           + 2 * (pad + TT) * Sp * C * itemsize)
    vmem_limit = int(min(64 * 2 ** 20, max(6 * est, 32 * 2 ** 20)))

    out = pl.pallas_call(
        kernel,
        out_shape=jax.ShapeDtypeStruct((N, Tt, Ts, C), jnp.float32),
        grid_spec=pltpu.PrefetchScalarGridSpec(
            num_scalar_prefetch=0,
            grid=(N, J),
            in_specs=[
                pl.BlockSpec((1, TT, Sp, C), lambda n, j: (n, j, 0, 0)),
                pl.BlockSpec((kh, k * C, 2 * C), lambda n, j: (0, 0, 0)),
                pl.BlockSpec((kh, k * C, 2 * C), lambda n, j: (0, 0, 0)),
                pl.BlockSpec((1, C), lambda n, j: (0, 0)),
                pl.BlockSpec((1, C), lambda n, j: (0, 0)),
            ],
            out_specs=pl.BlockSpec((1, TT, Ts, C), lambda n, j: (n, j, 0, 0)),
            scratch_shapes=[
                pltpu.VMEM((pad + TT, Sp, C), compute_dtype),   # x tile + causal carry
                pltpu.VMEM((pad + TT, Sp, C), compute_dtype),   # h1 tile + causal carry
            ],
        ),
        compiler_params=pltpu.CompilerParams(
            dimension_semantics=("parallel", "arbitrary"),
            vmem_limit_bytes=vmem_limit),
    )(xpad, w1r, w2r, gamma2, beta2)

    return jnp.transpose(out, (0, 3, 1, 2))                      # NHWC -> NCHW


# -------------------------- pure-JAX reference (for checking) --------------------------
def reference_forward(x_nchw, w1, w2, gamma, beta, *, kernel_size, dilation,
                      eps=1e-3, compute_dtype=jnp.float32):
    N, C, Tt, Ts = x_nchw.shape
    pad = dilation * (kernel_size - 1) // 2

    def gconv(x, w):
        xc = x.astype(compute_dtype)
        wc = jnp.transpose(w, (3, 2, 0, 1)).astype(compute_dtype)   # (kh,kw,Ci,2C)->(2C,Ci,kh,kw)
        y = lax.conv_general_dilated(
            xc, wc, window_strides=(1, 1),
            padding=((pad, pad), (pad, pad)),
            rhs_dilation=(dilation, dilation),
            dimension_numbers=("NCHW", "OIHW", "NCHW"),
            preferred_element_type=jnp.float32)
        gate, out = jnp.split(y, 2, axis=1)
        return out * jax.nn.sigmoid(gate)

    h = jax.nn.relu(gconv(x_nchw, w1))
    h = jax.nn.relu(gconv(h, w2))
    res = x_nchw.astype(compute_dtype).astype(jnp.float32)
    z = jax.nn.relu(h + res)                                     # InitGatedBlock: no scale
    zt = jnp.transpose(z, (0, 2, 3, 1))
    mu = zt.mean(-1, keepdims=True)
    d = zt - mu
    sigma = jnp.sqrt((d * d).sum(-1, keepdims=True) / (C - 1))
    ln = d / (sigma + eps) * jnp.asarray(gamma).reshape(-1) + jnp.asarray(beta).reshape(-1)
    return jnp.transpose(ln, (0, 3, 1, 2))


if __name__ == "__main__":
    # small shapes consistent with the module (residual => in_channels == out_channels)
    N, C, Tt, Ts = 2, 16, 16, 16
    kernel_size, drop_rate = 3, 0.1

    # deterministic parameter init mirroring __init__:
    #   std = sqrt(4*(1-drop_rate) / (k * ((k-1)//2) * in_channels)), then causal mask.
    inconv1 = kernel_size * ((kernel_size - 1) // 2) * C
    std = math.sqrt(4 * (1.0 - drop_rate) / inconv1)

    key = jax.random.PRNGKey(0)
    k1, k2, k3, k4, k5 = jax.random.split(key, 5)
    w1 = std * jax.random.normal(k1, (kernel_size, kernel_size, C, 2 * C), jnp.float32)
    w2 = std * jax.random.normal(k2, (kernel_size, kernel_size, C, 2 * C), jnp.float32)
    causal_mask = (jnp.arange(kernel_size) <= kernel_size // 2).astype(jnp.float32)
    w1 = w1 * causal_mask.reshape(kernel_size, 1, 1, 1)          # zero future-Tt rows
    w2 = w2 * causal_mask.reshape(kernel_size, 1, 1, 1)

    gamma = 1.0 + 0.1 * jax.random.normal(k4, (1, C), jnp.float32)   # LayerNorm scale
    beta = 0.05 * jax.random.normal(k5, (1, C), jnp.float32)         # LayerNorm bias

    x = jax.random.normal(k3, (N, C, Tt, Ts), jnp.float32)           # NCHW like PyTorch

    # 1) production path: bf16 MXU inputs, spatial tiling + causal carry (Tt tile = 8)
    out_bf = init_gated_block(x, w1, w2, gamma, beta, kernel_size=kernel_size,
                              dilation=1, compute_dtype=jnp.bfloat16, tt_tile=8)
    out_bf = jax.block_until_ready(out_bf)
    ref_bf = jax.block_until_ready(reference_forward(
        x, w1, w2, gamma, beta, kernel_size=kernel_size, dilation=1,
        compute_dtype=jnp.bfloat16))
    assert out_bf.shape == (N, C, Tt, Ts)
    assert jnp.allclose(out_bf, ref_bf, atol=5e-3, rtol=5e-3), \
        float(jnp.max(jnp.abs(out_bf - ref_bf)))

    # 2) strict f32 numerics check (auto tile selection)
    out_f32 = init_gated_block(x, w1, w2, gamma, beta, kernel_size=kernel_size,
                               dilation=1, compute_dtype=jnp.float32)
    out_f32 = jax.block_until_ready(out_f32)
    ref_f32 = jax.block_until_ready(reference_forward(
        x, w1, w2, gamma, beta, kernel_size=kernel_size, dilation=1,
        compute_dtype=jnp.float32))
    assert jnp.allclose(out_f32, ref_f32, atol=5e-4, rtol=5e-4), \
        float(jnp.max(jnp.abs(out_f32 - ref_f32)))

    # 3) dilation=2 path (bigger causal lookback / carry of 2 rows, Tt tile = 4)
    out_d2 = init_gated_block(x, w1, w2, gamma, beta, kernel_size=kernel_size,
                              dilation=2, compute_dtype=jnp.bfloat16, tt_tile=4)
    out_d2 = jax.block_until_ready(out_d2)
    ref_d2 = jax.block_until_ready(reference_forward(
        x, w1, w2, gamma, beta, kernel_size=kernel_size, dilation=2,
        compute_dtype=jnp.bfloat16))
    assert jnp.allclose(out_d2, ref_d2, atol=5e-3, rtol=5e-3), \
        float(jnp.max(jnp.abs(out_d2 - ref_d2)))

    print("KERNEL_OK")
</pallas_src>

<mosaic_0001>
module attributes {stable_mosaic.version = 11 : i64} {
  func.func @kernel(%arg0: i32, %arg1: i32, %arg2: memref<1x8x25x16xbf16, #tpu.memory_space<vmem>>, %arg3: memref<2x48x32xbf16, #tpu.memory_space<vmem>>, %arg4: memref<2x48x32xbf16, #tpu.memory_space<vmem>>, %arg5: memref<1x16xf32, #tpu.memory_space<vmem>>, %arg6: memref<1x16xf32, #tpu.memory_space<vmem>>, %arg7: memref<1x8x16x16xf32, #tpu.memory_space<vmem>>, %arg8: memref<9x25x16xbf16, #tpu.memory_space<vmem>>, %arg9: memref<9x25x16xbf16, #tpu.memory_space<vmem>>) attributes {dimension_semantics = [#tpu.dimension_semantics<parallel>, #tpu.dimension_semantics<arbitrary>], iteration_bounds = array<i64: 2, 2>, scalar_prefetch = 0 : i64, scratch_operands = 2 : i64, tpu.core_type = #tpu.core_type<tc>, window_params = [{transform_indices = @transform_0, window_bounds = array<i64: 1, 8, 25, 16>}, {pipeline_mode = #tpu.pipeline_mode<synchronous>, transform_indices = @transform_1, window_bounds = array<i64: 2, 48, 32>}, {pipeline_mode = #tpu.pipeline_mode<synchronous>, transform_indices = @transform_2, window_bounds = array<i64: 2, 48, 32>}, {pipeline_mode = #tpu.pipeline_mode<synchronous>, transform_indices = @transform_3, window_bounds = array<i64: 1, 16>}, {pipeline_mode = #tpu.pipeline_mode<synchronous>, transform_indices = @transform_4, window_bounds = array<i64: 1, 16>}, {transform_indices = @transform_5, window_bounds = array<i64: 1, 8, 16, 16>}]} {
    %c0_i32 = arith.constant 0 : i32
    %0 = arith.cmpi eq, %arg1, %c0_i32 : i32
    %1 = arith.extui %0 : i1 to i32
    %c0_i32_0 = arith.constant 0 : i32
    %2 = arith.cmpi ne, %1, %c0_i32_0 : i32
    scf.if %2 {
      %cst_50 = arith.constant 0.000000e+00 : bf16
      %106 = vector.broadcast %cst_50 : bf16 to vector<1x25x16xbf16>
      %c0_51 = arith.constant 0 : index
      %c0_52 = arith.constant 0 : index
      %c0_53 = arith.constant 0 : index
      %107 = vector.load %arg8[%c0_51, %c0_52, %c0_53] : memref<9x25x16xbf16, #tpu.memory_space<vmem>>, vector<1x25x16xbf16>
      tpu.vector_store %arg8[%c0_51, %c0_52, %c0_53], %106 {strides = array<i32>} : memref<9x25x16xbf16, #tpu.memory_space<vmem>>, vector<1x25x16xbf16>,
      %cst_54 = arith.constant 0.000000e+00 : bf16
      %108 = vector.broadcast %cst_54 : bf16 to vector<9x25x16xbf16>
      %c0_55 = arith.constant 0 : index
      %c0_56 = arith.constant 0 : index
      %c0_57 = arith.constant 0 : index
      %109 = vector.load %arg9[%c0_55, %c0_56, %c0_57] : memref<9x25x16xbf16, #tpu.memory_space<vmem>>, vector<9x25x16xbf16>
      tpu.vector_store %arg9[%c0_55, %c0_56, %c0_57], %108 {strides = array<i32>} : memref<9x25x16xbf16, #tpu.memory_space<vmem>>, vector<9x25x16xbf16>,
    } else {
    }
    %c0_i32_1 = arith.constant 0 : i32
    %3 = arith.cmpi sgt, %arg1, %c0_i32_1 : i32
    %4 = arith.extui %3 : i1 to i32
    %c0_i32_2 = arith.constant 0 : i32
    %5 = arith.cmpi ne, %4, %c0_i32_2 : i32
    scf.if %5 {
      %c8_50 = arith.constant 8 : index
      %c0_51 = arith.constant 0 : index
      %c0_52 = arith.constant 0 : index
      %106 = vector.load %arg8[%c8_50, %c0_51, %c0_52] : memref<9x25x16xbf16, #tpu.memory_space<vmem>>, vector<1x25x16xbf16>
      %c0_53 = arith.constant 0 : index
      %c0_54 = arith.constant 0 : index
      %c0_55 = arith.constant 0 : index
      %107 = vector.load %arg8[%c0_53, %c0_54, %c0_55] : memref<9x25x16xbf16, #tpu.memory_space<vmem>>, vector<1x25x16xbf16>
      tpu.vector_store %arg8[%c0_53, %c0_54, %c0_55], %106 {strides = array<i32>} : memref<9x25x16xbf16, #tpu.memory_space<vmem>>, vector<1x25x16xbf16>,
      %c8_56 = arith.constant 8 : index
      %c0_57 = arith.constant 0 : index
      %c0_58 = arith.constant 0 : index
      %108 = vector.load %arg9[%c8_56, %c0_57, %c0_58] : memref<9x25x16xbf16, #tpu.memory_space<vmem>>, vector<1x25x16xbf16>
      %c0_59 = arith.constant 0 : index
      %c0_60 = arith.constant 0 : index
      %c0_61 = arith.constant 0 : index
      %109 = vector.load %arg9[%c0_59, %c0_60, %c0_61] : memref<9x25x16xbf16, #tpu.memory_space<vmem>>, vector<1x25x16xbf16>
      tpu.vector_store %arg9[%c0_59, %c0_60, %c0_61], %108 {strides = array<i32>} : memref<9x25x16xbf16, #tpu.memory_space<vmem>>, vector<1x25x16xbf16>,
    } else {
    }
    %c0 = arith.constant 0 : index
    %c0_3 = arith.constant 0 : index
    %c0_4 = arith.constant 0 : index
    %c0_5 = arith.constant 0 : index
    %6 = vector.load %arg2[%c0, %c0_3, %c0_4, %c0_5] : memref<1x8x25x16xbf16, #tpu.memory_space<vmem>>, vector<1x8x25x16xbf16>
    %7 = vector.shape_cast %6 : vector<1x8x25x16xbf16> to vector<8x25x16xbf16>
    %c1 = arith.constant 1 : index
    %c0_6 = arith.constant 0 : index
    %c0_7 = arith.constant 0 : index
    %8 = vector.load %arg8[%c1, %c0_6, %c0_7] : memref<9x25x16xbf16, #tpu.memory_space<vmem>>, vector<8x25x16xbf16>
    tpu.vector_store %arg8[%c1, %c0_6, %c0_7], %7 {strides = array<i32>} : memref<9x25x16xbf16, #tpu.memory_space<vmem>>, vector<8x25x16xbf16>,
    %c0_8 = arith.constant 0 : index
    %c0_9 = arith.constant 0 : index
    %c0_10 = arith.constant 0 : index
    %9 = vector.load %arg8[%c0_8, %c0_9, %c0_10] : memref<9x25x16xbf16, #tpu.memory_space<vmem>>, vector<9x25x16xbf16>
    %10 = vector.extract_strided_slice %9 {offsets = [0, 0, 0], sizes = [8, 25, 16], strides = [1, 1, 1]} : vector<9x25x16xbf16> to vector<8x25x16xbf16>
    %11 = vector.extract_strided_slice %10 {offsets = [0, 7, 0], sizes = [8, 16, 16], strides = [1, 1, 1]} : vector<8x25x16xbf16> to vector<8x16x16xbf16>
    %12 = vector.extract_strided_slice %10 {offsets = [0, 8, 0], sizes = [8, 16, 16], strides = [1, 1, 1]} : vector<8x25x16xbf16> to vector<8x16x16xbf16>
    %13 = vector.extract_strided_slice %10 {offsets = [0, 9, 0], sizes = [8, 16, 16], strides = [1, 1, 1]} : vector<8x25x16xbf16> to vector<8x16x16xbf16>
    %14 = tpu.concatenate %11, %12, %13 in 2 : vector<8x16x16xbf16>, vector<8x16x16xbf16>, vector<8x16x16xbf16> -> vector<8x16x48xbf16>
    %15 = vector.shape_cast %14 : vector<8x16x48xbf16> to vector<128x48xbf16>
    %c0_11 = arith.constant 0 : index
    %c0_12 = arith.constant 0 : index
    %c0_13 = arith.constant 0 : index
    %16 = vector.load %arg3[%c0_11, %c0_12, %c0_13] : memref<2x48x32xbf16, #tpu.memory_space<vmem>>, vector<1x48x32xbf16>
    %17 = vector.shape_cast %16 : vector<1x48x32xbf16> to vector<48x32xbf16>
    %cst = arith.constant dense<0.000000e+00> : vector<128x32xf32>
    %18 = tpu.matmul %15, %17, %cst {dimension_numbers = #tpu.dot_dimension_numbers<[1], [0], [0], [1], [0, 0, 1, 1], [], []>} : vector<128x48xbf16>, vector<48x32xbf16>, vector<128x32xf32> -> vector<128x32xf32>
    %19 = vector.extract_strided_slice %9 {offsets = [1, 0, 0], sizes = [8, 25, 16], strides = [1, 1, 1]} : vector<9x25x16xbf16> to vector<8x25x16xbf16>
    %20 = vector.extract_strided_slice %19 {offsets = [0, 7, 0], sizes = [8, 16, 16], strides = [1, 1, 1]} : vector<8x25x16xbf16> to vector<8x16x16xbf16>
    %21 = vector.extract_strided_slice %19 {offsets = [0, 8, 0], sizes = [8, 16, 16], strides = [1, 1, 1]} : vector<8x25x16xbf16> to vector<8x16x16xbf16>
    %22 = vector.extract_strided_slice %19 {offsets = [0, 9, 0], sizes = [8, 16, 16], strides = [1, 1, 1]} : vector<8x25x16xbf16> to vector<8x16x16xbf16>
    %23 = tpu.concatenate %20, %21, %22 in 2 : vector<8x16x16xbf16>, vector<8x16x16xbf16>, vector<8x16x16xbf16> -> vector<8x16x48xbf16>
    %24 = vector.shape_cast %23 : vector<8x16x48xbf16> to vector<128x48xbf16>
    %c1_14 = arith.constant 1 : index
    %c0_15 = arith.constant 0 : index
    %c0_16 = arith.constant 0 : index
    %25 = vector.load %arg3[%c1_14, %c0_15, %c0_16] : memref<2x48x32xbf16, #tpu.memory_space<vmem>>, vector<1x48x32xbf16>
    %26 = vector.shape_cast %25 : vector<1x48x32xbf16> to vector<48x32xbf16>
    %cst_17 = arith.constant dense<0.000000e+00> : vector<128x32xf32>
    %27 = tpu.matmul %24, %26, %cst_17 {dimension_numbers = #tpu.dot_dimension_numbers<[1], [0], [0], [1], [0, 0, 1, 1], [], []>} : vector<128x48xbf16>, vector<48x32xbf16>, vector<128x32xf32> -> vector<128x32xf32>
    %28 = arith.addf %18, %27 : vector<128x32xf32>
    %29 = vector.extract_strided_slice %28 {offsets = [0, 0], sizes = [128, 16], strides = [1, 1]} : vector<128x32xf32> to vector<128x16xf32>
    %30 = arith.negf %29 : vector<128x16xf32>
    %31 = math.exp %30 : vector<128x16xf32>
    %cst_18 = arith.constant 1.000000e+00 : f32
    %32 = vector.broadcast %cst_18 : f32 to vector<128x16xf32>
    %33 = arith.addf %32, %31 : vector<128x16xf32>
    %34 = arith.divf %32, %33 : vector<128x16xf32>
    %35 = vector.extract_strided_slice %28 {offsets = [0, 16], sizes = [128, 16], strides = [1, 1]} : vector<128x32xf32> to vector<128x16xf32>
    %36 = arith.mulf %35, %34 : vector<128x16xf32>
    %cst_19 = arith.constant 0.000000e+00 : f32
    %37 = vector.broadcast %cst_19 : f32 to vector<128x16xf32>
    %38 = arith.maximumf %36, %37 : vector<128x16xf32>
    %39 = vector.shape_cast %38 : vector<128x16xf32> to vector<8x16x16xf32>
    %40 = arith.truncf %39 : vector<8x16x16xf32> to vector<8x16x16xbf16>
    %c1_20 = arith.constant 1 : index
    %c8 = arith.constant 8 : index
    %c0_21 = arith.constant 0 : index
    %41 = vector.load %arg9[%c1_20, %c8, %c0_21] : memref<9x25x16xbf16, #tpu.memory_space<vmem>>, vector<8x16x16xbf16>
    tpu.vector_store %arg9[%c1_20, %c8, %c0_21], %40 {strides = array<i32>} : memref<9x25x16xbf16, #tpu.memory_space<vmem>>, vector<8x16x16xbf16>,
    %c0_22 = arith.constant 0 : index
    %c0_23 = arith.constant 0 : index
    %c0_24 = arith.constant 0 : index
    %42 = vector.load %arg9[%c0_22, %c0_23, %c0_24] : memref<9x25x16xbf16, #tpu.memory_space<vmem>>, vector<9x25x16xbf16>
    %43 = vector.extract_strided_slice %42 {offsets = [0, 0, 0], sizes = [8, 25, 16], strides = [1, 1, 1]} : vector<9x25x16xbf16> to vector<8x25x16xbf16>
    %44 = vector.extract_strided_slice %43 {offsets = [0, 7, 0], sizes = [8, 16, 16], strides = [1, 1, 1]} : vector<8x25x16xbf16> to vector<8x16x16xbf16>
    %45 = vector.extract_strided_slice %43 {offsets = [0, 8, 0], sizes = [8, 16, 16], strides = [1, 1, 1]} : vector<8x25x16xbf16> to vector<8x16x16xbf16>
    %46 = vector.extract_strided_slice %43 {offsets = [0, 9, 0], sizes = [8, 16, 16], strides = [1, 1, 1]} : vector<8x25x16xbf16> to vector<8x16x16xbf16>
    %47 = tpu.concatenate %44, %45, %46 in 2 : vector<8x16x16xbf16>, vector<8x16x16xbf16>, vector<8x16x16xbf16> -> vector<8x16x48xbf16>
    %48 = vector.shape_cast %47 : vector<8x16x48xbf16> to vector<128x48xbf16>
    %c0_25 = arith.constant 0 : index
    %c0_26 = arith.constant 0 : index
    %c0_27 = arith.constant 0 : index
    %49 = vector.load %arg4[%c0_25, %c0_26, %c0_27] : memref<2x48x32xbf16, #tpu.memory_space<vmem>>, vector<1x48x32xbf16>
    %50 = vector.shape_cast %49 : vector<1x48x32xbf16> to vector<48x32xbf16>
    %cst_28 = arith.constant dense<0.000000e+00> : vector<128x32xf32>
    %51 = tpu.matmul %48, %50, %cst_28 {dimension_numbers = #tpu.dot_dimension_numbers<[1], [0], [0], [1], [0, 0, 1, 1], [], []>} : vector<128x48xbf16>, vector<48x32xbf16>, vector<128x32xf32> -> vector<128x32xf32>
    %52 = vector.extract_strided_slice %42 {offsets = [1, 0, 0], sizes = [8, 25, 16], strides = [1, 1, 1]} : vector<9x25x16xbf16> to vector<8x25x16xbf16>
    %53 = vector.extract_strided_slice %52 {offsets = [0, 7, 0], sizes = [8, 16, 16], strides = [1, 1, 1]} : vector<8x25x16xbf16> to vector<8x16x16xbf16>
    %54 = vector.extract_strided_slice %52 {offsets = [0, 8, 0], sizes = [8, 16, 16], strides = [1, 1, 1]} : vector<8x25x16xbf16> to vector<8x16x16xbf16>
    %55 = vector.extract_strided_slice %52 {offsets = [0, 9, 0], sizes = [8, 16, 16], strides = [1, 1, 1]} : vector<8x25x16xbf16> to vector<8x16x16xbf16>
    %56 = tpu.concatenate %53, %54, %55 in 2 : vector<8x16x16xbf16>, vector<8x16x16xbf16>, vector<8x16x16xbf16> -> vector<8x16x48xbf16>
    %57 = vector.shape_cast %56 : vector<8x16x48xbf16> to vector<128x48xbf16>
    %c1_29 = arith.constant 1 : index
    %c0_30 = arith.constant 0 : index
    %c0_31 = arith.constant 0 : index
    %58 = vector.load %arg4[%c1_29, %c0_30, %c0_31] : memref<2x48x32xbf16, #tpu.memory_space<vmem>>, vector<1x48x32xbf16>
    %59 = vector.shape_cast %58 : vector<1x48x32xbf16> to vector<48x32xbf16>
    %cst_32 = arith.constant dense<0.000000e+00> : vector<128x32xf32>
    %60 = tpu.matmul %57, %59, %cst_32 {dimension_numbers = #tpu.dot_dimension_numbers<[1], [0], [0], [1], [0, 0, 1, 1], [], []>} : vector<128x48xbf16>, vector<48x32xbf16>, vector<128x32xf32> -> vector<128x32xf32>
    %61 = arith.addf %51, %60 : vector<128x32xf32>
    %62 = vector.extract_strided_slice %61 {offsets = [0, 0], sizes = [128, 16], strides = [1, 1]} : vector<128x32xf32> to vector<128x16xf32>
    %63 = arith.negf %62 : vector<128x16xf32>
    %64 = math.exp %63 : vector<128x16xf32>
    %cst_33 = arith.constant 1.000000e+00 : f32
    %65 = vector.broadcast %cst_33 : f32 to vector<128x16xf32>
    %66 = arith.addf %65, %64 : vector<128x16xf32>
    %67 = arith.divf %65, %66 : vector<128x16xf32>
    %68 = vector.extract_strided_slice %61 {offsets = [0, 16], sizes = [128, 16], strides = [1, 1]} : vector<128x32xf32> to vector<128x16xf32>
    %69 = arith.mulf %68, %67 : vector<128x16xf32>
    %cst_34 = arith.constant 0.000000e+00 : f32
    %70 = vector.broadcast %cst_34 : f32 to vector<128x16xf32>
    %71 = arith.maximumf %69, %70 : vector<128x16xf32>
    %72 = vector.extract_strided_slice %9 {offsets = [1, 8, 0], sizes = [8, 16, 16], strides = [1, 1, 1]} : vector<9x25x16xbf16> to vector<8x16x16xbf16>
    %73 = arith.extf %72 : vector<8x16x16xbf16> to vector<8x16x16xf32>
    %74 = vector.shape_cast %73 : vector<8x16x16xf32> to vector<128x16xf32>
    %75 = arith.addf %71, %74 : vector<128x16xf32>
    %cst_35 = arith.constant 0.000000e+00 : f32
    %76 = vector.broadcast %cst_35 : f32 to vector<128x16xf32>
    %77 = arith.maximumf %75, %76 : vector<128x16xf32>
    %cst_36 = arith.constant dense<0.000000e+00> : vector<128xf32>
    %78 = vector.multi_reduction <add>, %77, %cst_36 [1] : vector<128x16xf32> to vector<128xf32>
    %79 = vector.shape_cast %78 : vector<128xf32> to vector<128x1xf32>
    %cst_37 = arith.constant 1.600000e+01 : f32
    %80 = vector.broadcast %cst_37 : f32 to vector<128x1xf32>
    %81 = arith.divf %79, %80 : vector<128x1xf32>
    %82 = vector.broadcast %81 : vector<128x1xf32> to vector<128x16xf32>
    %83 = arith.subf %77, %82 : vector<128x16xf32>
    %84 = arith.mulf %83, %83 : vector<128x16xf32>
    %cst_38 = arith.constant dense<0.000000e+00> : vector<128xf32>
    %85 = vector.multi_reduction <add>, %84, %cst_38 [1] : vector<128x16xf32> to vector<128xf32>
    %86 = vector.shape_cast %85 : vector<128xf32> to vector<128x1xf32>
    %cst_39 = arith.constant 1.500000e+01 : f32
    %87 = vector.broadcast %cst_39 : f32 to vector<128x1xf32>
    %88 = arith.divf %86, %87 : vector<128x1xf32>
    %89 = math.sqrt %88 : vector<128x1xf32>
    %cst_40 = arith.constant 1.000000e-03 : f32
    %90 = vector.broadcast %cst_40 : f32 to vector<128x1xf32>
    %91 = arith.addf %89, %90 : vector<128x1xf32>
    %cst_41 = arith.constant 1.000000e+00 : f32
    %92 = vector.broadcast %cst_41 : f32 to vector<128x1xf32>
    %93 = arith.divf %92, %91 : vector<128x1xf32>
    %94 = vector.broadcast %93 : vector<128x1xf32> to vector<128x16xf32>
    %95 = arith.mulf %83, %94 : vector<128x16xf32>
    %c0_42 = arith.constant 0 : index
    %c0_43 = arith.constant 0 : index
    %96 = vector.load %arg5[%c0_42, %c0_43] : memref<1x16xf32, #tpu.memory_space<vmem>>, vector<1x16xf32>
    %97 = vector.broadcast %96 : vector<1x16xf32> to vector<128x16xf32>
    %98 = arith.mulf %95, %97 : vector<128x16xf32>
    %c0_44 = arith.constant 0 : index
    %c0_45 = arith.constant 0 : index
    %99 = vector.load %arg6[%c0_44, %c0_45] : memref<1x16xf32, #tpu.memory_space<vmem>>, vector<1x16xf32>
    %100 = vector.broadcast %99 : vector<1x16xf32> to vector<128x16xf32>
    %101 = arith.addf %98, %100 : vector<128x16xf32>
    %102 = vector.shape_cast %101 : vector<128x16xf32> to vector<8x16x16xf32>
    %c0_46 = arith.constant 0 : index
    %c0_47 = arith.constant 0 : index
    %c0_48 = arith.constant 0 : index
    %c0_49 = arith.constant 0 : index
    %103 = vector.load %arg7[%c0_46, %c0_47, %c0_48, %c0_49] : memref<1x8x16x16xf32, #tpu.memory_space<vmem>>, vector<1x8x16x16xf32>
    %104 = vector.shape_cast %103 : vector<1x8x16x16xf32> to vector<8x16x16xf32>
    %105 = vector.shape_cast %102 : vector<8x16x16xf32> to vector<1x8x16x16xf32>
    tpu.vector_store %arg7[%c0_46, %c0_47, %c0_48, %c0_49], %105 {strides = array<i32>} : memref<1x8x16x16xf32, #tpu.memory_space<vmem>>, vector<1x8x16x16xf32>,
    return
  }
  func.func @transform_0(%arg0: i32, %arg1: i32) -> (i32, i32, i32, i32) {
    %c0_i32 = arith.constant 0 : i32
    %c0_i32_0 = arith.constant 0 : i32
    %c0_i32_1 = arith.constant 0 : i32
    return %arg0, %arg1, %c0_i32, %c0_i32_0 : i32, i32, i32, i32
  }
  func.func @transform_1(%arg0: i32, %arg1: i32) -> (i32, i32, i32) {
    %c0_i32 = arith.constant 0 : i32
    %c0_i32_0 = arith.constant 0 : i32
    %c0_i32_1 = arith.constant 0 : i32
    %c0_i32_2 = arith.constant 0 : i32
    return %c0_i32, %c0_i32_0, %c0_i32_1 : i32, i32, i32
  }
  func.func @transform_2(%arg0: i32, %arg1: i32) -> (i32, i32, i32) {
    %c0_i32 = arith.constant 0 : i32
    %c0_i32_0 = arith.constant 0 : i32
    %c0_i32_1 = arith.constant 0 : i32
    %c0_i32_2 = arith.constant 0 : i32
    return %c0_i32, %c0_i32_0, %c0_i32_1 : i32, i32, i32
  }
  func.func @transform_3(%arg0: i32, %arg1: i32) -> (i32, i32) {
    %c0_i32 = arith.constant 0 : i32
    %c0_i32_0 = arith.constant 0 : i32
    %c0_i32_1 = arith.constant 0 : i32
    return %c0_i32, %c0_i32_0 : i32, i32
  }
  func.func @transform_4(%arg0: i32, %arg1: i32) -> (i32, i32) {
    %c0_i32 = arith.constant 0 : i32
    %c0_i32_0 = arith.constant 0 : i32
    %c0_i32_1 = arith.constant 0 : i32
    return %c0_i32, %c0_i32_0 : i32, i32
  }
  func.func @transform_5(%arg0: i32, %arg1: i32) -> (i32, i32, i32, i32) {
    %c0_i32 = arith.constant 0 : i32
    %c0_i32_0 = arith.constant 0 : i32
    %c0_i32_1 = arith.constant 0 : i32
    return %arg0, %arg1, %c0_i32, %c0_i32_0 : i32, i32, i32, i32
  }
}

</mosaic_0001>

<bundles_post_ra>
// kernel: tpu_custom_call.1
= control target key start
LH: loop header
LB: loop body
LE: loop exit
PB: predicated region body
PF: predicated region fallthrough
CT: control target
= control target key end

     0   :  { %10 = vsyncpa [#allocation5], 0  ;;  %s5677_s0 = inlined_call_operand.vmem [shape: bf16[2,16,25,16], index: 0, kind: input, shape index: {}]   ;;  %s5678_s1 = inlined_call_operand.vmem [shape: bf16[2,48,32], index: 1, kind: input, shape index: {}]   ;;  %s5679_s2 = inlined_call_operand.vmem [shape: bf16[2,48,32], index: 2, kind: input, shape index: {}]   ;;  %s5680_s3 = inlined_call_operand.vmem [shape: f32[1,16], index: 3, kind: input, shape index: {}]   ;;  %s5681_s4 = inlined_call_operand.vmem [shape: f32[1,16], index: 4, kind: input, shape index: {}]   ;;  %s5682_s5 = inlined_call_operand.hbm [shape: f32[2,16,16,16], index: 5, kind: output, shape index: {}]  }
   0x1   :  { %12 = vsyncpa [#allocation5 + $0x1], 0  ;;  %s4233_s18 = smov 0   ;;  %s4235_s19 = smov 0  }
   0x2   :  { %s4237_s20 = smov 0   ;;  %s4239_s21 = smov 0  }
   0x3   :  { %s4241_s22 = smov 0   ;;  %s4243_s23 = smov 0  }
   0x4   :  { %s4245_s24 = smov 0   ;;  %s4247_s25 = smov 0  }
   0x5 LB: > { %s3319_s26 = sadd.s32 4294967295, %s4194_s25   ;;  %s3320_s27 = sadd.s32 4294967294, %s4194_s25   ;;  %s4194_s25 = sphi %s4247_s25, %s18_s25   ;;  %s4190_s24 = sphi %s4245_s24, %s5695_s24   ;;  %s4186_s23 = sphi %s4243_s23, %s5694_s23   ;;  %s4182_s22 = sphi %s4241_s22, %s5693_s22   ;;  %s4178_s21 = sphi %s4239_s21, %s5692_s21   ;;  %s4174_s20 = sphi %s4237_s20, %s5691_s20   ;;  %s4170_s19 = sphi %s4235_s19, %s5690_s19   ;;  %s4166_s18 = sphi %s4233_s18, %s5689_s18  }
   0x6   : > { %s27_s28 = sadd.s32 1, %s4186_s23  ;;  %s30_s29 = sadd.s32 1, %s4190_s24 }
   0x7   : > { %p28_p0 = scmp.ge.s32.totalorder %s27_s28, 2  ;;  %p161_p1 = scmp.ne.s32.totalorder %s4174_s20, %s4170_s19 }
   0x8   : > { %p162_p2 = scmp.eq.s32.totalorder %s3319_s26, 3  ;;  %p167_p5 = scmp.ne.s32.totalorder %s4170_s19, %s4166_s18 }
   0x9   : > { %s5697_s28 = smov (%p28_p0, %s27_s28), 0  ;;  %s5699_s29 = smov (!%p28_p0, %s30_s29), %s4190_s24 }
   0xa   : > { %s147_s30 = ssub.s32 %s4186_s23, %s5697_s28  ;;  %p4284_p3 = por %p162_p2, %p161_p1 }
   0xb   : > { %p32_p4 = scmp.ge.s32.totalorder %s5699_s29, 2  ;;  %p168_p6 = scmp.eq.s32.totalorder %s3320_s27, 3 }
   0xc   : > { %p3323_p7 = scmp.ge.s32.totalorder %s4194_s25, 1  ;;  %p212_p9 = scmp.lt.s32.totalorder %s4194_s25, 5 }
   0xd   : > { %s5701_s29 = smov (%p32_p4, %s5699_s29), 0  ;;  %p4293_p8 = por %p168_p6, %p167_p5 }
   0xe   : > { %s146_s8 = ssub.s32 %s4190_s24, %s5701_s29  ;;  %s151_s9 = sadd.s32 1, %s4174_s20 }
   0xf   : > { %s148_s10 = sor.u32 %s147_s30, %s146_s8  ;;  %p213_p10 = pnand %p3323_p7, %p212_p9 }
  0x10   : > { %p149_p11 = scmp.eq.s32.totalorder %s148_s10, 0  ;;  %s242_s12 = sand.u32 (!%p213_p10), 1, %s4170_s19  }
  0x11   : > { %216 = sbr.rel (%p213_p10) target bundleno = 2011 (0x7db), region = 40  ;;  %s3325_s13 = sshll.u32 (!%p213_p10), %s4178_s21, 3 }
  0x12   : > { %s4302_s11 = scalar_select %p149_p11, %s4174_s20, %s151_s9  }
  0x13   : > { %s3324_s14 = sshll.u32 (!%p213_p10), %s242_s12, 7  ;;  %p246_p12 = scmp.lt.s32.totalorder (!%p213_p10), %s4182_s22, 1 }
  0x14   : > { %p248_p13 = scmp.lt.s32.totalorder (!%p213_p10), %s3325_s13, 15  ;;  %s4315_s10 = scalar_lea.vmem (!%p213_p10), [#allocation4], %s3324_s14 }
  0x15   : > { %p3329_p0 = scmp.ne.s32.totalorder (!%p213_p10), %s4178_s21, 0 }
  0x18   : > { %s247_s15 = scalar_select %p246_p12, %s4182_s22, 1 }
  0x19   : > { %s5703_s13 = smov (!%p248_p13, %s3325_s13), 15  ;;  %261 = sbr.rel (%p3329_p0) target bundleno = 48 (0x30), region = 44 }
  0x1a   : > { %s3327_s16 = sshll.u32 %s247_s15, 6  ;;  %s3326_s17 = sshll.u32 %s5703_s13, 2  ;;  %vm262_vm0 = vcmask (!%p3329_p0), 125952   ;;  %vm266_vm1 = vcmask (!%p3329_p0), 122880   ;;  %vm267_vm2 = vsmask.f32 (!%p3329_p0), 256 }
  0x1b   : > { %s252_s26 = sadd.s32 %s3327_s16, %s3326_s17  ;;  %v4196_v0 = vmov (!%p3329_p0), 0   ;;  %vm4350_vm3 = vmand (!%p3329_p0), %vm266_vm1, %vm267_vm2  ;;  %v269_v2 = vld [vmem:[#allocation2 + $0xc] sm:$0x1] (!%p3329_p0)  ;;  %v275_v3 = vld [vmem:[#allocation3 + $0xc] sm:$0x1] (!%p3329_p0) }
  0x1c   : > { %s3328_s27 = sshll.u32 %s252_s26, 2  ;;  %263 = vst.msk [vmem:[#allocation2] sm:$0xf] (!%p3329_p0), %vm262_vm0, %v4196_v0  ;;  %264 = vst.msk [vmem:[#allocation2 + $0x4] sm:$0xf] (!%p3329_p0), %vm262_vm0, %v4196_v0  ;;  %v270_v4 = vsel (!%p3329_p0), %vm4350_vm3, 0, %v269_v2 }
  0x1d   : > { %s4313_s9 = scalar_lea.vmem %s5677_s0, %s3328_s27  ;;  %265 = vst.msk [vmem:[#allocation2 + $0x8] sm:$0xf] (!%p3329_p0), %vm262_vm0, %v4196_v0  ;;  %272 = vst.msk [vmem:[#allocation3] sm:$0xf] (!%p3329_p0), %vm262_vm0, %v4196_v0  ;;  %v276_v5 = vsel (!%p3329_p0), %vm4350_vm3, 0, %v275_v3 }
  0x1e   : > { %273 = vst.msk [vmem:[#allocation3 + $0x4] sm:$0xf] (!%p3329_p0), %vm262_vm0, %v4196_v0  ;;  %274 = vst.msk [vmem:[#allocation3 + $0x8] sm:$0xf] (!%p3329_p0), %vm262_vm0, %v4196_v0  ;;  %v281_v6 = vld [vmem:[#allocation3 + $0x1c] sm:$0x1] (!%p3329_p0) }
  0x1f   : > { %278 = vst.msk [vmem:[#allocation3 + $0x10] sm:$0xf] (!%p3329_p0), %vm262_vm0, %v4196_v0  ;;  %279 = vst.msk [vmem:[#allocation3 + $0x14] sm:$0xf] (!%p3329_p0), %vm262_vm0, %v4196_v0  ;;  %v287_v7 = vld [vmem:[#allocation3 + $0x2c] sm:$0x1] (!%p3329_p0) }
  0x20   : > { %280 = vst.msk [vmem:[#allocation3 + $0x18] sm:$0xf] %vm262_vm0, %v4196_v0  ;;  %284 = vst.msk [vmem:[#allocation3 + $0x20] sm:$0xf] %vm262_vm0, %v4196_v0  ;;  %v282_v8 = vsel %vm4350_vm3, 0, %v281_v6  ;;  %v288_v9 = vsel %vm4350_vm3, 0, %v287_v7 }
  0x21   : > { %285 = vst.msk [vmem:[#allocation3 + $0x24] sm:$0xf] %vm262_vm0, %v4196_v0  ;;  %286 = vst.msk [vmem:[#allocation3 + $0x28] sm:$0xf] %vm262_vm0, %v4196_v0  ;;  %v293_v10 = vld [vmem:[#allocation3 + $0x3c] sm:$0x1] }
  0x22   : > { %290 = vst.msk [vmem:[#allocation3 + $0x30] sm:$0xf] %vm262_vm0, %v4196_v0  ;;  %291 = vst.msk [vmem:[#allocation3 + $0x34] sm:$0xf] %vm262_vm0, %v4196_v0  ;;  %v299_v11 = vld [vmem:[#allocation3 + $0x4c] sm:$0x1] }
  0x23   : > { %292 = vst.msk [vmem:[#allocation3 + $0x38] sm:$0xf] %vm262_vm0, %v4196_v0  ;;  %296 = vst.msk [vmem:[#allocation3 + $0x40] sm:$0xf] %vm262_vm0, %v4196_v0  ;;  %v294_v12 = vsel %vm4350_vm3, 0, %v293_v10  ;;  %v300_v13 = vsel %vm4350_vm3, 0, %v299_v11 }
  0x24   : > { %297 = vst.msk [vmem:[#allocation3 + $0x44] sm:$0xf] %vm262_vm0, %v4196_v0  ;;  %298 = vst.msk [vmem:[#allocation3 + $0x48] sm:$0xf] %vm262_vm0, %v4196_v0  ;;  %v305_v14 = vld [vmem:[#allocation3 + $0x5c] sm:$0x1] }
  0x25   : > { %302 = vst.msk [vmem:[#allocation3 + $0x50] sm:$0xf] %vm262_vm0, %v4196_v0  ;;  %303 = vst.msk [vmem:[#allocation3 + $0x54] sm:$0xf] %vm262_vm0, %v4196_v0  ;;  %v311_v15 = vld [vmem:[#allocation3 + $0x6c] sm:$0x1] }
  0x26   : > { %304 = vst.msk [vmem:[#allocation3 + $0x58] sm:$0xf] %vm262_vm0, %v4196_v0  ;;  %308 = vst.msk [vmem:[#allocation3 + $0x60] sm:$0xf] %vm262_vm0, %v4196_v0  ;;  %v306_v16 = vsel %vm4350_vm3, 0, %v305_v14  ;;  %v312_v17 = vsel %vm4350_vm3, 0, %v311_v15 }
  0x27   : > { %309 = vst.msk [vmem:[#allocation3 + $0x64] sm:$0xf] %vm262_vm0, %v4196_v0  ;;  %310 = vst.msk [vmem:[#allocation3 + $0x68] sm:$0xf] %vm262_vm0, %v4196_v0  ;;  %v317_v18 = vld [vmem:[#allocation3 + $0x7c] sm:$0x1] }
  0x28   : > { %314 = vst.msk [vmem:[#allocation3 + $0x70] sm:$0xf] %vm262_vm0, %v4196_v0  ;;  %315 = vst.msk [vmem:[#allocation3 + $0x74] sm:$0xf] %vm262_vm0, %v4196_v0  ;;  %v323_v19 = vld [vmem:[#allocation3 + $0x8c] sm:$0x1] }
  0x29   : > { %316 = vst.msk [vmem:[#allocation3 + $0x78] sm:$0xf] %vm262_vm0, %v4196_v0  ;;  %320 = vst.msk [vmem:[#allocation3 + $0x80] sm:$0xf] %vm262_vm0, %v4196_v0  ;;  %v318_v20 = vsel %vm4350_vm3, 0, %v317_v18  ;;  %v324_v21 = vsel %vm4350_vm3, 0, %v323_v19 }
  0x2a   : > { %321 = vst.msk [vmem:[#allocation3 + $0x84] sm:$0xf] %vm262_vm0, %v4196_v0  ;;  %322 = vst.msk [vmem:[#allocation3 + $0x88] sm:$0xf] %vm262_vm0, %v4196_v0 }
  0x2b   : > { %271 = vst [vmem:[#allocation2 + $0xc] sm:$0x1] %v270_v4  ;;  %277 = vst [vmem:[#allocation3 + $0xc] sm:$0x1] %v276_v5 }
  0x2c   : > { %283 = vst [vmem:[#allocation3 + $0x1c] sm:$0x1] %v282_v8  ;;  %289 = vst [vmem:[#allocation3 + $0x2c] sm:$0x1] %v288_v9 }
  0x2d   : > { %295 = vst [vmem:[#allocation3 + $0x3c] sm:$0x1] %v294_v12  ;;  %301 = vst [vmem:[#allocation3 + $0x4c] sm:$0x1] %v300_v13 }
  0x2e   : > { %307 = vst [vmem:[#allocation3 + $0x5c] sm:$0x1] %v306_v16  ;;  %313 = vst [vmem:[#allocation3 + $0x6c] sm:$0x1] %v312_v17 }
  0x2f   : > { %319 = vst [vmem:[#allocation3 + $0x7c] sm:$0x1] %v318_v20  ;;  %325 = vst [vmem:[#allocation3 + $0x8c] sm:$0x1] %v324_v21 }
  0x30 PF: > { %p3330_p1 = scmp.le.s32.totalorder %s4178_s21, 0 }
  0x31   : > { %v331_v22 = vld [vmem:[#allocation2 + $0x80] sm:$0xf] (!%p3330_p1)  ;;  %vm335_vm4 = vcmask (!%p3330_p1), 125952   ;;  %v332_v23 = vld [vmem:[#allocation2 + $0x84] sm:$0xf] (!%p3330_p1)  ;;  %vm339_vm5 = vcmask (!%p3330_p1), 122880  }
  0x32   : > { %329 = sbr.rel (%p3330_p1) target bundleno = 58 (0x3a), region = 48  ;;  %336 = vst.msk [vmem:[#allocation2] sm:$0xf] (!%p3330_p1), %vm335_vm4, %v331_v22  ;;  %337 = vst.msk [vmem:[#allocation2 + $0x4] sm:$0xf] (!%p3330_p1), %vm335_vm4, %v332_v23 }
  0x33   : > { %v333_v24 = vld [vmem:[#allocation2 + $0x88] sm:$0xf] (!%p3330_p1)  ;;  %v334_v25 = vld [vmem:[#allocation2 + $0x8c] sm:$0x1] (!%p3330_p1)  ;;  %vm340_vm6 = vsmask.f32 (!%p3330_p1), 256 }
  0x34   : > { %338 = vst.msk [vmem:[#allocation2 + $0x8] sm:$0xf] (!%p3330_p1), %vm335_vm4, %v333_v24  ;;  %vm341_vm7 = vmand (!%p3330_p1), %vm339_vm5, %vm340_vm6  ;;  %v342_v26 = vld [vmem:[#allocation2 + $0xc] sm:$0x1] (!%p3330_p1)  ;;  %v346_v27 = vld [vmem:[#allocation3 + $0x80] sm:$0xf] (!%p3330_p1) }
  0x35   : > { %v343_v28 = vsel (!%p3330_p1), %vm341_vm7, %v334_v25, %v342_v26  ;;  %350 = vst.msk [vmem:[#allocation3] sm:$0xf] (!%p3330_p1), %vm335_vm4, %v346_v27  ;;  %v347_v29 = vld [vmem:[#allocation3 + $0x84] sm:$0xf] (!%p3330_p1)  ;;  %v348_v30 = vld [vmem:[#allocation3 + $0x88] sm:$0xf] (!%p3330_p1) }
  0x36   : > { %v349_v31 = vld [vmem:[#allocation3 + $0x8c] sm:$0x1] (!%p3330_p1)  ;;  %344 = vst [vmem:[#allocation2 + $0xc] sm:$0x1] (!%p3330_p1), %v343_v28  ;;  %351 = vst.msk [vmem:[#allocation3 + $0x4] sm:$0xf] (!%p3330_p1), %vm335_vm4, %v347_v29 }
  0x37   : > { %352 = vst.msk [vmem:[#allocation3 + $0x8] sm:$0xf] (!%p3330_p1), %vm335_vm4, %v348_v30  ;;  %v353_v32 = vld [vmem:[#allocation3 + $0xc] sm:$0x1] (!%p3330_p1) }
  0x38   : > { %v354_v33 = vsel (!%p3330_p1), %vm341_vm7, %v349_v31, %v353_v32 }
  0x39   : > { %355 = vst [vmem:[#allocation3 + $0xc] sm:$0x1] %v354_v33 }
  0x3a PF: > { %v361_v34 = vld [vmem:[%s4313_s9 + $0x14] sm:$0xf]  ;;  %v362_v35 = vld [vmem:[%s4313_s9 + $0x18] sm:$0xf]  ;;  %vm389_vm8 = vcmask 125952   ;;  %vm393_vm9 = vcmask 122880  }
  0x3b   : > { %400 = vst.msk [vmem:[#allocation2 + $0x24] sm:$0xf] %vm389_vm8, %v361_v34  ;;  %401 = vst.msk [vmem:[#allocation2 + $0x28] sm:$0xf] %vm389_vm8, %v362_v35  ;;  %v357_v36 = vld [vmem:[%s4313_s9 + $0x4] sm:$0xf] }
  0x3c   : > { %v358_v37 = vld [vmem:[%s4313_s9 + $0x8] sm:$0xf]  ;;  %v365_v38 = vld [vmem:[%s4313_s9 + $0x24] sm:$0xf]  ;;  %391 = vst.msk [vmem:[#allocation2 + $0x14] sm:$0xf] %vm389_vm8, %v357_v36 }
  0x3d   : > { %392 = vst.msk [vmem:[#allocation2 + $0x18] sm:$0xf] %vm389_vm8, %v358_v37  ;;  %v366_v39 = vld [vmem:[%s4313_s9 + $0x28] sm:$0xf]  ;;  %406 = vst.msk [vmem:[#allocation2 + $0x34] sm:$0xf] %vm389_vm8, %v365_v38 }
  0x3e   : > { %v359_v40 = vld [vmem:[%s4313_s9 + $0xc] sm:$0x1]  ;;  %407 = vst.msk [vmem:[#allocation2 + $0x38] sm:$0xf] %vm389_vm8, %v366_v39  ;;  %vm394_vm10 = vsmask.f32 256 }
  0x3f   : > { %v396_v41 = vld [vmem:[#allocation2 + $0x1c] sm:$0x1]  ;;  %vm4395_vm11 = vmand %vm393_vm9, %vm394_vm10  ;;  %v402_v44 = vld [vmem:[#allocation2 + $0x2c] sm:$0x1]  ;;  %vm653_vm12 = vcmask 1042432   ;;  %s4197_s17 = smov 32  }
  0x40   : > { %v363_v42 = vld [vmem:[%s4313_s9 + $0x1c] sm:$0x1]  ;;  %v367_v45 = vld [vmem:[%s4313_s9 + $0x2c] sm:$0x1]  ;;  %v397_v46 = vsel %vm4395_vm11, %v359_v40, %v396_v41  ;;  %v369_v49 = vld [vmem:[%s4313_s9 + $0x34] sm:$0xf] }
  0x41   : > { %v403_v47 = vsel %vm4395_vm11, %v363_v42, %v402_v44  ;;  %v408_v48 = vld [vmem:[#allocation2 + $0x3c] sm:$0x1]  ;;  %v370_v50 = vld [vmem:[%s4313_s9 + $0x38] sm:$0xf]  ;;  %398 = vst [vmem:[#allocation2 + $0x1c] sm:$0x1] %v397_v46 }
  0x42   : > { %404 = vst [vmem:[#allocation2 + $0x2c] sm:$0x1] %v403_v47  ;;  %v409_v51 = vsel %vm4395_vm11, %v367_v45, %v408_v48  ;;  %412 = vst.msk [vmem:[#allocation2 + $0x44] sm:$0xf] %vm389_vm8, %v369_v49  ;;  %v371_v52 = vld [vmem:[%s4313_s9 + $0x3c] sm:$0x1] }
  0x43   : > { %413 = vst.msk [vmem:[#allocation2 + $0x48] sm:$0xf] %vm389_vm8, %v370_v50  ;;  %v414_v53 = vld [vmem:[#allocation2 + $0x4c] sm:$0x1]  ;;  %v377_v54 = vld [vmem:[%s4313_s9 + $0x54] sm:$0xf] }
  0x44   : > { %410 = vst [vmem:[#allocation2 + $0x3c] sm:$0x1] %v409_v51  ;;  %v415_v55 = vsel %vm4395_vm11, %v371_v52, %v414_v53  ;;  %v378_v56 = vld [vmem:[%s4313_s9 + $0x58] sm:$0xf]  ;;  %424 = vst.msk [vmem:[#allocation2 + $0x64] sm:$0xf] %vm389_vm8, %v377_v54 }
  0x45   : > { %v373_v57 = vld [vmem:[%s4313_s9 + $0x44] sm:$0xf]  ;;  %v374_v58 = vld [vmem:[%s4313_s9 + $0x48] sm:$0xf]  ;;  %416 = vst [vmem:[#allocation2 + $0x4c] sm:$0x1] %v415_v55 }
  0x46   : > { %v4418_v59 = vld [vmem:[#allocation2 + $0x24] sm:$0xf]  ;;  %v4420_v60 = vld [vmem:[#allocation2 + $0x28] sm:$0xf]  ;;  %425 = vst.msk [vmem:[#allocation2 + $0x68] sm:$0xf] %vm389_vm8, %v378_v56 }
  0x47   : > { %418 = vst.msk [vmem:[#allocation2 + $0x54] sm:$0xf] %vm389_vm8, %v373_v57  ;;  %419 = vst.msk [vmem:[#allocation2 + $0x58] sm:$0xf] %vm389_vm8, %v374_v58  ;;  %v375_v61 = vld [vmem:[%s4313_s9 + $0x4c] sm:$0x1]  ;;  %v3349_v62 = vcombine.low %v4418_v59, %v4420_v60 }
  0x48   : > { %v4428_v63 = vld [vmem:[#allocation2 + $0x14] sm:$0xf]  ;;  %v4430_v0 = vld [vmem:[#allocation2 + $0x18] sm:$0xf]  ;;  %v420_v4 = vld [vmem:[#allocation2 + $0x5c] sm:$0x1] }
  0x49   : > { %v4432_v1 = vld [vmem:[#allocation2 + $0x34] sm:$0xf]  ;;  %v3348_v2 = vcombine.low %v4428_v63, %v4430_v0  ;;  %v4436_v3 = vld [vmem:[#allocation2 + $0x38] sm:$0xf]  ;;  %v379_v5 = vld [vmem:[%s4313_s9 + $0x5c] sm:$0x1]  ;;  %v421_v15 = vsel %vm4395_vm11, %v375_v61, %v420_v4 }
  0x4a   : > { %v660_v6 = vrot.slane %v3349_v62, 5  ;;  %v4441_v7 = vcombine.low %v4432_v1, %v4436_v3  ;;  %v566_v8 = vshrl.u32 %v3349_v62, 16  ;;  %v569_v9 = vshll.u32 %v3349_v62, 16  ;;  %v426_v10 = vld [vmem:[#allocation2 + $0x6c] sm:$0x1]  ;;  %v3832_v11 = vld [vmem:[%s5678_s1 + $0x18] sm:$0xff]  }
  0x4b   : > { %v657_v12 = vrot.slane %v3348_v2, 5  ;;  %v558_v13 = vshrl.u32 %v3348_v2, 16  ;;  %v561_v14 = vshll.u32 %v3348_v2, 16  ;;  %v381_v16 = vld [vmem:[%s4313_s9 + $0x64] sm:$0xf]  ;;  %v427_v20 = vsel %vm4395_vm11, %v379_v5, %v426_v10  ;;  %3577 = vmatprep.subr.bf16.mxu0 %v3832_v11  ;;  %v3834_v34 = vld [vmem:[%s5678_s1 + $0x28] sm:$0xff]  }
  0x4c   : > { %v3833_v17 = vld [vmem:[%s5678_s1 + $0x20] sm:$0xff]   ;;  %686 = vrot.lane.b32.xlu0 %v660_v6, %s4197_s17  ;;  %v663_v18 = vrot.slane %v4441_v7, 5  ;;  %v3817_v19 = vld [vmem:[#allocation2 + $0x1c] ss:$0 sps:$4 sm:$0x11]   ;;  %3578 = vmatpush3.bf16.msra.mxu0 %v3832_v11  ;;  %v568_v25 = vrot.slane %v566_v8, 4 }
  0x4d   : > { %422 = vst [vmem:[#allocation2 + $0x5c] sm:$0x1] %v421_v15  ;;  %430 = vst.msk [vmem:[#allocation2 + $0x74] sm:$0xf] %vm389_vm8, %v381_v16  ;;  %682 = vrot.lane.b32.xlu1 %v657_v12, %s4197_s17  ;;  %v560_v22 = vrot.slane %v558_v13, 4  ;;  %v658_v23 = vrot.slane %v3817_v19, 5  ;;  %3579 = vmatprep.subr.bf16.mxu0 %v3833_v17 }
  0x4e   : > { %v3818_v21 = vld [vmem:[#allocation2 + $0x2c] ss:$0 sps:$4 sm:$0x11]   ;;  %428 = vst [vmem:[#allocation2 + $0x6c] sm:$0x1] %v427_v20  ;;  %v563_v24 = vrot.slane %v561_v14, 5 }
  0x4f   : > { %v571_v26 = vrot.slane %v569_v9, 5  ;;  %v661_v27 = vrot.slane %v3818_v21, 5  ;;  %v3819_v28 = vld [vmem:[#allocation2 + $0x3c] ss:$0 sps:$4 sm:$0x11]   ;;  %v659_v30 = vsel %vm653_vm12, %v657_v12, %v658_v23  ;;  %v574_v33 = vshrl.u32 %v4441_v7, 16 }
  0x50   : > { %v4458_v29 = vld [vmem:[#allocation2 + $0x44] sm:$0xf]  ;;  %690 = vrot.lane.b32.xlu0 %v663_v18, %s4197_s17  ;;  %v564_v31 = vor.u32 %v563_v24, %v560_v22  ;;  %v4462_v32 = vld [vmem:[#allocation2 + $0x48] sm:$0xf]  ;;  %v577_v36 = vshll.u32 %v4441_v7, 16  ;;  %3580 = vmatpush3.bf16.msra.mxu0 %v3833_v17  ;;  %v664_v38 = vrot.slane %v3819_v28, 5 }
  0x51   : > { %684 = vrot.lane.b32.xlu1 %v659_v30, %s4197_s17  ;;  %v3351_v35 = vcombine.low %v4458_v29, %v4462_v32  ;;  %v662_v37 = vsel %vm653_vm12, %v660_v6, %v661_v27  ;;  %v4473_v39 = vld [vmem:[#allocation2 + $0x64] sm:$0xf]  ;;  %v4475_v40 = vld [vmem:[#allocation2 + $0x68] sm:$0xf]  ;;  %3581 = vmatprep.subr.bf16.mxu0 %v3834_v34  ;;  %v4477_v44 = vld [vmem:[#allocation2 + $0x54] sm:$0xf]  ;;  %v572_v45 = vor.u32 %v571_v26, %v568_v25 }
  0x52   : > { %s4198_s30 = smov 16   ;;  %v576_v46 = vrot.slane %v574_v33, 4  ;;  %v579_v47 = vrot.slane %v577_v36, 5  ;;  %v4480_v48 = vld [vmem:[#allocation2 + $0x58] sm:$0xf]  ;;  %v4485_v52 = vcombine.low %v4473_v39, %v4475_v40  ;;  %v665_v54 = vsel %vm653_vm12, %v663_v18, %v664_v38  ;;  %v4538_v36 = vld [vmem:[%s5678_s1] sm:$0xff]  }
  0x53   : > { %v582_v41 = vshrl.u32 %v3351_v35, 16  ;;  %v585_v42 = vshll.u32 %v3351_v35, 16  ;;  %v3821_v51 = vld [vmem:[#allocation2 + $0x4c] ss:$0 sps:$4 sm:$0x11]   ;;  %v4489_v53 = vcombine.low %v4477_v44, %v4480_v48  ;;  %v666_v56 = vrot.slane %v3351_v35, 5 }
  0x54   : > { %615 = vrot.lane.b32.xlu0 %v564_v31, %s4198_s30  ;;  %3582 = vmatpush3.bf16.msra.mxu0 %v3834_v34  ;;  %v580_v55 = vor.u32 %v579_v47, %v576_v46  ;;  %v382_v61 = vld [vmem:[%s4313_s9 + $0x68] sm:$0xf]  ;;  %v667_v2 = vrot.slane %v3821_v51, 5  ;;  %v598_v4 = vshrl.u32 %v4485_v52, 16  ;;  %v601_v5 = vshll.u32 %v4485_v52, 16  ;;  %s4199_s26 = smov 112  }
  0x55   : > { %688 = vrot.lane.b32.xlu1 %v662_v37, %s4197_s17  ;;  %v584_v49 = vrot.slane %v582_v41, 4  ;;  %v587_v50 = vrot.slane %v585_v42, 5  ;;  %v590_v57 = vshrl.u32 %v4489_v53, 16  ;;  %v593_v58 = vshll.u32 %v4489_v53, 16  ;;  %431 = vst.msk [vmem:[#allocation2 + $0x78] sm:$0xf] %vm389_vm8, %v382_v61  ;;  %3599 = vmatprep.subr.bf16.mxu0 %v4538_v36 }
  0x56   : > { %v385_v6 = vld [vmem:[%s4313_s9 + $0x74] sm:$0xf]  ;;  %v386_v7 = vld [vmem:[%s4313_s9 + $0x78] sm:$0xf]  ;;  %v383_v8 = vld [vmem:[%s4313_s9 + $0x6c] sm:$0x1]  ;;  %v668_v21 = vsel %vm653_vm12, %v666_v56, %v667_v2 }
  0x57   : > { %v588_v62 = vor.u32 %v587_v50, %v584_v49  ;;  %v3824_v9 = vld [vmem:[#allocation2 + $0x5c] ss:$0 sps:$4 sm:$0x11]   ;;  %436 = vst.msk [vmem:[#allocation2 + $0x84] sm:$0xf] %vm389_vm8, %v385_v6  ;;  %v592_v13 = vrot.slane %v590_v57, 4 }
  0x58   : > { %617 = vrot.lane.b32.xlu0 %v572_v45, %s4198_s30  ;;  %437 = vst.msk [vmem:[#allocation2 + $0x88] sm:$0xf] %vm389_vm8, %v386_v7  ;;  %v432_v10 = vld [vmem:[#allocation2 + $0x7c] sm:$0x1]  ;;  %v438_v12 = vld [vmem:[#allocation2 + $0x8c] sm:$0x1] }
  0x59   : > { %692 = vrot.lane.b32.xlu1 %v665_v54, %s4197_s17  ;;  %v387_v11 = vld [vmem:[%s4313_s9 + $0x7c] sm:$0x1]  ;;  %v595_v14 = vrot.slane %v593_v58, 5  ;;  %v433_v15 = vsel %vm4395_vm11, %v383_v8, %v432_v10  ;;  %v600_v17 = vrot.slane %v598_v4, 4  ;;  %v603_v18 = vrot.slane %v601_v5, 5  ;;  %s3234_s8 = sshll.u32 %s4315_s10, 4  ;;  %s5614_s8 = int_to_ptr.vmem [resolvable:$true] %s3234_s8 }
  0x5a   : > { %v439_v16 = vsel %vm4395_vm11, %v387_v11, %v438_v12  ;;  %v4512_v19 = vld [vmem:[#allocation2 + $0x74] sm:$0xf]  ;;  %434 = vst [vmem:[#allocation2 + $0x7c] sm:$0x1] %v433_v15  ;;  %v356_v20 = vld [vmem:[%s4313_s9] sm:$0xf] }
  0x5b   : > { %440 = vst [vmem:[#allocation2 + $0x8c] sm:$0x1] %v439_v16  ;;  %390 = vst.msk [vmem:[#allocation2 + $0x10] sm:$0xf] %vm389_vm8, %v356_v20  ;;  %v360_v22 = vld [vmem:[%s4313_s9 + $0x10] sm:$0xf]  ;;  %v596_v43 = vor.u32 %v595_v14, %v592_v13  ;;  %v604_v26 = vor.u32 %v603_v18, %v600_v17 }
  0x5c   : > { %619 = vrot.lane.b32.xlu0 %v580_v55, %s4198_s30  ;;  %399 = vst.msk [vmem:[#allocation2 + $0x20] sm:$0xf] %vm389_vm8, %v360_v22  ;;  %v3825_v23 = vld [vmem:[#allocation2 + $0x6c] ss:$0 sps:$4 sm:$0x11]   ;;  %v669_v27 = vrot.slane %v4489_v53, 5 }
  0x5d   : > { %621 = vrot.lane.b32.xlu1 %v588_v62, %s4198_s30  ;;  %v4520_v24 = vld [vmem:[#allocation2 + $0x78] sm:$0xf]  ;;  %v368_v25 = vld [vmem:[%s4313_s9 + $0x30] sm:$0xf]  ;;  %v670_v28 = vrot.slane %v3824_v9, 5  ;;  %v672_v45 = vrot.slane %v4485_v52, 5 }
  0x5e   : > { %v3354_v30 = vcombine.low %v4512_v19, %v4520_v24  ;;  %411 = vst.msk [vmem:[#allocation2 + $0x40] sm:$0xf] %vm389_vm8, %v368_v25  ;;  %v364_v31 = vld [vmem:[%s4313_s9 + $0x20] sm:$0xf]  ;;  %v4529_v33 = vld [vmem:[#allocation2 + $0x84] sm:$0xf] }
  0x5f   : > { %v4531_v34 = vld [vmem:[#allocation2 + $0x88] sm:$0xf]  ;;  %405 = vst.msk [vmem:[#allocation2 + $0x30] sm:$0xf] %vm389_vm8, %v364_v31  ;;  %v376_v35 = vld [vmem:[%s4313_s9 + $0x50] sm:$0xf]  ;;  %v671_v42 = vsel %vm653_vm12, %v669_v27, %v670_v28  ;;  %v3334_v28 = vcombine.low %v4430_v0, %v4430_v0 }
  0x60   : > { %694 = vrot.lane.b32.xlu0 %v666_v56, %s4197_s17  ;;  %v606_v37 = vshrl.u32 %v3354_v30, 16  ;;  %v609_v38 = vshll.u32 %v3354_v30, 16  ;;  %v3365_v41 = vcombine.low %v4529_v33, %v4531_v34  ;;  %423 = vst.msk [vmem:[#allocation2 + $0x60] sm:$0xf] %vm389_vm8, %v376_v35  ;;  %v673_v46 = vrot.slane %v3825_v23, 5  ;;  %s5625_s14 = scalar_lea.sflag [#allocation5], %s242_s12 }
  0x61   : > { %696 = vrot.lane.b32.xlu1 %v668_v21, %s4197_s17  ;;  %v4548_v47 = vld [vmem:[#allocation2 + $0x4] sm:$0xf]  ;;  %v3828_v49 = vld [vmem:[#allocation2 + $0x7c] ss:$0 sps:$4 sm:$0x11]   ;;  %v675_v62 = vrot.slane %v3354_v30, 5 }
  0x62   : > { %v4550_v50 = vld [vmem:[#allocation2 + $0x8] sm:$0xf]  ;;  %v608_v51 = vrot.slane %v606_v37, 4  ;;  %v611_v53 = vrot.slane %v609_v38, 5  ;;  %v921_v54 = vshrl.u32 %v3365_v41, 16  ;;  %v924_v55 = vshll.u32 %v3365_v41, 16 }
  0x63   : > { %v372_v56 = vld [vmem:[%s4313_s9 + $0x40] sm:$0xf]  ;;  %v674_v52 = vsel %vm653_vm12, %v672_v45, %v673_v46  ;;  %v3347_v57 = vcombine.low %v4548_v47, %v4550_v50  ;;  %v384_v61 = vld [vmem:[%s4313_s9 + $0x70] sm:$0xf]  ;;  %v676_v2 = vrot.slane %v3828_v49, 5  ;;  %v933_v12 = vrot.slane %v3365_v41, 5 }
  0x64   : > { %623 = vrot.lane.b32.xlu0 %v596_v43, %s4198_s30  ;;  %417 = vst.msk [vmem:[#allocation2 + $0x50] sm:$0xf] %vm389_vm8, %v372_v56  ;;  %v380_v58 = vld [vmem:[%s4313_s9 + $0x60] sm:$0xf]  ;;  %435 = vst.msk [vmem:[#allocation2 + $0x80] sm:$0xf] %vm389_vm8, %v384_v61  ;;  %v612_v4 = vor.u32 %v611_v53, %v608_v51 }
  0x65   : > { %625 = vrot.lane.b32.xlu1 %v604_v26, %s4198_s30  ;;  %429 = vst.msk [vmem:[#allocation2 + $0x70] sm:$0xf] %vm389_vm8, %v380_v58  ;;  %v923_v5 = vrot.slane %v921_v54, 4  ;;  %v926_v6 = vrot.slane %v924_v55, 5  ;;  %v550_v8 = vshrl.u32 %v3347_v57, 16  ;;  %v553_v9 = vshll.u32 %v3347_v57, 16 }
  0x66   : > { %v3829_v7 = vld [vmem:[#allocation2 + $0x8c] ss:$0 sps:$4 sm:$0x11]   ;;  %v677_v11 = vsel %vm653_vm12, %v675_v62, %v676_v2  ;;  %v654_v20 = vrot.slane %v3347_v57, 5  ;;  %v445_v25 = vld [vmem:[#allocation2 + $0x10] sm:$0xf]  ;;  %v3340_v57 = vcombine.low %v4462_v32, %v4462_v32 }
  0x67   : > { %v927_v10 = vor.u32 %v926_v6, %v923_v5  ;;  %v934_v13 = vrot.slane %v3829_v7, 5  ;;  %v552_v14 = vrot.slane %v550_v8, 4  ;;  %v555_v15 = vrot.slane %v553_v9, 5  ;;  %v3831_v16 = vld [vmem:[#allocation2 + $0xc] ss:$0 sps:$4 sm:$0x11]  }
  0x68   : > { %698 = vrot.lane.b32.xlu0 %v669_v27, %s4197_s17  ;;  %v655_v21 = vrot.slane %v3831_v16, 5  ;;  %v3333_v30 = vcombine.low %v445_v25, %v4428_v63  ;;  %vm710_vm13 = vcmask 130048   ;;  %v449_v31 = vld [vmem:[#allocation2 + $0x20] sm:$0xf]  ;;  %vm751_vm14 = vcmask 261120   ;;  %s4100_s15 = scalar_lea.vmem %s5614_s8, 2048 }
  0x69   : > { %700 = vrot.lane.b32.xlu1 %v671_v42, %s4197_s17  ;;  %v935_v17 = vsel %vm653_vm12, %v933_v12, %v934_v13  ;;  %v556_v18 = vor.u32 %v555_v15, %v552_v14  ;;  %v3335_v42 = vcombine.low %v449_v31, %v4418_v59  ;;  %v457_v46 = vld [vmem:[#allocation2 + $0x40] sm:$0xf]  ;;  %v453_v49 = vld [vmem:[#allocation2 + $0x30] sm:$0xf]  ;;  %vm784_vm15 = vsmask.f32 4352  ;;  %p4101_p2 = scmp.ne.s32.totalorder %s5614_s8, %s4100_s15 }
  0x6a   : > { %v656_v22 = vsel %vm653_vm12, %v654_v20, %v655_v21  ;;  %v3337_v59 = vcombine.low %v453_v49, %v4432_v1  ;;  %vm989_vm0 = vcmask 392192   ;;  %s4200_s16 = smov [#allocation4]  }
  0x6b   : > { %v461_v21 = vld [vmem:[#allocation2 + $0x50] sm:$0xf]  ;;  %p4102_p4 = pnand %p4101_p2, %p4284_p3  ;;  %s4104_s27 = sshll.u32 %s4200_s16, 4  ;;  %s4105_s27 = int_to_ptr.vmem [resolvable:$false] %s4104_s27 }
  0x6c   : > { %702 = vrot.lane.b32.xlu0 %v672_v45, %s4197_s17  ;;  %v3336_v45 = vcombine.low %v4420_v60, %v4420_v60  ;;  %v3338_v60 = vcombine.low %v4436_v3, %v4436_v3  ;;  %p4107_p6 = scmp.lt.s32.totalorder %s5614_s8, %s4105_s27 }
  0x6d   : > { %704 = vrot.lane.b32.xlu1 %v674_v52, %s4197_s17  ;;  %v3339_v52 = vcombine.low %v457_v46, %v4458_v29  ;;  %p4103_p5 = pneg %p4102_p4 }
  0x70   : > { %627 = vrot.lane.b32.xlu0 %v612_v4, %s4198_s30 }
  0x71   : > { %706 = vrot.lane.b32.xlu1 %v675_v62, %s4197_s17 }
  0x74   : > { %708 = vrot.lane.b32.xlu0 %v677_v11, %s4197_s17 }
  0x75   : > { %928 = vrot.lane.b32.xlu1 %v927_v10, %s4198_s30 }
  0x78   : > { %936 = vrot.lane.b32.xlu0 %v933_v12, %s4197_s17 }
  0x79   : > { %938 = vrot.lane.b32.xlu1 %v935_v17, %s4197_s17 }
  0x7c   : > { %613 = vrot.lane.b32.xlu0 %v556_v18, %s4198_s30 }
  0x7d   : > { %678 = vrot.lane.b32.xlu1 %v654_v20, %s4197_s17 }
  0x80   : > { %680 = vrot.lane.b32.xlu0 %v656_v22, %s4197_s17 }
  0xbe   : > { %v687_v43 = vpop.permute.xlu0 %686 }
  0xbf   : > { %v683_v23 = vpop.permute.xlu1 %682 }
  0xc2   : > { %v691_v26 = vpop.permute.xlu0 %690 }
  0xc3   : > { %v685_v27 = vpop.permute.xlu1 %684 }
  0xc6   : > { %v616_v35 = vpop.permute.xlu0 %615 }
  0xc7   : > { %v689_v37 = vpop.permute.xlu1 %688  ;;  %v718_v38 = vsel %vm710_vm13, %v3333_v30, %v616_v35  ;;  %v720_v41 = vsel %vm710_vm13, %v3334_v28, %v616_v35 }
  0xc8   : > { %v757_v0 = vsel %vm751_vm14, %v718_v38, %v683_v23  ;;  %v759_v63 = vsel %vm751_vm14, %v720_v41, %v685_v27 }
  0xc9   : > { %v800_v51 = vshrl.u32 %v757_v0, 16  ;;  %v803_v53 = vshll.u32 %v757_v0, 16  ;;  %v807_v54 = vshrl.u32 %v759_v63, 16  ;;  %v810_v55 = vshll.u32 %v759_v63, 16  ;;  %v3836_v63 = vld [vmem:[%s5678_s1 + $0x8] sm:$0xff]  }
  0xca   : > { %v618_v56 = vpop.permute.xlu0 %617 }
  0xcb   : > { %v693_v58 = vpop.permute.xlu1 %692  ;;  %v723_v61 = vsel %vm710_vm13, %v3335_v42, %v618_v56  ;;  %v725_v62 = vsel %vm710_vm13, %v3336_v45, %v618_v56  ;;  %v802_v2 = vrot.slane %v800_v51, 3  ;;  %v805_v4 = vrot.slane %v803_v53, 4 }
  0xcc   : > { %v761_v5 = vsel %vm751_vm14, %v723_v61, %v687_v43  ;;  %v763_v6 = vsel %vm751_vm14, %v725_v62, %v689_v37  ;;  %v809_v29 = vrot.slane %v807_v54, 3  ;;  %v812_v7 = vrot.slane %v810_v55, 4  ;;  %v465_v61 = vld [vmem:[#allocation2 + $0x60] sm:$0xf] }
  0xcd   : > { %v815_v8 = vshrl.u32 %v761_v5, 16  ;;  %v818_v32 = vshll.u32 %v761_v5, 16  ;;  %v822_v9 = vshrl.u32 %v763_v6, 16  ;;  %v825_v1 = vshll.u32 %v763_v6, 16  ;;  %v3837_v6 = vld [vmem:[%s5678_s1 + $0x10] sm:$0xff]  }
  0xce   : > { %v620_v10 = vpop.permute.xlu0 %619  ;;  %v806_v3 = vor.u32 %v805_v4, %v802_v2  ;;  %v813_v11 = vor.u32 %v812_v7, %v809_v29  ;;  %v3341_v42 = vcombine.low %v461_v21, %v4477_v44  ;;  %v3342_v2 = vcombine.low %v4480_v48, %v4480_v48 }
  0xcf   : > { %v817_v12 = vrot.slane %v815_v8, 3  ;;  %v820_v13 = vrot.slane %v818_v32, 4  ;;  %v824_v14 = vrot.slane %v822_v9, 3  ;;  %v827_v15 = vrot.slane %v825_v1, 4  ;;  %v622_v16 = vpop.permute.xlu1 %621 }
  0xd0   : > { %v733_v17 = vsel %vm710_vm13, %v3339_v52, %v622_v16  ;;  %v728_v18 = vsel %vm710_vm13, %v3337_v59, %v620_v10  ;;  %v730_v20 = vsel %vm710_vm13, %v3338_v60, %v620_v10  ;;  %v4603_v23 = vsel %vm784_vm15, %v806_v3, %v813_v11  ;;  %v469_v11 = vld [vmem:[#allocation2 + $0x70] sm:$0xf] }
  0xd1   : > { %v765_v22 = vsel %vm751_vm14, %v728_v18, %v691_v26  ;;  %v767_v43 = vsel %vm751_vm14, %v730_v20, %v693_v58  ;;  %v821_v25 = vor.u32 %v820_v13, %v817_v12  ;;  %3583 = vmatprep.mubr.msk.bf16.mxu0 %vm989_vm0, %v4603_v23  ;;  %v735_v37 = vsel %vm710_vm13, %v3340_v57, %v622_v16 }
  0xd2   : > { %v830_v27 = vshrl.u32 %v765_v22, 16  ;;  %v833_v28 = vshll.u32 %v765_v22, 16  ;;  %v837_v30 = vshrl.u32 %v767_v43, 16  ;;  %v840_v31 = vshll.u32 %v767_v43, 16  ;;  %v695_v35 = vpop.permute.xlu0 %694 }
  0xd3   : > { %v697_v38 = vpop.permute.xlu1 %696  ;;  %v769_v41 = vsel %vm751_vm14, %v733_v17, %v695_v35  ;;  %v828_v26 = vor.u32 %v827_v15, %v824_v14  ;;  %v3343_v32 = vcombine.low %v465_v61, %v4473_v39  ;;  %v3345_v21 = vcombine.low %v469_v11, %v4512_v19 }
  0xd4   : > { %v832_v45 = vrot.slane %v830_v27, 3  ;;  %v835_v46 = vrot.slane %v833_v28, 4  ;;  %v839_v49 = vrot.slane %v837_v30, 3  ;;  %v842_v0 = vrot.slane %v840_v31, 4 }
  0xd5   : > { %v771_v51 = vsel %vm751_vm14, %v735_v37, %v697_v38  ;;  %v845_v53 = vshrl.u32 %v769_v41, 16  ;;  %v848_v54 = vshll.u32 %v769_v41, 16  ;;  %v4615_v55 = vsel %vm784_vm15, %v821_v25, %v828_v26 }
  0xd6   : > { %v852_v56 = vshrl.u32 %v771_v51, 16  ;;  %v855_v52 = vshll.u32 %v771_v51, 16  ;;  %3584 = vmatmul.mubr.msk.bf16.vlgmr.msra.gmra.mrb[0].mxu0 %vm989_vm0, %v4615_v55  ;;  %v624_v44 = vpop.permute.xlu0 %623  ;;  %v836_v57 = vor.u32 %v835_v46, %v832_v45  ;;  %v843_v59 = vor.u32 %v842_v0, %v839_v49 }
  0xd7   : > { %v847_v60 = vrot.slane %v845_v53, 3  ;;  %v850_v58 = vrot.slane %v848_v54, 4  ;;  %v626_v62 = vpop.permute.xlu1 %625  ;;  %3600 = vmatpush3.bf16.msra.mxu0 %v4538_v36  ;;  %v738_v9 = vsel %vm710_vm13, %v3341_v42, %v624_v44  ;;  %v3344_v36 = vcombine.low %v4475_v40, %v4475_v40  ;;  %v473_v53 = vld [vmem:[#allocation2 + $0x80] sm:$0xf] }
  0xd8   : > { %v854_v4 = vrot.slane %v852_v56, 3  ;;  %v857_v5 = vrot.slane %v855_v52, 4  ;;  %3601 = vmatprep.subr.bf16.mxu0 %v3836_v63  ;;  %v4626_v7 = vsel %vm784_vm15, %v836_v57, %v843_v59  ;;  %v740_v1 = vsel %vm710_vm13, %v3342_v2, %v624_v44 }
  0xd9   : > { %v851_v29 = vor.u32 %v850_v58, %v847_v60  ;;  %3587 = vmatprep.mubr.msk.bf16.mxu0 %vm989_vm0, %v4626_v7  ;;  %v743_v17 = vsel %vm710_vm13, %v3343_v32, %v626_v62  ;;  %v745_v22 = vsel %vm710_vm13, %v3344_v36, %v626_v62  ;;  %v3346_v19 = vcombine.low %v4520_v24, %v4520_v24  ;;  %v441_v32 = vld [vmem:[#allocation2] sm:$0xf] }
  0xda   : > { %v858_v8 = vor.u32 %v857_v5, %v854_v4  ;;  %v699_v48 = vpop.permute.xlu0 %698  ;;  %v3363_v60 = vcombine.low %v473_v53, %v4529_v33  ;;  %v3364_v58 = vcombine.low %v4531_v34, %v4531_v34 }
  0xdb   : > { %v701_v10 = vpop.permute.xlu1 %700  ;;  %v773_v3 = vsel %vm751_vm14, %v738_v9, %v699_v48  ;;  %3602 = vmatpush3.bf16.msra.mxu0 %v3836_v63 }
  0xdc   : > { %v775_v12 = vsel %vm751_vm14, %v740_v1, %v701_v10  ;;  %v860_v13 = vshrl.u32 %v773_v3, 16  ;;  %v863_v39 = vshll.u32 %v773_v3, 16  ;;  %v4638_v14 = vsel %vm784_vm15, %v851_v29, %v858_v8  ;;  %3603 = vmatprep.subr.bf16.mxu0 %v3837_v6 }
  0xdd   : > { %v867_v15 = vshrl.u32 %v775_v12, 16  ;;  %v870_v16 = vshll.u32 %v775_v12, 16  ;;  %v3331_v3 = vcombine.low %v441_v32, %v4548_v47 }
  0xde   : > { %v862_v40 = vrot.slane %v860_v13, 3  ;;  %v865_v18 = vrot.slane %v863_v39, 4  ;;  %3588 = vmatmul.mubr.msk.bf16.gmra.mrb[4].mxu0 %vm989_vm0, %v4638_v14  ;;  %v703_v20 = vpop.permute.xlu0 %702 }
  0xdf   : > { %v869_v43 = vrot.slane %v867_v15, 3  ;;  %v872_v25 = vrot.slane %v870_v16, 4  ;;  %v705_v27 = vpop.permute.xlu1 %704  ;;  %v777_v28 = vsel %vm751_vm14, %v743_v17, %v703_v20  ;;  %3604 = vmatpush3.bf16.msra.mxu0 %v3837_v6  ;;  %v3332_v20 = vcombine.low %v4550_v50, %v4550_v50 }
  0xe0   : > { %v866_v30 = vor.u32 %v865_v18, %v862_v40  ;;  %v779_v31 = vsel %vm751_vm14, %v745_v22, %v705_v27  ;;  %v875_v35 = vshrl.u32 %v777_v28, 16  ;;  %v878_v37 = vshll.u32 %v777_v28, 16 }
  0xe1   : > { %v873_v38 = vor.u32 %v872_v25, %v869_v43  ;;  %v882_v41 = vshrl.u32 %v779_v31, 16  ;;  %v885_v26 = vshll.u32 %v779_v31, 16 }
  0xe2   : > { %v877_v42 = vrot.slane %v875_v35, 3  ;;  %v880_v45 = vrot.slane %v878_v37, 4  ;;  %v628_v46 = vpop.permute.xlu0 %627 }
  0xe3   : > { %v884_v49 = vrot.slane %v882_v41, 3  ;;  %v887_v0 = vrot.slane %v885_v26, 4  ;;  %v707_v63 = vpop.permute.xlu1 %706  ;;  %v748_v51 = vsel %vm710_vm13, %v3345_v21, %v628_v46  ;;  %v4652_v52 = vsel %vm784_vm15, %v866_v30, %v873_v38 }
  0xe4   : > { %v881_v54 = vor.u32 %v880_v45, %v877_v42  ;;  %v781_v56 = vsel %vm751_vm14, %v748_v51, %v707_v63  ;;  %3591 = vmatprep.mubr.msk.bf16.mxu0 %vm989_vm0, %v4652_v52  ;;  %v750_v24 = vsel %vm710_vm13, %v3346_v19, %v628_v46 }
  0xe5   : > { %v888_v44 = vor.u32 %v887_v0, %v884_v49  ;;  %v890_v57 = vshrl.u32 %v781_v56, 16  ;;  %v893_v59 = vshll.u32 %v781_v56, 16 }
  0xe6   : > { %v709_v61 = vpop.permute.xlu0 %708 }
  0xe7   : > { %v892_v62 = vrot.slane %v890_v57, 3  ;;  %v895_v2 = vrot.slane %v893_v59, 4  ;;  %v929_v4 = vpop.permute.xlu1 %928  ;;  %v783_v5 = vsel %vm751_vm14, %v750_v24, %v709_v61  ;;  %v889_v6 = vsel %vm784_vm15, %v881_v54, %v888_v44 }
  0xe8   : > { %v897_v29 = vshrl.u32 %v783_v5, 16  ;;  %v900_v8 = vshll.u32 %v783_v5, 16  ;;  %3592 = vmatmul.mubr.msk.bf16.gmra.mrb[8].mxu0 %vm989_vm0, %v889_v6  ;;  %v942_v9 = vsel %vm710_vm13, %v3363_v60, %v929_v4  ;;  %v944_v34 = vsel %vm710_vm13, %v3364_v58, %v929_v4 }
  0xe9   : > { %v896_v11 = vor.u32 %v895_v2, %v892_v62 }
  0xea   : > { %v899_v48 = vrot.slane %v897_v29, 3  ;;  %v902_v33 = vrot.slane %v900_v8, 4  ;;  %v937_v36 = vpop.permute.xlu0 %936 }
  0xeb   : > { %v939_v1 = vpop.permute.xlu1 %938  ;;  %v946_v10 = vsel %vm751_vm14, %v942_v9, %v937_v36 }
  0xec   : > { %v903_v12 = vor.u32 %v902_v33, %v899_v48  ;;  %v948_v13 = vsel %vm751_vm14, %v944_v34, %v939_v1  ;;  %v949_v39 = vshrl.u32 %v946_v10, 16  ;;  %v952_v15 = vshll.u32 %v946_v10, 16 }
  0xed   : > { %v956_v16 = vshrl.u32 %v948_v13, 16  ;;  %v959_v17 = vshll.u32 %v948_v13, 16 }
  0xee   : > { %v951_v40 = vrot.slane %v949_v39, 3  ;;  %v954_v18 = vrot.slane %v952_v15, 4  ;;  %v614_v21 = vpop.permute.xlu0 %613  ;;  %v904_v22 = vsel %vm784_vm15, %v896_v11, %v903_v12 }
  0xef   : > { %v958_v43 = vrot.slane %v956_v16, 3  ;;  %v961_v25 = vrot.slane %v959_v17, 4  ;;  %v713_v47 = vsel %vm710_vm13, %v3331_v3, %v614_v21  ;;  %v679_v27 = vpop.permute.xlu1 %678  ;;  %3595 = vmatprep.mubr.msk.bf16.mxu0 %vm989_vm0, %v904_v22  ;;  %v715_v38 = vsel %vm710_vm13, %v3332_v20, %v614_v21 }
  0xf0   : > { %v955_v28 = vor.u32 %v954_v18, %v951_v40  ;;  %v753_v30 = vsel %vm751_vm14, %v713_v47, %v679_v27 }
  0xf1   : > { %v962_v31 = vor.u32 %v961_v25, %v958_v43  ;;  %v785_v35 = vshrl.u32 %v753_v30, 16  ;;  %v788_v37 = vshll.u32 %v753_v30, 16 }
  0xf2   : > { %v681_v41 = vpop.permute.xlu0 %680 }
  0xf3   : > { %v755_v50 = vsel %vm751_vm14, %v715_v38, %v681_v41  ;;  %v963_v26 = vsel %vm784_vm15, %v955_v28, %v962_v31  ;;  %v787_v42 = vrot.slane %v785_v35, 3  ;;  %v790_v45 = vrot.slane %v788_v37, 4 }
  0xf4   : > { %v792_v19 = vshrl.u32 %v755_v50, 16  ;;  %v795_v46 = vshll.u32 %v755_v50, 16  ;;  %3596 = vmatmul.mubr.msk.bf16.gmra.mrb[12].mxu0 %vm989_vm0, %v963_v26 }
  0xf5   : > { %v791_v63 = vor.u32 %v790_v45, %v787_v42 }
  0xf6   : > { %v794_v49 = vrot.slane %v792_v19, 3  ;;  %v797_v0 = vrot.slane %v795_v46, 4 }
  0xf8   : > { %v798_v51 = vor.u32 %v797_v0, %v794_v49 }
  0xfa   : > { %v799_v53 = vsel %vm784_vm15, %v791_v63, %v798_v51 }
  0xfb   : > { %3605 = vmatprep.mubr.msk.bf16.mxu0 %vm989_vm0, %v799_v53 }
  0xfc   : > { %3606 = vmatmul.mubr.msk.bf16.vlgmr.msra.gmra.mrb[0].mxu0 %vm989_vm0, %v4603_v23 }
  0xfd   : > { %3609 = vmatprep.mubr.msk.bf16.mxu0 %vm989_vm0, %v4615_v55 }
 0x104   : > { %3610 = vmatmul.mubr.msk.bf16.gmra.mrb[4].mxu0 %vm989_vm0, %v4626_v7 }
 0x105   : > { %3613 = vmatprep.mubr.msk.bf16.mxu0 %vm989_vm0, %v4638_v14 }
 0x10c   : > { %3614 = vmatmul.mubr.msk.bf16.gmra.mrb[8].mxu0 %vm989_vm0, %v4652_v52 }
 0x10d   : > { %3617 = vmatprep.mubr.msk.bf16.mxu0 %vm989_vm0, %v889_v6 }
 0x114   : > { %3618 = vmatmul.mubr.msk.bf16.gmra.mrb[12].mxu0 %vm989_vm0, %v904_v22 }
 0x1cf   : > { %v4692_v54 = vpop.f32.mrb[0].mxu0 }
 0x1d0   : > { %v3397_v23 = vmul.f32 -1.442695, %v4692_v54  ;;  %v4695_v56 = vpop.f32.mrb[1].mxu0 }
 0x1d1   : > { %v3395_v55 = vmul.f32 -1.442695, %v4695_v56  ;;  %v4698_v44 = vpop.f32.mrb[2].mxu0 }
 0x1d2   : > { %3876 = vpow2.f32 %v3397_v23  ;;  %v3398_v7 = vmul.f32 -1.442695, %v4698_v44  ;;  %v4701_v14 = vpop.f32.mrb[3].mxu0 }
 0x1d3   : > { %3878 = vpow2.f32 %v3395_v55  ;;  %v3396_v52 = vmul.f32 -1.442695, %v4701_v14 }
 0x1d4   : > { %3880 = vpow2.f32 %v3398_v7 }
 0x1d5   : > { %3882 = vpow2.f32 %v3396_v52 }
 0x1d7   : > { %v4704_v57 = vpop.f32.mrb[4].mxu0 }
 0x1d8   : > { %v3401_v59 = vmul.f32 -1.442695, %v4704_v57  ;;  %v4707_v24 = vpop.f32.mrb[5].mxu0 }
 0x1d9   : > { %v3399_v60 = vmul.f32 -1.442695, %v4707_v24  ;;  %v4710_v58 = vpop.f32.mrb[6].mxu0 }
 0x1da   : > { %3884 = vpow2.f32 %v3401_v59  ;;  %v3402_v61 = vmul.f32 -1.442695, %v4710_v58  ;;  %v4713_v62 = vpop.f32.mrb[7].mxu0 }
 0x1db   : > { %3886 = vpow2.f32 %v3399_v60  ;;  %v3400_v2 = vmul.f32 -1.442695, %v4713_v62 }
 0x1dc   : > { %v3877_v4 = vpop.eup %3876  ;;  %3888 = vpow2.f32 %v3402_v61 }
 0x1dd   : > { %v3879_v5 = vpop.eup %3878  ;;  %v1279_v6 = vadd.f32 1.0, %v3877_v4  ;;  %3890 = vpow2.f32 %v3400_v2 }
 0x1de   : > { %v3881_v29 = vpop.eup %3880  ;;  %v1277_v8 = vadd.f32 1.0, %v3879_v5 }
 0x1df   : > { %v3883_v32 = vpop.eup %3882  ;;  %3892 = vrcp.f32 %v1279_v6  ;;  %v1280_v9 = vadd.f32 1.0, %v3881_v29  ;;  %v4716_v48 = vpop.f32.mrb[8].mxu0 }
 0x1e0   : > { %3894 = vrcp.f32 %v1277_v8  ;;  %v1278_v33 = vadd.f32 1.0, %v3883_v32  ;;  %v3405_v36 = vmul.f32 -1.442695, %v4716_v48  ;;  %v4719_v34 = vpop.f32.mrb[9].mxu0 }
 0x1e1   : > { %3896 = vrcp.f32 %v1280_v9  ;;  %v3403_v1 = vmul.f32 -1.442695, %v4719_v34  ;;  %v4722_v10 = vpop.f32.mrb[10].mxu0 }
 0x1e2   : > { %3898 = vrcp.f32 %v1278_v33  ;;  %v3406_v3 = vmul.f32 -1.442695, %v4722_v10  ;;  %v4725_v11 = vpop.f32.mrb[11].mxu0 }
 0x1e3   : > { %3900 = vpow2.f32 %v3405_v36  ;;  %v3404_v12 = vmul.f32 -1.442695, %v4725_v11 }
 0x1e4   : > { %v3885_v13 = vpop.eup %3884  ;;  %3902 = vpow2.f32 %v3403_v1 }
 0x1e5   : > { %v3887_v39 = vpop.eup %3886  ;;  %v1283_v15 = vadd.f32 1.0, %v3885_v13  ;;  %3904 = vpow2.f32 %v3406_v3 }
 0x1e6   : > { %v3889_v16 = vpop.eup %3888  ;;  %v1281_v17 = vadd.f32 1.0, %v3887_v39  ;;  %3906 = vpow2.f32 %v3404_v12 }
 0x1e7   : > { %v3891_v40 = vpop.eup %3890  ;;  %3908 = vrcp.f32 %v1283_v15  ;;  %v1284_v18 = vadd.f32 1.0, %v3889_v16  ;;  %v4728_v20 = vpop.f32.mrb[12].mxu0 }
 0x1e8   : > { %3910 = vrcp.f32 %v1281_v17  ;;  %v1282_v21 = vadd.f32 1.0, %v3891_v40  ;;  %v3409_v22 = vmul.f32 -1.442695, %v4728_v20  ;;  %v4731_v43 = vpop.f32.mrb[13].mxu0 }
 0x1e9   : > { %v3893_v25 = vpop.eup %3892  ;;  %3912 = vrcp.f32 %v1284_v18  ;;  %v3407_v47 = vmul.f32 -1.442695, %v4731_v43  ;;  %v4734_v27 = vpop.f32.mrb[14].mxu0 }
 0x1ea   : > { %v3895_v28 = vpop.eup %3894  ;;  %3914 = vrcp.f32 %v1282_v21  ;;  %v3410_v30 = vmul.f32 -1.442695, %v4734_v27  ;;  %v4737_v31 = vpop.f32.mrb[15].mxu0 }
 0x1eb   : > { %v3897_v35 = vpop.eup %3896  ;;  %3916 = vpow2.f32 %v3409_v22  ;;  %v3408_v37 = vmul.f32 -1.442695, %v4737_v31  ;;  %1341 = vrot.lane.b32.xlu1 %v3895_v28, %s4198_s30 }
 0x1ec   : > { %v3899_v38 = vpop.eup %3898  ;;  %3918 = vpow2.f32 %v3407_v47 }
 0x1ed   : > { %v3901_v41 = vpop.eup %3900  ;;  %3920 = vpow2.f32 %v3410_v30  ;;  %1343 = vrot.lane.b32.xlu0 %v3899_v38, %s4198_s30 }
 0x1ee   : > { %v3903_v50 = vpop.eup %3902  ;;  %3922 = vpow2.f32 %v3408_v37  ;;  %v1287_v46 = vadd.f32 1.0, %v3901_v41 }
 0x1ef   : > { %v3905_v26 = vpop.eup %3904  ;;  %v1285_v42 = vadd.f32 1.0, %v3903_v50  ;;  %1345 = vrot.lane.b32.xlu1 %v3893_v25, %s4198_s30 }
 0x1f0   : > { %v3907_v45 = vpop.eup %3906  ;;  %v1288_v51 = vadd.f32 1.0, %v3905_v26 }
 0x1f1   : > { %v3909_v19 = vpop.eup %3908  ;;  %3924 = vrcp.f32 %v1285_v42  ;;  %v1286_v49 = vadd.f32 1.0, %v3907_v45  ;;  %1347 = vrot.lane.b32.xlu0 %v3897_v35, %s4198_s30 }
 0x1f2   : > { %v3911_v0 = vpop.eup %3910 }
 0x1f3   : > { %v3913_v63 = vpop.eup %3912  ;;  %3926 = vrcp.f32 %v1286_v49  ;;  %1349 = vrot.lane.b32.xlu1 %v3911_v0, %s4198_s30 }
 0x1f4   : > { %v3915_v53 = vpop.eup %3914  ;;  %3928 = vrcp.f32 %v1287_v46 }
 0x1f5   : > { %v3917_v23 = vpop.eup %3916  ;;  %1351 = vrot.lane.b32.xlu0 %v3915_v53, %s4198_s30  ;;  %3930 = vrcp.f32 %v1288_v51 }
 0x1f6   : > { %v3919_v55 = vpop.eup %3918  ;;  %v1291_v60 = vadd.f32 1.0, %v3917_v23 }
 0x1f7   : > { %v3921_v7 = vpop.eup %3920  ;;  %v1289_v52 = vadd.f32 1.0, %v3919_v55  ;;  %1353 = vrot.lane.b32.xlu1 %v3909_v19, %s4198_s30 }
 0x1f8   : > { %v3923_v59 = vpop.eup %3922  ;;  %v1292_v4 = vadd.f32 1.0, %v3921_v7 }
 0x1f9   : > { %3932 = vrcp.f32 %v1289_v52  ;;  %v1290_v61 = vadd.f32 1.0, %v3923_v59  ;;  %1355 = vrot.lane.b32.xlu0 %v3913_v63, %s4198_s30 }
 0x1fb   : > { %v3925_v2 = vpop.eup %3924  ;;  %3934 = vrcp.f32 %v1290_v61 }
 0x1fc   : > { %1357 = vrot.lane.b32.xlu1 %v3925_v2, %s4198_s30  ;;  %3936 = vrcp.f32 %v1291_v60 }
 0x1fd   : > { %v3927_v5 = vpop.eup %3926  ;;  %3938 = vrcp.f32 %v1292_v4 }
 0x1fe   : > { %1359 = vrot.lane.b32.xlu0 %v3927_v5, %s4198_s30  ;;  %v3929_v6 = vpop.eup %3928 }
 0x1ff   : > { %v3931_v29 = vpop.eup %3930 }
 0x200   : > { %1361 = vrot.lane.b32.xlu1 %v3929_v6, %s4198_s30 }
 0x202   : > { %1363 = vrot.lane.b32.xlu0 %v3931_v29, %s4198_s30 }
 0x203   : > { %v3933_v8 = vpop.eup %3932 }
 0x204   : > { %1365 = vrot.lane.b32.xlu1 %v3933_v8, %s4198_s30 }
 0x205   : > { %v3935_v32 = vpop.eup %3934 }
 0x206   : > { %1367 = vrot.lane.b32.xlu0 %v3935_v32, %s4198_s30  ;;  %v3937_v9 = vpop.eup %3936 }
 0x207   : > { %v3939_v33 = vpop.eup %3938 }
 0x208   : > { %1369 = vrot.lane.b32.xlu1 %v3937_v9, %s4198_s30 }
 0x20a   : > { %1371 = vrot.lane.b32.xlu0 %v3939_v33, %s4198_s30 }
 0x25d   : > { %v1342_v36 = vpop.permute.xlu1 %1341 }
 0x25e   : > { %v1389_v1 = vmul.f32 %v1342_v36, %v4695_v56 }
 0x25f   : > { %v1344_v3 = vpop.permute.xlu0 %1343 }
 0x260   : > { %v1405_v12 = vmax.f32 %v1389_v1, 0.0  ;;  %v1390_v13 = vmul.f32 %v1344_v3, %v4701_v14 }
 0x261   : > { %v1346_v39 = vpop.permute.xlu1 %1345 }
 0x262   : > { %v3516_v15 = vpack.c.bf16 %v1405_v12, %v1405_v12  ;;  %v1406_v16 = vmax.f32 %v1390_v13, 0.0  ;;  %v1391_v17 = vmul.f32 %v4692_v54, %v1346_v39 }
 0x263   : > { %v1348_v40 = vpop.permute.xlu0 %1347 }
 0x264   : > { %v3517_v18 = vpack.c.bf16 %v1406_v16, %v1406_v16  ;;  %v1407_v21 = vmax.f32 %v1391_v17, 0.0  ;;  %v1392_v22 = vmul.f32 %v4698_v44, %v1348_v40  ;;  %1469 = vrot.lane.b32.xlu1 %v3516_v15, %s4199_s26  ;;  %v3856_v16 = vld [vmem:[%s5679_s2 + $0x18] sm:$0xff]  }
 0x265   : > { %v1350_v25 = vpop.permute.xlu1 %1349  ;;  %v3839_v17 = vld [vmem:[#allocation3 + $0x2c] ss:$0 sps:$4 sm:$0x11]   ;;  %3621 = vmatprep.subr.bf16.mxu1 %v3856_v16 }
 0x266   : > { %v3518_v47 = vpack.c.bf16 %v1407_v21, %v1407_v21  ;;  %v1408_v56 = vmax.f32 %v1392_v22, 0.0  ;;  %v1393_v28 = vmul.f32 %v1350_v25, %v4707_v24  ;;  %1471 = vrot.lane.b32.xlu0 %v3517_v18, %s4199_s26  ;;  %3622 = vmatpush3.bf16.msra.mxu1 %v3856_v16  ;;  %v3847_v16 = vld [vmem:[#allocation3 + $0x6c] ss:$0 sps:$4 sm:$0x11]  }
 0x267   : > { %v1352_v14 = vpop.permute.xlu0 %1351 }
 0x268   : > { %v3519_v30 = vpack.c.bf16 %v1408_v56, %v1408_v56  ;;  %v1409_v35 = vmax.f32 %v1393_v28, 0.0  ;;  %v1394_v54 = vmul.f32 %v1352_v14, %v4713_v62  ;;  %1473 = vrot.lane.b32.xlu1 %v3518_v47, %s4199_s26  ;;  %v1753_v28 = vrot.slane %v3839_v17, 5  ;;  %v3841_v14 = vld [vmem:[#allocation3 + $0x1c] ss:$0 sps:$4 sm:$0x11]  }
 0x269   : > { %v1354_v37 = vpop.permute.xlu1 %1353 }
 0x26a   : > { %v3520_v38 = vpack.c.bf16 %v1409_v35, %v1409_v35  ;;  %v1410_v44 = vmax.f32 %v1394_v54, 0.0  ;;  %v1395_v41 = vmul.f32 %v4704_v57, %v1354_v37  ;;  %1475 = vrot.lane.b32.xlu0 %v3519_v30, %s4199_s26  ;;  %v3857_v30 = vld [vmem:[%s5679_s2 + $0x20] sm:$0xff]  }
 0x26b   : > { %v1356_v50 = vpop.permute.xlu0 %1355  ;;  %3623 = vmatprep.subr.bf16.mxu1 %v3857_v30 }
 0x26c   : > { %v3521_v26 = vpack.c.bf16 %v1410_v44, %v1410_v44  ;;  %v1411_v42 = vmax.f32 %v1395_v41, 0.0  ;;  %v1396_v24 = vmul.f32 %v4710_v58, %v1356_v50  ;;  %1477 = vrot.lane.b32.xlu1 %v3520_v38, %s4199_s26  ;;  %3624 = vmatpush3.bf16.msra.mxu1 %v3857_v30 }
 0x26e   : > { %v3522_v45 = vpack.c.bf16 %v1411_v42, %v1411_v42  ;;  %v1412_v19 = vmax.f32 %v1396_v24, 0.0  ;;  %v1358_v46 = vpop.permute.xlu1 %1357  ;;  %1479 = vrot.lane.b32.xlu0 %v3521_v26, %s4199_s26  ;;  %v1750_v24 = vrot.slane %v3841_v14, 5  ;;  %v3849_v14 = vld [vmem:[#allocation3 + $0x5c] ss:$0 sps:$4 sm:$0x11]  }
 0x26f   : > { %v1397_v62 = vmul.f32 %v1358_v46, %v4719_v34 }
 0x270   : > { %v3523_v49 = vpack.c.bf16 %v1412_v19, %v1412_v19  ;;  %v1360_v0 = vpop.permute.xlu0 %1359  ;;  %1481 = vrot.lane.b32.xlu1 %v3522_v45, %s4199_s26  ;;  %v3858_v45 = vld [vmem:[%s5679_s2 + $0x28] sm:$0xff]  }
 0x271   : > { %v1413_v57 = vmax.f32 %v1397_v62, 0.0  ;;  %v1398_v63 = vmul.f32 %v1360_v0, %v4725_v11  ;;  %3625 = vmatprep.subr.bf16.mxu1 %v3858_v45 }
 0x272   : > { %v1362_v51 = vpop.permute.xlu1 %1361  ;;  %1483 = vrot.lane.b32.xlu0 %v3523_v49, %s4199_s26  ;;  %3626 = vmatpush3.bf16.msra.mxu1 %v3858_v45 }
 0x273   : > { %v3524_v58 = vpack.c.bf16 %v1413_v57, %v1413_v57  ;;  %v1414_v53 = vmax.f32 %v1398_v63, 0.0  ;;  %v1399_v23 = vmul.f32 %v4716_v48, %v1362_v51 }
 0x274   : > { %v1364_v55 = vpop.permute.xlu0 %1363 }
 0x275   : > { %v3525_v7 = vpack.c.bf16 %v1414_v53, %v1414_v53  ;;  %v1415_v52 = vmax.f32 %v1399_v23, 0.0  ;;  %v1400_v59 = vmul.f32 %v4722_v10, %v1364_v55  ;;  %1485 = vrot.lane.b32.xlu1 %v3524_v58, %s4199_s26  ;;  %v3843_v55 = vld [vmem:[#allocation3 + $0x4c] ss:$0 sps:$4 sm:$0x11]  }
 0x276   : > { %v1366_v34 = vpop.permute.xlu1 %1365 }
 0x277   : > { %v3526_v60 = vpack.c.bf16 %v1415_v52, %v1415_v52  ;;  %v1416_v61 = vmax.f32 %v1400_v59, 0.0  ;;  %v1401_v2 = vmul.f32 %v1366_v34, %v4731_v43  ;;  %1487 = vrot.lane.b32.xlu0 %v3525_v7, %s4199_s26 }
 0x278   : > { %v1368_v11 = vpop.permute.xlu0 %1367 }
 0x279   : > { %v3527_v4 = vpack.c.bf16 %v1416_v61, %v1416_v61  ;;  %v1417_v5 = vmax.f32 %v1401_v2, 0.0  ;;  %v1402_v6 = vmul.f32 %v1368_v11, %v4737_v31  ;;  %1489 = vrot.lane.b32.xlu1 %v3526_v60, %s4199_s26  ;;  %v1759_v11 = vrot.slane %v3843_v55, 5  ;;  %v4891_v55 = vld [vmem:[#allocation3 + $0x8] sm:$0xf] }
 0x27a   : > { %v1370_v48 = vpop.permute.xlu1 %1369 }
 0x27b   : > { %v3528_v29 = vpack.c.bf16 %v1417_v5, %v1417_v5  ;;  %v1418_v8 = vmax.f32 %v1402_v6, 0.0  ;;  %v1403_v10 = vmul.f32 %v4728_v20, %v1370_v48  ;;  %1491 = vrot.lane.b32.xlu0 %v3527_v4, %s4199_s26  ;;  %v3845_v4 = vld [vmem:[#allocation3 + $0x3c] ss:$0 sps:$4 sm:$0x11]  }
 0x27c   : > { %v1372_v32 = vpop.permute.xlu0 %1371 }
 0x27d   : > { %v3529_v9 = vpack.c.bf16 %v1418_v8, %v1418_v8  ;;  %v1419_v33 = vmax.f32 %v1403_v10, 0.0  ;;  %v1404_v43 = vmul.f32 %v4734_v27, %v1372_v32  ;;  %1493 = vrot.lane.b32.xlu1 %v3528_v29, %s4199_s26 }
 0x27f   : > { %v3530_v36 = vpack.c.bf16 %v1419_v33, %v1419_v33  ;;  %v1420_v1 = vmax.f32 %v1404_v43, 0.0  ;;  %1495 = vrot.lane.b32.xlu0 %v3529_v9, %s4199_s26  ;;  %v1756_v33 = vrot.slane %v3845_v4, 5 }
 0x281   : > { %v3531_v31 = vpack.c.bf16 %v1420_v1, %v1420_v1  ;;  %1497 = vrot.lane.b32.xlu1 %v3530_v36, %s4199_s26 }
 0x283   : > { %1499 = vrot.lane.b32.xlu0 %v3531_v31, %s4199_s26  ;;  %v4853_v31 = vld [vmem:[%s5679_s2] sm:$0xff]  }
 0x284   : > { %3643 = vmatprep.subr.bf16.mxu1 %v4853_v31 }
 0x2d6   : > { %v1470_v3 = vpop.permute.xlu1 %1469 }
 0x2d7   : > { %1518 = vst.msk [vmem:[#allocation3 + $0x14] sm:$0xf] %vm389_vm8, %v1470_v3 }
 0x2d8   : > { %v1472_v20 = vpop.permute.xlu0 %1471 }
 0x2d9   : > { %1519 = vst.msk [vmem:[#allocation3 + $0x18] sm:$0xf] %vm389_vm8, %v1472_v20 }
 0x2da   : > { %v1474_v12 = vpop.permute.xlu1 %1473 }
 0x2db   : > { %1520 = vst.msk [vmem:[#allocation3 + $0x24] sm:$0xf] %vm389_vm8, %v1474_v12 }
 0x2dc   : > { %v1476_v27 = vpop.permute.xlu0 %1475 }
 0x2dd   : > { %1521 = vst.msk [vmem:[#allocation3 + $0x28] sm:$0xf] %vm389_vm8, %v1476_v27 }
 0x2de   : > { %v1478_v13 = vpop.permute.xlu1 %1477  ;;  %v4799_v18 = vld [vmem:[#allocation3 + $0x14] sm:$0xf] }
 0x2df   : > { %1522 = vst.msk [vmem:[#allocation3 + $0x34] sm:$0xf] %vm389_vm8, %v1478_v13 }
 0x2e0   : > { %v1480_v39 = vpop.permute.xlu0 %1479  ;;  %v4793_v15 = vld [vmem:[#allocation3 + $0x18] sm:$0xf] }
 0x2e1   : > { %1523 = vst.msk [vmem:[#allocation3 + $0x38] sm:$0xf] %vm389_vm8, %v1480_v39  ;;  %v3444_v21 = vcombine.low %v4799_v18, %v4793_v15 }
 0x2e2   : > { %v1482_v40 = vpop.permute.xlu1 %1481  ;;  %v4804_v25 = vld [vmem:[#allocation3 + $0x24] sm:$0xf] }
 0x2e3   : > { %1524 = vst.msk [vmem:[#allocation3 + $0x44] sm:$0xf] %vm389_vm8, %v1482_v40  ;;  %v1651_v37 = vshrl.u32 %v3444_v21, 16  ;;  %v1654_v38 = vshll.u32 %v3444_v21, 16  ;;  %v1749_v42 = vrot.slane %v3444_v21, 5 }
 0x2e4   : > { %v1484_v22 = vpop.permute.xlu0 %1483  ;;  %v4806_v47 = vld [vmem:[#allocation3 + $0x28] sm:$0xf] }
 0x2e5   : > { %1525 = vst.msk [vmem:[#allocation3 + $0x48] sm:$0xf] %vm389_vm8, %v1484_v22  ;;  %v3445_v56 = vcombine.low %v4804_v25, %v4806_v47  ;;  %v1653_v46 = vrot.slane %v1651_v37, 4  ;;  %v1656_v62 = vrot.slane %v1654_v38, 5  ;;  %v1751_v53 = vsel %vm653_vm12, %v1749_v42, %v1750_v24 }
 0x2e6   : > { %v4835_v7 = vld [vmem:[#allocation3 + $0x34] sm:$0xf]  ;;  %v3851_v24 = vld [vmem:[#allocation3 + $0x7c] ss:$0 sps:$4 sm:$0x11]  }
 0x2e7   : > { %v1486_v35 = vpop.permute.xlu1 %1485  ;;  %v1752_v54 = vrot.slane %v3445_v56, 5  ;;  %v1659_v44 = vshrl.u32 %v3445_v56, 16  ;;  %v1662_v41 = vshll.u32 %v3445_v56, 16  ;;  %v1657_v59 = vor.u32 %v1656_v62, %v1653_v46 }
 0x2e8   : > { %1526 = vst.msk [vmem:[#allocation3 + $0x54] sm:$0xf] %vm389_vm8, %v1486_v35  ;;  %v4822_v49 = vld [vmem:[#allocation3 + $0x38] sm:$0xf] }
 0x2e9   : > { %v1488_v50 = vpop.permute.xlu0 %1487  ;;  %1778 = vrot.lane.b32.xlu1 %v1752_v54, %s4197_s17  ;;  %v1754_v26 = vsel %vm653_vm12, %v1752_v54, %v1753_v28  ;;  %v1661_v0 = vrot.slane %v1659_v44, 4  ;;  %v1664_v57 = vrot.slane %v1662_v41, 5  ;;  %v3446_v34 = vcombine.low %v4835_v7, %v4822_v49 }
 0x2ea   : > { %1527 = vst.msk [vmem:[#allocation3 + $0x58] sm:$0xf] %vm389_vm8, %v1488_v50  ;;  %1780 = vrot.lane.b32.xlu0 %v1754_v26, %s4197_s17  ;;  %v4825_v63 = vld [vmem:[#allocation3 + $0x44] sm:$0xf]  ;;  %v1765_v28 = vrot.slane %v3847_v16, 5  ;;  %v1762_v50 = vrot.slane %v3849_v14, 5 }
 0x2eb   : > { %v1490_v19 = vpop.permute.xlu1 %1489  ;;  %v1665_v60 = vor.u32 %v1664_v57, %v1661_v0  ;;  %v1667_v6 = vshrl.u32 %v3446_v34, 16  ;;  %v1670_v48 = vshll.u32 %v3446_v34, 16  ;;  %v1755_v9 = vrot.slane %v3446_v34, 5  ;;  %v3855_v16 = vld [vmem:[#allocation3 + $0xc] ss:$0 sps:$4 sm:$0x11]  }
 0x2ec   : > { %1528 = vst.msk [vmem:[#allocation3 + $0x64] sm:$0xf] %vm389_vm8, %v1490_v19  ;;  %v4827_v51 = vld [vmem:[#allocation3 + $0x48] sm:$0xf] }
 0x2ed   : > { %v1492_v58 = vpop.permute.xlu0 %1491  ;;  %1774 = vrot.lane.b32.xlu1 %v1749_v42, %s4197_s17  ;;  %v3447_v23 = vcombine.low %v4825_v63, %v4827_v51  ;;  %v1669_v36 = vrot.slane %v1667_v6, 4  ;;  %v1672_v1 = vrot.slane %v1670_v48, 5  ;;  %v1757_v13 = vsel %vm653_vm12, %v1755_v9, %v1756_v33 }
 0x2ee   : > { %1529 = vst.msk [vmem:[#allocation3 + $0x68] sm:$0xf] %vm389_vm8, %v1492_v58  ;;  %1776 = vrot.lane.b32.xlu0 %v1751_v53, %s4197_s17 }
 0x2ef   : > { %v1494_v52 = vpop.permute.xlu1 %1493  ;;  %v1758_v2 = vrot.slane %v3447_v23, 5  ;;  %v1675_v29 = vshrl.u32 %v3447_v23, 16  ;;  %v1678_v8 = vshll.u32 %v3447_v23, 16  ;;  %v4865_v17 = vld [vmem:[#allocation3 + $0x54] sm:$0xf]  ;;  %v1673_v40 = vor.u32 %v1672_v1, %v1669_v36 }
 0x2f0   : > { %1530 = vst.msk [vmem:[#allocation3 + $0x74] sm:$0xf] %vm389_vm8, %v1494_v52  ;;  %v4889_v23 = vld [vmem:[#allocation3 + $0x4] sm:$0xf] }
 0x2f1   : > { %v1496_v61 = vpop.permute.xlu0 %1495  ;;  %1708 = vrot.lane.b32.xlu1 %v1657_v59, %s4198_s30  ;;  %v1760_v32 = vsel %vm653_vm12, %v1758_v2, %v1759_v11  ;;  %v1677_v3 = vrot.slane %v1675_v29, 4  ;;  %v1680_v20 = vrot.slane %v1678_v8, 5  ;;  %v4857_v27 = vld [vmem:[#allocation3 + $0x58] sm:$0xf]  ;;  %v1768_v59 = vrot.slane %v3851_v24, 5 }
 0x2f2   : > { %1531 = vst.msk [vmem:[#allocation3 + $0x78] sm:$0xf] %vm389_vm8, %v1496_v61  ;;  %1710 = vrot.lane.b32.xlu0 %v1665_v60, %s4198_s30  ;;  %v3448_v21 = vcombine.low %v4865_v17, %v4857_v27 }
 0x2f3   : > { %v1498_v5 = vpop.permute.xlu1 %1497  ;;  %v4855_v12 = vld [vmem:[#allocation3 + $0x64] sm:$0xf]  ;;  %v1681_v22 = vor.u32 %v1680_v20, %v1677_v3 }
 0x2f4   : > { %1532 = vst.msk [vmem:[#allocation3 + $0x84] sm:$0xf] %vm389_vm8, %v1498_v5  ;;  %v1683_v30 = vshrl.u32 %v3448_v21, 16  ;;  %v1686_v35 = vshll.u32 %v3448_v21, 16  ;;  %v1761_v41 = vrot.slane %v3448_v21, 5  ;;  %v3443_v5 = vcombine.low %v4889_v23, %v4891_v55 }
 0x2f5   : > { %v1500_v10 = vpop.permute.xlu0 %1499  ;;  %1786 = vrot.lane.b32.xlu1 %v1758_v2, %s4197_s17  ;;  %v4848_v43 = vld [vmem:[#allocation3 + $0x68] sm:$0xf] }
 0x2f6   : > { %1533 = vst.msk [vmem:[#allocation3 + $0x88] sm:$0xf] %vm389_vm8, %v1500_v10  ;;  %1788 = vrot.lane.b32.xlu0 %v1760_v32, %s4197_s17  ;;  %v3449_v39 = vcombine.low %v4855_v12, %v4848_v43  ;;  %v1685_v45 = vrot.slane %v1683_v30, 4  ;;  %v1688_v19 = vrot.slane %v1686_v35, 5  ;;  %v1763_v53 = vsel %vm653_vm12, %v1761_v41, %v1762_v50 }
 0x2f7   : > { %v4878_v42 = vld [vmem:[#allocation3 + $0x74] sm:$0xf]  ;;  %v3853_v32 = vld [vmem:[#allocation3 + $0x8c] ss:$0 sps:$4 sm:$0x11]   ;;  %v1646_v33 = vshll.u32 %v3443_v5, 16  ;;  %v3430_v50 = vcombine.low %v4793_v15, %v4793_v15 }
 0x2f8   : > { %v1764_v56 = vrot.slane %v3449_v39, 5  ;;  %v1691_v54 = vshrl.u32 %v3449_v39, 16  ;;  %v1694_v37 = vshll.u32 %v3449_v39, 16  ;;  %v1689_v52 = vor.u32 %v1688_v19, %v1685_v45 }
 0x2f9   : > { %1782 = vrot.lane.b32.xlu1 %v1755_v9, %s4197_s17  ;;  %v4871_v38 = vld [vmem:[#allocation3 + $0x78] sm:$0xf]  ;;  %v1643_v9 = vshrl.u32 %v3443_v5, 16  ;;  %v2023_v20 = vrot.slane %v3853_v32, 5  ;;  %v1648_v39 = vrot.slane %v1646_v33, 5  ;;  %v3432_v19 = vcombine.low %v4806_v47, %v4806_v47 }
 0x2fa   : > { %1784 = vrot.lane.b32.xlu0 %v1757_v13, %s4197_s17  ;;  %v1766_v44 = vsel %vm653_vm12, %v1764_v56, %v1765_v28  ;;  %v3450_v46 = vcombine.low %v4878_v42, %v4871_v38  ;;  %v1693_v0 = vrot.slane %v1691_v54, 4  ;;  %v1696_v57 = vrot.slane %v1694_v37, 5  ;;  %v1538_v54 = vld [vmem:[#allocation3 + $0x10] sm:$0xf] }
 0x2fb   : > { %v4882_v62 = vld [vmem:[#allocation3 + $0x84] sm:$0xf]  ;;  %v1645_v13 = vrot.slane %v1643_v9, 4 }
 0x2fc   : > { %v1699_v34 = vshrl.u32 %v3450_v46, 16  ;;  %v1702_v60 = vshll.u32 %v3450_v46, 16  ;;  %v1697_v61 = vor.u32 %v1696_v57, %v1693_v0  ;;  %v1767_v2 = vrot.slane %v3450_v46, 5 }
 0x2fd   : > { %1712 = vrot.lane.b32.xlu1 %v1673_v40, %s4198_s30  ;;  %v4875_v26 = vld [vmem:[#allocation3 + $0x88] sm:$0xf]  ;;  %v1649_v21 = vor.u32 %v1648_v39, %v1645_v13  ;;  %v1546_v13 = vld [vmem:[#allocation3 + $0x30] sm:$0xf] }
 0x2fe   : > { %1714 = vrot.lane.b32.xlu0 %v1681_v22, %s4198_s30  ;;  %v3461_v58 = vcombine.low %v4882_v62, %v4875_v26  ;;  %v1701_v6 = vrot.slane %v1699_v34, 4  ;;  %v1704_v48 = vrot.slane %v1702_v60, 5  ;;  %v1769_v29 = vsel %vm653_vm12, %v1767_v2, %v1768_v59 }
 0x2ff   : > { %v1746_v22 = vrot.slane %v3443_v5, 5 }
 0x300   : > { %v2010_v11 = vshrl.u32 %v3461_v58, 16  ;;  %v2013_v4 = vshll.u32 %v3461_v58, 16  ;;  %v1705_v36 = vor.u32 %v1704_v48, %v1701_v6  ;;  %v2022_v3 = vrot.slane %v3461_v58, 5 }
 0x301   : > { %1794 = vrot.lane.b32.xlu1 %v1764_v56, %s4197_s17  ;;  %v1747_v56 = vrot.slane %v3855_v16, 5 }
 0x302   : > { %1796 = vrot.lane.b32.xlu0 %v1766_v44, %s4197_s17  ;;  %v2012_v8 = vrot.slane %v2010_v11, 4  ;;  %v2015_v10 = vrot.slane %v2013_v4, 5  ;;  %v2024_v40 = vsel %vm653_vm12, %v2022_v3, %v2023_v20  ;;  %v1542_v44 = vld [vmem:[#allocation3 + $0x20] sm:$0xf] }
 0x303   : > { %v1748_v28 = vsel %vm653_vm12, %v1746_v22, %v1747_v56  ;;  %v3431_v45 = vcombine.low %v1542_v44, %v4804_v25  ;;  %v3870_v56 = vld [vmem:[%s5679_s2 + $0x8] sm:$0xff]  }
 0x304   : > { %v2016_v1 = vor.u32 %v2015_v10, %v2012_v8 }
 0x305   : > { %1790 = vrot.lane.b32.xlu1 %v1761_v41, %s4197_s17  ;;  %v3429_v41 = vcombine.low %v1538_v54, %v4799_v18 }
 0x306   : > { %1792 = vrot.lane.b32.xlu0 %v1763_v53, %s4197_s17 }
 0x309   : > { %1716 = vrot.lane.b32.xlu1 %v1689_v52, %s4198_s30 }
 0x30a   : > { %1718 = vrot.lane.b32.xlu0 %v1697_v61, %s4198_s30 }
 0x30d   : > { %1800 = vrot.lane.b32.xlu1 %v1769_v29, %s4197_s17 }
 0x30e   : > { %1798 = vrot.lane.b32.xlu0 %v1767_v2, %s4197_s17 }
 0x311   : > { %1720 = vrot.lane.b32.xlu1 %v1705_v36, %s4198_s30 }
 0x312   : > { %2017 = vrot.lane.b32.xlu0 %v2016_v1, %s4198_s30 }
 0x315   : > { %2025 = vrot.lane.b32.xlu1 %v2022_v3, %s4197_s17 }
 0x316   : > { %2027 = vrot.lane.b32.xlu0 %v2024_v40, %s4197_s17 }
 0x319   : > { %1706 = vrot.lane.b32.xlu1 %v1649_v21, %s4198_s30  ;;  %v1550_v21 = vld [vmem:[#allocation3 + $0x40] sm:$0xf] }
 0x31a   : > { %1770 = vrot.lane.b32.xlu0 %v1746_v22, %s4197_s17  ;;  %v3435_v54 = vcombine.low %v1550_v21, %v4825_v63  ;;  %v3875_v63 = vld [vmem:[%s5679_s2 + $0x10] sm:$0xff]  }
 0x31d   : > { %1772 = vrot.lane.b32.xlu1 %v1748_v28, %s4197_s17 }
 0x35b   : > { %v1779_v14 = vpop.permute.xlu1 %1778 }
 0x35c   : > { %v1781_v30 = vpop.permute.xlu0 %1780 }
 0x35f   : > { %v1775_v35 = vpop.permute.xlu1 %1774 }
 0x360   : > { %v1777_v37 = vpop.permute.xlu0 %1776 }
 0x363   : > { %v1709_v24 = vpop.permute.xlu1 %1708 }
 0x364   : > { %v1809_v46 = vsel %vm710_vm13, %v3429_v41, %v1709_v24  ;;  %v1811_v0 = vsel %vm710_vm13, %v3430_v50, %v1709_v24  ;;  %v1711_v57 = vpop.permute.xlu0 %1710 }
 0x365   : > { %v1847_v58 = vsel %vm751_vm14, %v1809_v46, %v1775_v35  ;;  %v1849_v53 = vsel %vm751_vm14, %v1811_v0, %v1777_v37  ;;  %v1814_v18 = vsel %vm710_vm13, %v3431_v45, %v1711_v57  ;;  %v1816_v52 = vsel %vm710_vm13, %v3432_v19, %v1711_v57 }
 0x366   : > { %v1889_v15 = vshrl.u32 %v1847_v58, 16  ;;  %v1892_v59 = vshll.u32 %v1847_v58, 16  ;;  %v1896_v34 = vshrl.u32 %v1849_v53, 16  ;;  %v1899_v25 = vshll.u32 %v1849_v53, 16 }
 0x367   : > { %v1851_v60 = vsel %vm751_vm14, %v1814_v18, %v1779_v14  ;;  %v1853_v47 = vsel %vm751_vm14, %v1816_v52, %v1781_v30  ;;  %v1787_v61 = vpop.permute.xlu1 %1786  ;;  %v3433_v14 = vcombine.low %v1546_v13, %v4835_v7  ;;  %v3434_v30 = vcombine.low %v4822_v49, %v4822_v49 }
 0x368   : > { %v1904_v2 = vshrl.u32 %v1851_v60, 16  ;;  %v1907_v11 = vshll.u32 %v1851_v60, 16  ;;  %v1911_v4 = vshrl.u32 %v1853_v47, 16  ;;  %v1914_v5 = vshll.u32 %v1853_v47, 16  ;;  %v1789_v6 = vpop.permute.xlu0 %1788 }
 0x369   : > { %v1891_v48 = vrot.slane %v1889_v15, 3  ;;  %v1894_v29 = vrot.slane %v1892_v59, 4  ;;  %v1898_v8 = vrot.slane %v1896_v34, 3  ;;  %v1901_v10 = vrot.slane %v1899_v25, 4 }
 0x36a   : > { %v1906_v32 = vrot.slane %v1904_v2, 3  ;;  %v1909_v9 = vrot.slane %v1907_v11, 4  ;;  %v1913_v33 = vrot.slane %v1911_v4, 3  ;;  %v1916_v36 = vrot.slane %v1914_v5, 4 }
 0x36b   : > { %v1783_v1 = vpop.permute.xlu1 %1782  ;;  %v1895_v3 = vor.u32 %v1894_v29, %v1891_v48  ;;  %v1902_v20 = vor.u32 %v1901_v10, %v1898_v8  ;;  %v3436_v37 = vcombine.low %v4827_v51, %v4827_v51 }
 0x36c   : > { %v1785_v39 = vpop.permute.xlu0 %1784  ;;  %v1910_v16 = vor.u32 %v1909_v9, %v1906_v32  ;;  %v1917_v40 = vor.u32 %v1916_v36, %v1913_v33  ;;  %v1558_v32 = vld [vmem:[#allocation3 + $0x60] sm:$0xf] }
 0x36d   : > { %v4924_v22 = vsel %vm784_vm15, %v1895_v3, %v1902_v20  ;;  %v3439_v13 = vcombine.low %v1558_v32, %v4855_v12 }
 0x36e   : > { %3627 = vmatprep.mubr.msk.bf16.mxu1 %vm989_vm0, %v4924_v22  ;;  %v4932_v28 = vsel %vm784_vm15, %v1910_v16, %v1917_v40 }
 0x36f   : > { %3628 = vmatmul.mubr.msk.bf16.vlgmr.msra.gmra.mrb[0].mxu1 %vm989_vm0, %v4932_v28  ;;  %v1713_v35 = vpop.permute.xlu1 %1712 }
 0x370   : > { %v1819_v44 = vsel %vm710_vm13, %v3433_v14, %v1713_v35  ;;  %v1821_v41 = vsel %vm710_vm13, %v3434_v30, %v1713_v35  ;;  %v1715_v50 = vpop.permute.xlu0 %1714  ;;  %3644 = vmatpush3.bf16.msra.mxu1 %v4853_v31 }
 0x371   : > { %v1855_v7 = vsel %vm751_vm14, %v1819_v44, %v1783_v1  ;;  %v1857_v49 = vsel %vm751_vm14, %v1821_v41, %v1785_v39  ;;  %v1824_v24 = vsel %vm710_vm13, %v3435_v54, %v1715_v50  ;;  %v1826_v45 = vsel %vm710_vm13, %v3436_v37, %v1715_v50  ;;  %3645 = vmatprep.subr.bf16.mxu1 %v3870_v56  ;;  %v1562_v41 = vld [vmem:[#allocation3 + $0x70] sm:$0xf] }
 0x372   : > { %v1919_v51 = vshrl.u32 %v1855_v7, 16  ;;  %v1922_v19 = vshll.u32 %v1855_v7, 16  ;;  %v1926_v46 = vshrl.u32 %v1857_v49, 16  ;;  %v1929_v0 = vshll.u32 %v1857_v49, 16 }
 0x373   : > { %v1859_v57 = vsel %vm751_vm14, %v1824_v24, %v1787_v61  ;;  %v1861_v31 = vsel %vm751_vm14, %v1826_v45, %v1789_v6  ;;  %v1795_v58 = vpop.permute.xlu1 %1794  ;;  %v1554_v6 = vld [vmem:[#allocation3 + $0x50] sm:$0xf]  ;;  %v3438_v1 = vcombine.low %v4857_v27, %v4857_v27  ;;  %v3440_v39 = vcombine.low %v4848_v43, %v4848_v43 }
 0x374   : > { %v1921_v53 = vrot.slane %v1919_v51, 3  ;;  %v1924_v18 = vrot.slane %v1922_v19, 4  ;;  %v1928_v52 = vrot.slane %v1926_v46, 3  ;;  %v1931_v15 = vrot.slane %v1929_v0, 4  ;;  %v1797_v59 = vpop.permute.xlu0 %1796  ;;  %3646 = vmatpush3.bf16.msra.mxu1 %v3870_v56 }
 0x375   : > { %v1934_v34 = vshrl.u32 %v1859_v57, 16  ;;  %v1937_v25 = vshll.u32 %v1859_v57, 16  ;;  %v1941_v60 = vshrl.u32 %v1861_v31, 16  ;;  %v1944_v47 = vshll.u32 %v1861_v31, 16  ;;  %3647 = vmatprep.subr.bf16.mxu1 %v3875_v63  ;;  %v1566_v31 = vld [vmem:[#allocation3 + $0x80] sm:$0xf] }
 0x376   : > { %v1925_v2 = vor.u32 %v1924_v18, %v1921_v53  ;;  %v1932_v11 = vor.u32 %v1931_v15, %v1928_v52  ;;  %v3437_v36 = vcombine.low %v1554_v6, %v4865_v17  ;;  %v3441_v0 = vcombine.low %v1562_v41, %v4878_v42  ;;  %v1534_v6 = vld [vmem:[#allocation3] sm:$0xf] }
 0x377   : > { %v1936_v4 = vrot.slane %v1934_v34, 3  ;;  %v1939_v5 = vrot.slane %v1937_v25, 4  ;;  %v1943_v48 = vrot.slane %v1941_v60, 3  ;;  %v1946_v61 = vrot.slane %v1944_v47, 4  ;;  %v1791_v29 = vpop.permute.xlu1 %1790 }
 0x378   : > { %v1793_v8 = vpop.permute.xlu0 %1792  ;;  %v4955_v10 = vsel %vm784_vm15, %v1925_v2, %v1932_v11  ;;  %3648 = vmatpush3.bf16.msra.mxu1 %v3875_v63  ;;  %v3442_v57 = vcombine.low %v4871_v38, %v4871_v38  ;;  %v3459_v11 = vcombine.low %v1566_v31, %v4882_v62 }
 0x379   : > { %3631 = vmatprep.mubr.msk.bf16.mxu1 %vm989_vm0, %v4955_v10  ;;  %v1940_v9 = vor.u32 %v1939_v5, %v1936_v4  ;;  %v1947_v33 = vor.u32 %v1946_v61, %v1943_v48  ;;  %v3460_v4 = vcombine.low %v4875_v26, %v4875_v26 }
 0x37b   : > { %v4963_v3 = vsel %vm784_vm15, %v1940_v9, %v1947_v33  ;;  %v1717_v20 = vpop.permute.xlu1 %1716 }
 0x37c   : > { %3632 = vmatmul.mubr.msk.bf16.gmra.mrb[4].mxu1 %vm989_vm0, %v4963_v3  ;;  %v1829_v16 = vsel %vm710_vm13, %v3437_v36, %v1717_v20  ;;  %v1831_v40 = vsel %vm710_vm13, %v3438_v1, %v1717_v20  ;;  %v1719_v17 = vpop.permute.xlu0 %1718 }
 0x37d   : > { %v1863_v21 = vsel %vm751_vm14, %v1829_v16, %v1791_v29  ;;  %v1865_v27 = vsel %vm751_vm14, %v1831_v40, %v1793_v8  ;;  %v1834_v56 = vsel %vm710_vm13, %v3439_v13, %v1719_v17  ;;  %v1836_v14 = vsel %vm710_vm13, %v3440_v39, %v1719_v17 }
 0x37e   : > { %v1949_v12 = vshrl.u32 %v1863_v21, 16  ;;  %v1952_v30 = vshll.u32 %v1863_v21, 16  ;;  %v1956_v35 = vshrl.u32 %v1865_v27, 16  ;;  %v1959_v43 = vshll.u32 %v1865_v27, 16 }
 0x37f   : > { %v1867_v54 = vsel %vm751_vm14, %v1834_v56, %v1795_v58  ;;  %v1869_v37 = vsel %vm751_vm14, %v1836_v14, %v1797_v59  ;;  %v1801_v44 = vpop.permute.xlu1 %1800  ;;  %v3427_v17 = vcombine.low %v1534_v6, %v4889_v23 }
 0x380   : > { %v1951_v50 = vrot.slane %v1949_v12, 3  ;;  %v1954_v7 = vrot.slane %v1952_v30, 4  ;;  %v1958_v49 = vrot.slane %v1956_v35, 3  ;;  %v1961_v24 = vrot.slane %v1959_v43, 4  ;;  %v1799_v45 = vpop.permute.xlu0 %1798 }
 0x381   : > { %v1964_v63 = vshrl.u32 %v1867_v54, 16  ;;  %v1967_v51 = vshll.u32 %v1867_v54, 16  ;;  %v1971_v19 = vshrl.u32 %v1869_v37, 16  ;;  %v1974_v46 = vshll.u32 %v1869_v37, 16 }
 0x382   : > { %v1955_v58 = vor.u32 %v1954_v7, %v1951_v50  ;;  %v1962_v53 = vor.u32 %v1961_v24, %v1958_v49  ;;  %v3428_v12 = vcombine.low %v4891_v55, %v4891_v55 }
 0x383   : > { %v1966_v18 = vrot.slane %v1964_v63, 3  ;;  %v1969_v52 = vrot.slane %v1967_v51, 4  ;;  %v1973_v15 = vrot.slane %v1971_v19, 3  ;;  %v1976_v59 = vrot.slane %v1974_v46, 4  ;;  %v1721_v34 = vpop.permute.xlu1 %1720 }
 0x384   : > { %v1839_v25 = vsel %vm710_vm13, %v3441_v0, %v1721_v34  ;;  %v1841_v60 = vsel %vm710_vm13, %v3442_v57, %v1721_v34  ;;  %v2018_v47 = vpop.permute.xlu0 %2017  ;;  %v4984_v2 = vsel %vm784_vm15, %v1955_v58, %v1962_v53 }
 0x385   : > { %v1871_v42 = vsel %vm751_vm14, %v1839_v25, %v1799_v45  ;;  %v1873_v38 = vsel %vm751_vm14, %v1841_v60, %v1801_v44  ;;  %3635 = vmatprep.mubr.msk.bf16.mxu1 %vm989_vm0, %v4984_v2  ;;  %v2031_v8 = vsel %vm710_vm13, %v3459_v11, %v2018_v47  ;;  %v2033_v32 = vsel %vm710_vm13, %v3460_v4, %v2018_v47  ;;  %v4068_v25 = vld [vmem:[#allocation2 + $0x14] sm:$0xf]  ;;  %v4069_v47 = vld [vmem:[#allocation2 + $0x18] sm:$0xf]  ;;  %v4071_v11 = vld [vmem:[#allocation2 + $0x28] sm:$0xf] }
 0x386   : > { %v1979_v5 = vshrl.u32 %v1871_v42, 16  ;;  %v1982_v48 = vshll.u32 %v1871_v42, 16  ;;  %v1986_v61 = vshrl.u32 %v1873_v38, 16  ;;  %v1989_v29 = vshll.u32 %v1873_v38, 16  ;;  %v4070_v38 = vld [vmem:[#allocation2 + $0x24] sm:$0xf] }
 0x387   : > { %v1970_v9 = vor.u32 %v1969_v52, %v1966_v18  ;;  %v1977_v33 = vor.u32 %v1976_v59, %v1973_v15  ;;  %v2026_v36 = vpop.permute.xlu1 %2025  ;;  %v2509_v60 = vunpack.c.l.bf16 %v4068_v25  ;;  %v2512_v4 = vunpack.c.l.bf16 %v4071_v11 }
 0x388   : > { %v1981_v1 = vrot.slane %v1979_v5, 3  ;;  %v1984_v62 = vrot.slane %v1982_v48, 4  ;;  %v1988_v20 = vrot.slane %v1986_v61, 3  ;;  %v1991_v13 = vrot.slane %v1989_v29, 4  ;;  %v2028_v26 = vpop.permute.xlu0 %2027  ;;  %v4073_v48 = vld [vmem:[#allocation2 + $0x38] sm:$0xf] }
 0x389   : > { %v1978_v39 = vsel %vm784_vm15, %v1970_v9, %v1977_v33  ;;  %v2035_v16 = vsel %vm751_vm14, %v2031_v8, %v2026_v36  ;;  %v2037_v40 = vsel %vm751_vm14, %v2033_v32, %v2028_v26  ;;  %v4074_v29 = vld [vmem:[#allocation2 + $0x44] sm:$0xf]  ;;  %v4075_v8 = vld [vmem:[#allocation2 + $0x48] sm:$0xf]  ;;  %v4076_v33 = vld [vmem:[#allocation2 + $0x54] sm:$0xf] }
 0x38a   : > { %3636 = vmatmul.mubr.msk.bf16.gmra.mrb[8].mxu1 %vm989_vm0, %v1978_v39  ;;  %v2038_v21 = vshrl.u32 %v2035_v16, 16  ;;  %v2041_v27 = vshll.u32 %v2035_v16, 16  ;;  %v2045_v56 = vshrl.u32 %v2037_v40, 16  ;;  %v2048_v14 = vshll.u32 %v2037_v40, 16 }
 0x38b   : > { %v1707_v30 = vpop.permute.xlu1 %1706  ;;  %v1985_v35 = vor.u32 %v1984_v62, %v1981_v1  ;;  %v1992_v43 = vor.u32 %v1991_v13, %v1988_v20  ;;  %v2515_v6 = vunpack.c.l.bf16 %v4074_v29  ;;  %v2516_v32 = vunpack.c.l.bf16 %v4075_v8  ;;  %v4077_v1 = vld [vmem:[#allocation2 + $0x58] sm:$0xf]  ;;  %v4078_v13 = vld [vmem:[#allocation2 + $0x64] sm:$0xf] }
 0x38c   : > { %v2040_v54 = vrot.slane %v2038_v21, 3  ;;  %v2043_v37 = vrot.slane %v2041_v27, 4  ;;  %v2047_v44 = vrot.slane %v2045_v56, 3  ;;  %v2050_v41 = vrot.slane %v2048_v14, 4  ;;  %v1771_v50 = vpop.permute.xlu0 %1770 }
 0x38d   : > { %v1804_v7 = vsel %vm710_vm13, %v3427_v17, %v1707_v30  ;;  %v1993_v23 = vsel %vm784_vm15, %v1985_v35, %v1992_v43  ;;  %v1806_v55 = vsel %vm710_vm13, %v3428_v12, %v1707_v30  ;;  %v3789_v9 = vpack.i.bf16 %v2516_v32, %v2515_v6 }
 0x38e   : > { %v2044_v49 = vor.u32 %v2043_v37, %v2040_v54  ;;  %v2051_v24 = vor.u32 %v2050_v41, %v2047_v44  ;;  %v1843_v45 = vsel %vm751_vm14, %v1804_v7, %v1771_v50  ;;  %3639 = vmatprep.mubr.msk.bf16.mxu1 %vm989_vm0, %v1993_v23  ;;  %v2517_v36 = vunpack.c.l.bf16 %v4076_v33 }
 0x38f   : > { %v1874_v63 = vshrl.u32 %v1843_v45, 16  ;;  %v1877_v51 = vshll.u32 %v1843_v45, 16  ;;  %v1773_v19 = vpop.permute.xlu1 %1772  ;;  %v2518_v62 = vunpack.c.l.bf16 %v4077_v1  ;;  %v2519_v26 = vunpack.c.l.bf16 %v4078_v13 }
 0x390   : > { %v1845_v46 = vsel %vm751_vm14, %v1806_v55, %v1773_v19  ;;  %v2052_v0 = vsel %vm784_vm15, %v2044_v49, %v2051_v24 }
 0x391   : > { %v1876_v57 = vrot.slane %v1874_v63, 3  ;;  %v1879_v31 = vrot.slane %v1877_v51, 4  ;;  %v1881_v58 = vshrl.u32 %v1845_v46, 16  ;;  %v1884_v53 = vshll.u32 %v1845_v46, 16 }
 0x392   : > { %3640 = vmatmul.mubr.msk.bf16.gmra.mrb[12].mxu1 %vm989_vm0, %v2052_v0  ;;  %v3794_v20 = vpack.i.bf16 %v2518_v62, %v2517_v36 }
 0x393   : > { %v1883_v18 = vrot.slane %v1881_v58, 3  ;;  %v1886_v52 = vrot.slane %v1884_v53, 4  ;;  %v1880_v15 = vor.u32 %v1879_v31, %v1876_v57 }
 0x395   : > { %v1887_v59 = vor.u32 %v1886_v52, %v1883_v18 }
 0x397   : > { %v1888_v34 = vsel %vm784_vm15, %v1880_v15, %v1887_v59 }
 0x398   : > { %3649 = vmatprep.mubr.msk.bf16.mxu1 %vm989_vm0, %v1888_v34 }
 0x39a   : > { %3650 = vmatmul.mubr.msk.bf16.vlgmr.msra.gmra.mrb[0].mxu1 %vm989_vm0, %v4924_v22  ;;  %v2510_v22 = vunpack.c.l.bf16 %v4069_v47 }
 0x39b   : > { %3653 = vmatprep.mubr.msk.bf16.mxu1 %vm989_vm0, %v4932_v28  ;;  %v2511_v28 = vunpack.c.l.bf16 %v4070_v38 }
 0x39c   : > { %v3774_v42 = vpack.i.bf16 %v2510_v22, %v2509_v60 }
 0x39e   : > { %3775 = vrot.lane.b32.xlu0 %v3774_v42, %s4198_s30 }
 0x3a2   : > { %3654 = vmatmul.mubr.msk.bf16.gmra.mrb[4].mxu1 %vm989_vm0, %v4955_v10  ;;  %v3779_v10 = vpack.i.bf16 %v2512_v4, %v2511_v28 }
 0x3a3   : > { %3657 = vmatprep.mubr.msk.bf16.mxu1 %vm989_vm0, %v4963_v3  ;;  %v4072_v3 = vld [vmem:[#allocation2 + $0x34] sm:$0xf] }
 0x3a4   : > { %v2513_v5 = vunpack.c.l.bf16 %v4072_v3  ;;  %3780 = vrot.lane.b32.xlu1 %v3779_v10, %s4198_s30 }
 0x3a8   : > { %3790 = vrot.lane.b32.xlu1 %v3789_v9, %s4198_s30 }
 0x3aa   : > { %3658 = vmatmul.mubr.msk.bf16.gmra.mrb[8].mxu1 %vm989_vm0, %v4984_v2  ;;  %v2514_v2 = vunpack.c.l.bf16 %v4073_v48 }
 0x3ab   : > { %3661 = vmatprep.mubr.msk.bf16.mxu1 %vm989_vm0, %v1978_v39  ;;  %v4079_v39 = vld [vmem:[#allocation2 + $0x68] sm:$0xf] }
 0x3ac   : > { %v3784_v61 = vpack.i.bf16 %v2514_v2, %v2513_v5  ;;  %v2520_v16 = vunpack.c.l.bf16 %v4079_v39 }
 0x3ae   : > { %3785 = vrot.lane.b32.xlu0 %v3784_v61, %s4198_s30  ;;  %v3799_v40 = vpack.i.bf16 %v2520_v16, %v2519_v26 }
 0x3b0   : > { %3800 = vrot.lane.b32.xlu1 %v3799_v40, %s4198_s30 }
 0x3b2   : > { %3662 = vmatmul.mubr.msk.bf16.gmra.mrb[12].mxu1 %vm989_vm0, %v1993_v23  ;;  %3795 = vrot.lane.b32.xlu0 %v3794_v20, %s4198_s30 }
 0x46d   : > { %v5030_v17 = vpop.f32.mrb[0].mxu1 }
 0x46e   : > { %v3493_v21 = vmul.f32 -1.442695, %v5030_v17  ;;  %v5033_v27 = vpop.f32.mrb[1].mxu1 }
 0x46f   : > { %v3491_v56 = vmul.f32 -1.442695, %v5033_v27  ;;  %v5036_v14 = vpop.f32.mrb[2].mxu1 }
 0x470   : > { %3940 = vpow2.f32 %v3493_v21  ;;  %v3494_v12 = vmul.f32 -1.442695, %v5036_v14  ;;  %v5039_v30 = vpop.f32.mrb[3].mxu1 }
 0x471   : > { %3942 = vpow2.f32 %v3491_v56  ;;  %v3492_v35 = vmul.f32 -1.442695, %v5039_v30 }
 0x472   : > { %3944 = vpow2.f32 %v3494_v12 }
 0x473   : > { %3946 = vpow2.f32 %v3492_v35 }
 0x475   : > { %v5042_v43 = vpop.f32.mrb[4].mxu1 }
 0x476   : > { %v3497_v54 = vmul.f32 -1.442695, %v5042_v43  ;;  %v5045_v37 = vpop.f32.mrb[5].mxu1 }
 0x477   : > { %v3495_v44 = vmul.f32 -1.442695, %v5045_v37  ;;  %v5048_v41 = vpop.f32.mrb[6].mxu1 }
 0x478   : > { %3948 = vpow2.f32 %v3497_v54  ;;  %v3498_v50 = vmul.f32 -1.442695, %v5048_v41  ;;  %v5051_v7 = vpop.f32.mrb[7].mxu1 }
 0x479   : > { %3950 = vpow2.f32 %v3495_v44  ;;  %v3496_v23 = vmul.f32 -1.442695, %v5051_v7 }
 0x47a   : > { %v3941_v49 = vpop.eup %3940  ;;  %3952 = vpow2.f32 %v3498_v50 }
 0x47b   : > { %v3943_v24 = vpop.eup %3942  ;;  %v2367_v45 = vadd.f32 1.0, %v3941_v49  ;;  %3954 = vpow2.f32 %v3496_v23 }
 0x47c   : > { %v3945_v55 = vpop.eup %3944  ;;  %v2365_v63 = vadd.f32 1.0, %v3943_v24 }
 0x47d   : > { %v3947_v51 = vpop.eup %3946  ;;  %3956 = vrcp.f32 %v2367_v45  ;;  %v2368_v19 = vadd.f32 1.0, %v3945_v55  ;;  %v5054_v46 = vpop.f32.mrb[8].mxu1 }
 0x47e   : > { %3958 = vrcp.f32 %v2365_v63  ;;  %v2366_v0 = vadd.f32 1.0, %v3947_v51  ;;  %v3501_v57 = vmul.f32 -1.442695, %v5054_v46  ;;  %v5057_v31 = vpop.f32.mrb[9].mxu1  ;;  %v4080_v51 = vld [vmem:[#allocation2 + $0x74] sm:$0xf] }
 0x47f   : > { %3960 = vrcp.f32 %v2368_v19  ;;  %v3499_v58 = vmul.f32 -1.442695, %v5057_v31  ;;  %v5060_v53 = vpop.f32.mrb[10].mxu1  ;;  %v2521_v19 = vunpack.c.l.bf16 %v4080_v51 }
 0x480   : > { %3962 = vrcp.f32 %v2366_v0  ;;  %v3502_v18 = vmul.f32 -1.442695, %v5060_v53  ;;  %v5063_v52 = vpop.f32.mrb[11].mxu1  ;;  %v4081_v0 = vld [vmem:[#allocation2 + $0x78] sm:$0xf] }
 0x481   : > { %3964 = vpow2.f32 %v3501_v57  ;;  %v3500_v15 = vmul.f32 -1.442695, %v5063_v52  ;;  %v2522_v57 = vunpack.c.l.bf16 %v4081_v0 }
 0x482   : > { %v3949_v59 = vpop.eup %3948  ;;  %3966 = vpow2.f32 %v3499_v58 }
 0x483   : > { %v3951_v34 = vpop.eup %3950  ;;  %v2371_v25 = vadd.f32 1.0, %v3949_v59  ;;  %3968 = vpow2.f32 %v3502_v18  ;;  %v4082_v18 = vld [vmem:[#allocation2 + $0x84] sm:$0xf]  ;;  %v4083_v59 = vld [vmem:[#allocation2 + $0x88] sm:$0xf] }
 0x484   : > { %v3953_v60 = vpop.eup %3952  ;;  %v2369_v47 = vadd.f32 1.0, %v3951_v34  ;;  %3970 = vpow2.f32 %v3500_v15  ;;  %v2523_v15 = vunpack.c.l.bf16 %v4082_v18  ;;  %v2524_v34 = vunpack.c.l.bf16 %v4083_v59 }
 0x485   : > { %v3955_v22 = vpop.eup %3954  ;;  %3972 = vrcp.f32 %v2371_v25  ;;  %v2372_v42 = vadd.f32 1.0, %v3953_v60  ;;  %v5066_v38 = vpop.f32.mrb[12].mxu1  ;;  %v3804_v60 = vpack.i.bf16 %v2522_v57, %v2521_v19 }
 0x486   : > { %3974 = vrcp.f32 %v2369_v47  ;;  %v2370_v28 = vadd.f32 1.0, %v3955_v22  ;;  %v3505_v11 = vmul.f32 -1.442695, %v5066_v38  ;;  %v5069_v4 = vpop.f32.mrb[13].mxu1  ;;  %v3809_v22 = vpack.i.bf16 %v2524_v34, %v2523_v15 }
 0x487   : > { %v3957_v10 = vpop.eup %3956  ;;  %3976 = vrcp.f32 %v2372_v42  ;;  %v3503_v3 = vmul.f32 -1.442695, %v5069_v4  ;;  %v5072_v5 = vpop.f32.mrb[14].mxu1 }
 0x488   : > { %v3959_v48 = vpop.eup %3958  ;;  %3978 = vrcp.f32 %v2370_v28  ;;  %v3506_v2 = vmul.f32 -1.442695, %v5072_v5  ;;  %2433 = vrot.lane.b32.xlu0 %v3957_v10, %s4198_s30  ;;  %v5076_v61 = vpop.f32.mrb[15].mxu1 }
 0x489   : > { %v3961_v29 = vpop.eup %3960  ;;  %3980 = vpow2.f32 %v3505_v11  ;;  %v3504_v6 = vmul.f32 -1.442695, %v5076_v61  ;;  %v3776_v42 = vpop.permute.xlu0 %3775 }
 0x48a   : > { %v3963_v8 = vpop.eup %3962  ;;  %3982 = vpow2.f32 %v3503_v3  ;;  %2435 = vrot.lane.b32.xlu1 %v3961_v29, %s4198_s30  ;;  %v3781_v28 = vpop.permute.xlu1 %3780 }
 0x48b   : > { %v3965_v32 = vpop.eup %3964  ;;  %3984 = vpow2.f32 %v3506_v2 }
 0x48c   : > { %v3967_v9 = vpop.eup %3966  ;;  %v2375_v33 = vadd.f32 1.0, %v3965_v32  ;;  %3986 = vpow2.f32 %v3504_v6  ;;  %2429 = vrot.lane.b32.xlu0 %v3959_v48, %s4198_s30 }
 0x48d   : > { %v3969_v36 = vpop.eup %3968  ;;  %v2373_v62 = vadd.f32 1.0, %v3967_v9  ;;  %v3786_v11 = vpop.permute.xlu0 %3785 }
 0x48e   : > { %v3971_v1 = vpop.eup %3970  ;;  %3988 = vrcp.f32 %v2375_v33  ;;  %v2376_v20 = vadd.f32 1.0, %v3969_v36  ;;  %2431 = vrot.lane.b32.xlu1 %v3963_v8, %s4198_s30  ;;  %v3791_v10 = vpop.permute.xlu1 %3790 }
 0x48f   : > { %v3973_v13 = vpop.eup %3972  ;;  %v2374_v39 = vadd.f32 1.0, %v3971_v1 }
 0x490   : > { %v3975_v26 = vpop.eup %3974  ;;  %3990 = vrcp.f32 %v2376_v20  ;;  %2441 = vrot.lane.b32.xlu0 %v3973_v13, %s4198_s30 }
 0x491   : > { %v3977_v16 = vpop.eup %3976  ;;  %3992 = vrcp.f32 %v2373_v62  ;;  %v5096_v3 = vpop.permute.xlu0 %3795 }
 0x492   : > { %v3979_v40 = vpop.eup %3978  ;;  %2443 = vrot.lane.b32.xlu1 %v3977_v16, %s4198_s30  ;;  %3994 = vrcp.f32 %v2374_v39  ;;  %v3801_v48 = vpop.permute.xlu1 %3800 }
 0x493   : > { %v3981_v21 = vpop.eup %3980 }
 0x494   : > { %v3983_v56 = vpop.eup %3982  ;;  %v2379_v12 = vadd.f32 1.0, %v3981_v21  ;;  %2437 = vrot.lane.b32.xlu0 %v3975_v26, %s4198_s30 }
 0x495   : > { %v3985_v35 = vpop.eup %3984  ;;  %v2377_v44 = vadd.f32 1.0, %v3983_v56 }
 0x496   : > { %v3987_v54 = vpop.eup %3986  ;;  %3996 = vrcp.f32 %v2379_v12  ;;  %v2380_v50 = vadd.f32 1.0, %v3985_v35  ;;  %2439 = vrot.lane.b32.xlu1 %v3979_v40, %s4198_s30 }
 0x497   : > { %v2378_v49 = vadd.f32 1.0, %v3987_v54 }
 0x498   : > { %v3989_v23 = vpop.eup %3988  ;;  %3998 = vrcp.f32 %v2380_v50 }
 0x499   : > { %2449 = vrot.lane.b32.xlu0 %v3989_v23, %s4198_s30  ;;  %4000 = vrcp.f32 %v2377_v44 }
 0x49a   : > { %v3991_v24 = vpop.eup %3990  ;;  %4002 = vrcp.f32 %v2378_v49 }
 0x49b   : > { %2451 = vrot.lane.b32.xlu1 %v3991_v24, %s4198_s30  ;;  %v3993_v45 = vpop.eup %3992 }
 0x49c   : > { %v3995_v55 = vpop.eup %3994 }
 0x49d   : > { %2445 = vrot.lane.b32.xlu0 %v3993_v45, %s4198_s30 }
 0x49f   : > { %2447 = vrot.lane.b32.xlu1 %v3995_v55, %s4198_s30 }
 0x4a0   : > { %v3997_v63 = vpop.eup %3996 }
 0x4a1   : > { %2457 = vrot.lane.b32.xlu0 %v3997_v63, %s4198_s30 }
 0x4a2   : > { %v3999_v58 = vpop.eup %3998 }
 0x4a3   : > { %2459 = vrot.lane.b32.xlu1 %v3999_v58, %s4198_s30  ;;  %v4001_v25 = vpop.eup %4000 }
 0x4a4   : > { %v4003_v47 = vpop.eup %4002 }
 0x4a5   : > { %2453 = vrot.lane.b32.xlu0 %v4001_v25, %s4198_s30 }
 0x4a7   : > { %2455 = vrot.lane.b32.xlu1 %v4003_v47, %s4198_s30 }
 0x4a9   : > { %3805 = vrot.lane.b32.xlu0 %v3804_v60, %s4198_s30 }
 0x4ab   : > { %3810 = vrot.lane.b32.xlu1 %v3809_v22, %s4198_s30 }
 0x4fa   : > { %v2434_v2 = vpop.permute.xlu0 %2433 }
 0x4fb   : > { %v2479_v29 = vmul.f32 %v5030_v17, %v2434_v2 }
 0x4fc   : > { %v2436_v6 = vpop.permute.xlu1 %2435 }
 0x4fd   : > { %v2495_v8 = vmax.f32 %v2479_v29, 0.0  ;;  %v2480_v32 = vmul.f32 %v5036_v14, %v2436_v6 }
 0x4fe   : > { %v2430_v9 = vpop.permute.xlu0 %2429 }
 0x4ff   : > { %v5100_v33 = vadd.low.f32.bf16 %v2495_v8, %v3781_v28  ;;  %v2496_v36 = vmax.f32 %v2480_v32, 0.0  ;;  %v2477_v1 = vmul.f32 %v2430_v9, %v5033_v27 }
 0x500   : > { %v2432_v62 = vpop.permute.xlu1 %2431 }
 0x501   : > { %v2607_v20 = vmax.f32 %v5100_v33, 0.0  ;;  %v5104_v13 = vadd.high.f32.bf16 %v2496_v36, %v3781_v28  ;;  %v2493_v26 = vmax.f32 %v2477_v1, 0.0  ;;  %v2478_v39 = vmul.f32 %v2432_v62, %v5039_v30 }
 0x502   : > { %v2442_v16 = vpop.permute.xlu0 %2441 }
 0x503   : > { %v2608_v17 = vmax.f32 %v5104_v13, 0.0  ;;  %v5108_v40 = vadd.low.f32.bf16 %v2493_v26, %v3776_v42  ;;  %v2494_v14 = vmax.f32 %v2478_v39, 0.0  ;;  %v2483_v21 = vmul.f32 %v5042_v43, %v2442_v16  ;;  %2641 = vrot.lane.b32.xlu0 %v2607_v20, %s4199_s26 }
 0x504   : > { %v2444_v27 = vpop.permute.xlu1 %2443 }
 0x505   : > { %v2605_v56 = vmax.f32 %v5108_v40, 0.0  ;;  %v5115_v12 = vadd.high.f32.bf16 %v2494_v14, %v3776_v42  ;;  %v2499_v35 = vmax.f32 %v2483_v21, 0.0  ;;  %v2484_v30 = vmul.f32 %v5048_v41, %v2444_v27  ;;  %2643 = vrot.lane.b32.xlu1 %v2608_v17, %s4199_s26 }
 0x506   : > { %v2438_v54 = vpop.permute.xlu0 %2437 }
 0x507   : > { %v2606_v44 = vmax.f32 %v5115_v12, 0.0  ;;  %v5122_v43 = vadd.low.f32.bf16 %v2499_v35, %v3791_v10  ;;  %v2500_v50 = vmax.f32 %v2484_v30, 0.0  ;;  %v2481_v23 = vmul.f32 %v2438_v54, %v5045_v37  ;;  %2637 = vrot.lane.b32.xlu0 %v2605_v56, %s4199_s26 }
 0x508   : > { %v2440_v49 = vpop.permute.xlu1 %2439 }
 0x509   : > { %v2611_v24 = vmax.f32 %v5122_v43, 0.0  ;;  %v5129_v41 = vadd.high.f32.bf16 %v2500_v50, %v3791_v10  ;;  %v2497_v45 = vmax.f32 %v2481_v23, 0.0  ;;  %v2482_v55 = vmul.f32 %v2440_v49, %v5051_v7  ;;  %2639 = vrot.lane.b32.xlu1 %v2606_v44, %s4199_s26 }
 0x50b   : > { %v2612_v63 = vmax.f32 %v5129_v41, 0.0  ;;  %v5136_v51 = vadd.low.f32.bf16 %v2497_v45, %v3786_v11  ;;  %v2498_v37 = vmax.f32 %v2482_v55, 0.0  ;;  %v2450_v19 = vpop.permute.xlu0 %2449  ;;  %2649 = vrot.lane.b32.xlu0 %v2611_v24, %s4199_s26 }
 0x50c   : > { %v2487_v0 = vmul.f32 %v5054_v46, %v2450_v19 }
 0x50d   : > { %v2609_v57 = vmax.f32 %v5136_v51, 0.0  ;;  %v5143_v58 = vadd.high.f32.bf16 %v2498_v37, %v3786_v11  ;;  %v2452_v7 = vpop.permute.xlu1 %2451  ;;  %2651 = vrot.lane.b32.xlu1 %v2612_v63, %s4199_s26 }
 0x50e   : > { %v2503_v18 = vmax.f32 %v2487_v0, 0.0  ;;  %v2488_v15 = vmul.f32 %v5060_v53, %v2452_v7 }
 0x50f   : > { %v2610_v59 = vmax.f32 %v5143_v58, 0.0  ;;  %v2446_v34 = vpop.permute.xlu0 %2445  ;;  %2645 = vrot.lane.b32.xlu0 %v2609_v57, %s4199_s26 }
 0x510   : > { %v5153_v46 = vadd.low.f32.bf16 %v2503_v18, %v3801_v48  ;;  %v2504_v25 = vmax.f32 %v2488_v15, 0.0  ;;  %v2485_v60 = vmul.f32 %v2446_v34, %v5057_v31 }
 0x511   : > { %v2448_v47 = vpop.permute.xlu1 %2447  ;;  %2647 = vrot.lane.b32.xlu1 %v2610_v59, %s4199_s26 }
 0x512   : > { %v2615_v22 = vmax.f32 %v5153_v46, 0.0  ;;  %v5160_v53 = vadd.high.f32.bf16 %v2504_v25, %v3801_v48  ;;  %v2501_v42 = vmax.f32 %v2485_v60, 0.0  ;;  %v2486_v28 = vmul.f32 %v2448_v47, %v5063_v52 }
 0x513   : > { %v2458_v11 = vpop.permute.xlu0 %2457 }
 0x514   : > { %v2616_v10 = vmax.f32 %v5160_v53, 0.0  ;;  %v5165_v2 = vadd.low.f32.bf16 %v2501_v42, %v5096_v3  ;;  %v2502_v29 = vmax.f32 %v2486_v28, 0.0  ;;  %2657 = vrot.lane.b32.xlu0 %v2615_v22, %s4199_s26  ;;  %v2491_v9 = vmul.f32 %v5066_v38, %v2458_v11 }
 0x515   : > { %v2460_v31 = vpop.permute.xlu1 %2459 }
 0x516   : > { %v2613_v6 = vmax.f32 %v5165_v2, 0.0  ;;  %v5172_v48 = vadd.high.f32.bf16 %v2502_v29, %v5096_v3  ;;  %2659 = vrot.lane.b32.xlu1 %v2616_v10, %s4199_s26  ;;  %v2492_v36 = vmul.f32 %v5072_v5, %v2460_v31  ;;  %v2507_v16 = vmax.f32 %v2491_v9, 0.0 }
 0x517   : > { %v2454_v52 = vpop.permute.xlu0 %2453 }
 0x518   : > { %v2614_v8 = vmax.f32 %v5172_v48, 0.0  ;;  %v2489_v32 = vmul.f32 %v2454_v52, %v5069_v4  ;;  %2653 = vrot.lane.b32.xlu0 %v2613_v6, %s4199_s26  ;;  %v2508_v4 = vmax.f32 %v2492_v36, 0.0 }
 0x519   : > { %v2456_v1 = vpop.permute.xlu1 %2455 }
 0x51a   : > { %v2490_v3 = vmul.f32 %v2456_v1, %v5076_v61  ;;  %2655 = vrot.lane.b32.xlu1 %v2614_v8, %s4199_s26  ;;  %v2505_v26 = vmax.f32 %v2489_v32, 0.0 }
 0x51b   : > { %v3806_v62 = vpop.permute.xlu0 %3805 }
 0x51c   : > { %v2506_v39 = vmax.f32 %v2490_v3, 0.0  ;;  %v5190_v27 = vadd.low.f32.bf16 %v2505_v26, %v3806_v62 }
 0x51d   : > { %v3811_v14 = vpop.permute.xlu1 %3810 }
 0x51e   : > { %v5188_v21 = vadd.high.f32.bf16 %v2506_v39, %v3806_v62  ;;  %v2617_v5 = vmax.f32 %v5190_v27, 0.0  ;;  %v5194_v35 = vadd.high.f32.bf16 %v2508_v4, %v3811_v14  ;;  %v5196_v61 = vadd.low.f32.bf16 %v2507_v16, %v3811_v14 }
 0x520   : > { %v2618_v38 = vmax.f32 %v5188_v21, 0.0  ;;  %2661 = vrot.lane.b32.xlu0 %v2617_v5, %s4199_s26  ;;  %v2620_v30 = vmax.f32 %v5194_v35, 0.0  ;;  %v2619_v54 = vmax.f32 %v5196_v61, 0.0 }
 0x522   : > { %2663 = vrot.lane.b32.xlu1 %v2618_v38, %s4199_s26 }
 0x524   : > { %2665 = vrot.lane.b32.xlu0 %v2619_v54, %s4199_s26 }
 0x526   : > { %2667 = vrot.lane.b32.xlu1 %v2620_v30, %s4199_s26 }
 0x575   : > { %v2642_v50 = vpop.permute.xlu0 %2641 }
 0x576   : > { %v2691_v23 = vsel %vm710_vm13, %v2642_v50, 0.0 }
 0x577   : > { %v2644_v49 = vpop.permute.xlu1 %2643  ;;  %2692 = vadd.xlane.f32.xlu0 %v2691_v23 }
 0x578   : > { %v2694_v7 = vsel %vm710_vm13, %v2644_v49, 0.0 }
 0x579   : > { %v2638_v45 = vpop.permute.xlu0 %2637 }
 0x57a   : > { %v2685_v55 = vsel %vm710_vm13, %v2638_v45, 0.0 }
 0x57b   : > { %v2640_v37 = vpop.permute.xlu1 %2639  ;;  %2686 = vadd.xlane.f32.xlu0 %v2685_v55 }
 0x57c   : > { %v2688_v19 = vsel %vm710_vm13, %v2640_v37, 0.0 }
 0x57d   : > { %2689 = vadd.xlane.f32.xlu1 %v2688_v19  ;;  %v2650_v0 = vpop.permute.xlu0 %2649 }
 0x57e   : > { %v2703_v15 = vsel %vm710_vm13, %v2650_v0, 0.0 }
 0x57f   : > { %v2652_v18 = vpop.permute.xlu1 %2651  ;;  %2695 = vadd.xlane.f32.xlu0 %v2694_v7 }
 0x580   : > { %v2706_v25 = vsel %vm710_vm13, %v2652_v18, 0.0 }
 0x581   : > { %2704 = vadd.xlane.f32.xlu1 %v2703_v15  ;;  %v2646_v34 = vpop.permute.xlu0 %2645 }
 0x582   : > { %v2697_v47 = vsel %vm710_vm13, %v2646_v34, 0.0 }
 0x583   : > { %v2648_v60 = vpop.permute.xlu1 %2647  ;;  %2707 = vadd.xlane.f32.xlu0 %v2706_v25 }
 0x584   : > { %v2700_v42 = vsel %vm710_vm13, %v2648_v60, 0.0 }
 0x585   : > { %2698 = vadd.xlane.f32.xlu1 %v2697_v47 }
 0x586   : > { %v2658_v28 = vpop.permute.xlu0 %2657 }
 0x587   : > { %2701 = vadd.xlane.f32.xlu0 %v2700_v42  ;;  %v2715_v11 = vsel %vm710_vm13, %v2658_v28, 0.0 }
 0x588   : > { %v2660_v29 = vpop.permute.xlu1 %2659 }
 0x589   : > { %2716 = vadd.xlane.f32.xlu1 %v2715_v11  ;;  %v2718_v31 = vsel %vm710_vm13, %v2660_v29, 0.0 }
 0x58a   : > { %v2654_v52 = vpop.permute.xlu0 %2653 }
 0x58b   : > { %2719 = vadd.xlane.f32.xlu0 %v2718_v31  ;;  %v2709_v32 = vsel %vm710_vm13, %v2654_v52, 0.0 }
 0x58c   : > { %v2656_v9 = vpop.permute.xlu1 %2655 }
 0x58d   : > { %2710 = vadd.xlane.f32.xlu1 %v2709_v32  ;;  %v2712_v36 = vsel %vm710_vm13, %v2656_v9, 0.0 }
 0x58f   : > { %2713 = vadd.xlane.f32.xlu0 %v2712_v36 }
 0x592   : > { %v2662_v3 = vpop.permute.xlu0 %2661 }
 0x593   : > { %v2721_v26 = vsel %vm710_vm13, %v2662_v3, 0.0 }
 0x594   : > { %v2664_v1 = vpop.permute.xlu1 %2663  ;;  %2722 = vadd.xlane.f32.xlu1 %v2721_v26 }
 0x595   : > { %v2724_v62 = vsel %vm710_vm13, %v2664_v1, 0.0 }
 0x596   : > { %2725 = vadd.xlane.f32.xlu0 %v2724_v62  ;;  %v2666_v16 = vpop.permute.xlu0 %2665 }
 0x597   : > { %v2727_v14 = vsel %vm710_vm13, %v2666_v16, 0.0 }
 0x598   : > { %v2668_v39 = vpop.permute.xlu1 %2667  ;;  %2728 = vadd.xlane.f32.xlu1 %v2727_v14 }
 0x599   : > { %v2730_v4 = vsel %vm710_vm13, %v2668_v39, 0.0 }
 0x59a   : > { %2731 = vadd.xlane.f32.xlu0 %v2730_v4 }
 0x604   : > { %v2693_v50 = vpop.xlane.xlu0 %2692 }
 0x605   : > { %v2736_v23 = vmul.f32 0.0625, %v2693_v50 }
 0x607   : > { %v5230_v49 = vsub.f32 %v2607_v20, %v2736_v23 }
 0x608   : > { %v2687_v45 = vpop.xlane.xlu0 %2686 }
 0x609   : > { %v2768_v55 = vmul.f32 %v5230_v49, %v5230_v49  ;;  %v2734_v37 = vmul.f32 0.0625, %v2687_v45 }
 0x60a   : > { %v2690_v19 = vpop.xlane.xlu1 %2689 }
 0x60b   : > { %v5236_v0 = vsub.f32 %v2605_v56, %v2734_v37  ;;  %v2735_v7 = vmul.f32 0.0625, %v2690_v19  ;;  %2802 = vrot.lane.b32.xlu1 %v2768_v55, %s4199_s26 }
 0x60c   : > { %v2696_v18 = vpop.xlane.xlu0 %2695 }
 0x60d   : > { %v2766_v15 = vmul.f32 %v5236_v0, %v5236_v0  ;;  %v5243_v33 = vsub.f32 %v2606_v44, %v2735_v7  ;;  %v2737_v20 = vmul.f32 0.0625, %v2696_v18 }
 0x60e   : > { %v2705_v34 = vpop.xlane.xlu1 %2704 }
 0x60f   : > { %v2767_v25 = vmul.f32 %v5243_v33, %v5243_v33  ;;  %v5249_v40 = vsub.f32 %v2608_v17, %v2737_v20  ;;  %v2740_v56 = vmul.f32 0.0625, %v2705_v34  ;;  %2798 = vrot.lane.b32.xlu1 %v2766_v15, %s4199_s26 }
 0x610   : > { %v2708_v60 = vpop.xlane.xlu0 %2707 }
 0x611   : > { %v2769_v47 = vmul.f32 %v5249_v40, %v5249_v40  ;;  %v5256_v12 = vsub.f32 %v2611_v24, %v2740_v56  ;;  %v2741_v44 = vmul.f32 0.0625, %v2708_v60  ;;  %2800 = vrot.lane.b32.xlu0 %v2767_v25, %s4199_s26 }
 0x612   : > { %v2699_v42 = vpop.xlane.xlu1 %2698 }
 0x613   : > { %v2772_v13 = vmul.f32 %v5256_v12, %v5256_v12  ;;  %v5263_v17 = vsub.f32 %v2612_v63, %v2741_v44  ;;  %v2738_v28 = vmul.f32 0.0625, %v2699_v42  ;;  %2804 = vrot.lane.b32.xlu1 %v2769_v47, %s4199_s26 }
 0x614   : > { %v2702_v11 = vpop.xlane.xlu0 %2701 }
 0x615   : > { %v2773_v43 = vmul.f32 %v5263_v17, %v5263_v17  ;;  %v5270_v24 = vsub.f32 %v2609_v57, %v2738_v28  ;;  %v2739_v29 = vmul.f32 0.0625, %v2702_v11  ;;  %2810 = vrot.lane.b32.xlu0 %v2772_v13, %s4199_s26 }
 0x616   : > { %v2717_v31 = vpop.xlane.xlu1 %2716 }
 0x617   : > { %v2770_v41 = vmul.f32 %v5270_v24, %v5270_v24  ;;  %v5277_v63 = vsub.f32 %v2610_v59, %v2739_v29  ;;  %v2744_v52 = vmul.f32 0.0625, %v2717_v31  ;;  %2812 = vrot.lane.b32.xlu1 %v2773_v43, %s4199_s26 }
 0x618   : > { %v2720_v32 = vpop.xlane.xlu0 %2719 }
 0x619   : > { %v2771_v51 = vmul.f32 %v5277_v63, %v5277_v63  ;;  %v5284_v57 = vsub.f32 %v2615_v22, %v2744_v52  ;;  %v2745_v9 = vmul.f32 0.0625, %v2720_v32  ;;  %2806 = vrot.lane.b32.xlu0 %v2770_v41, %s4199_s26 }
 0x61a   : > { %v2711_v36 = vpop.xlane.xlu1 %2710 }
 0x61b   : > { %v2776_v58 = vmul.f32 %v5284_v57, %v5284_v57  ;;  %v5291_v59 = vsub.f32 %v2616_v10, %v2745_v9  ;;  %v2742_v1 = vmul.f32 0.0625, %v2711_v36  ;;  %2808 = vrot.lane.b32.xlu1 %v2771_v51, %s4199_s26 }
 0x61c   : > { %v2714_v3 = vpop.xlane.xlu0 %2713 }
 0x61d   : > { %v2777_v46 = vmul.f32 %v5291_v59, %v5291_v59  ;;  %v5298_v22 = vsub.f32 %v2613_v6, %v2742_v1  ;;  %v2743_v62 = vmul.f32 0.0625, %v2714_v3  ;;  %2818 = vrot.lane.b32.xlu0 %v2776_v58, %s4199_s26 }
 0x61f   : > { %v2774_v26 = vmul.f32 %v5298_v22, %v5298_v22  ;;  %v5305_v53 = vsub.f32 %v2614_v8, %v2743_v62  ;;  %2820 = vrot.lane.b32.xlu1 %v2777_v46, %s4199_s26  ;;  %v3507_v46 = vld [vmem:[%s5680_s3] ss:$0 sm:$0xff] }
 0x620   : > { %v3508_v62 = vld [vmem:[%s5681_s4] ss:$0 sm:$0xff] }
 0x621   : > { %v2775_v10 = vmul.f32 %v5305_v53, %v5305_v53  ;;  %2814 = vrot.lane.b32.xlu0 %v2774_v26, %s4199_s26  ;;  %v2723_v2 = vpop.xlane.xlu1 %2722 }
 0x622   : > { %v2746_v39 = vmul.f32 0.0625, %v2723_v2 }
 0x623   : > { %v2726_v6 = vpop.xlane.xlu0 %2725  ;;  %2816 = vrot.lane.b32.xlu1 %v2775_v10, %s4199_s26 }
 0x624   : > { %v2747_v16 = vmul.f32 0.0625, %v2726_v6  ;;  %v5314_v4 = vsub.f32 %v2617_v5, %v2746_v39 }
 0x625   : > { %v2729_v8 = vpop.xlane.xlu1 %2728 }
 0x626   : > { %v5318_v48 = vsub.f32 %v2618_v38, %v2747_v16  ;;  %v2778_v50 = vmul.f32 %v5314_v4, %v5314_v4  ;;  %v2748_v45 = vmul.f32 0.0625, %v2729_v8 }
 0x627   : > { %v2732_v14 = vpop.xlane.xlu0 %2731 }
 0x628   : > { %v2779_v23 = vmul.f32 %v5318_v48, %v5318_v48  ;;  %v2749_v55 = vmul.f32 0.0625, %v2732_v14  ;;  %v5326_v37 = vsub.f32 %v2619_v54, %v2748_v45  ;;  %2822 = vrot.lane.b32.xlu0 %v2778_v50, %s4199_s26 }
 0x62a   : > { %v5330_v27 = vsub.f32 %v2620_v30, %v2749_v55  ;;  %2824 = vrot.lane.b32.xlu1 %v2779_v23, %s4199_s26  ;;  %v2780_v21 = vmul.f32 %v5326_v37, %v5326_v37 }
 0x62c   : > { %v2781_v38 = vmul.f32 %v5330_v27, %v5330_v27  ;;  %2826 = vrot.lane.b32.xlu0 %v2780_v21, %s4199_s26 }
 0x62e   : > { %2828 = vrot.lane.b32.xlu1 %v2781_v38, %s4199_s26 }
 0x67d   : > { %v2803_v5 = vpop.permute.xlu1 %2802 }
 0x67e   : > { %v2852_v61 = vsel %vm710_vm13, %v2803_v5, 0.0 }
 0x67f   : > { %2853 = vadd.xlane.f32.xlu0 %v2852_v61 }
 0x681   : > { %v2799_v35 = vpop.permute.xlu1 %2798 }
 0x682   : > { %v2846_v30 = vsel %vm710_vm13, %v2799_v35, 0.0 }
 0x683   : > { %2847 = vadd.xlane.f32.xlu0 %v2846_v30  ;;  %v2801_v54 = vpop.permute.xlu0 %2800 }
 0x684   : > { %v2849_v19 = vsel %vm710_vm13, %v2801_v54, 0.0 }
 0x685   : > { %v2805_v7 = vpop.permute.xlu1 %2804  ;;  %2850 = vadd.xlane.f32.xlu1 %v2849_v19 }
 0x686   : > { %v2855_v18 = vsel %vm710_vm13, %v2805_v7, 0.0 }
 0x687   : > { %2856 = vadd.xlane.f32.xlu0 %v2855_v18  ;;  %v2811_v15 = vpop.permute.xlu0 %2810 }
 0x688   : > { %v2864_v20 = vsel %vm710_vm13, %v2811_v15, 0.0 }
 0x689   : > { %v2813_v34 = vpop.permute.xlu1 %2812  ;;  %2865 = vadd.xlane.f32.xlu1 %v2864_v20 }
 0x68a   : > { %v2867_v25 = vsel %vm710_vm13, %v2813_v34, 0.0 }
 0x68b   : > { %2868 = vadd.xlane.f32.xlu0 %v2867_v25  ;;  %v2807_v56 = vpop.permute.xlu0 %2806 }
 0x68c   : > { %v2858_v60 = vsel %vm710_vm13, %v2807_v56, 0.0 }
 0x68d   : > { %v2809_v47 = vpop.permute.xlu1 %2808  ;;  %2859 = vadd.xlane.f32.xlu1 %v2858_v60 }
 0x68e   : > { %v2861_v44 = vsel %vm710_vm13, %v2809_v47, 0.0 }
 0x68f   : > { %2862 = vadd.xlane.f32.xlu0 %v2861_v44  ;;  %v2819_v42 = vpop.permute.xlu0 %2818 }
 0x690   : > { %v2876_v13 = vsel %vm710_vm13, %v2819_v42, 0.0 }
 0x691   : > { %v2821_v28 = vpop.permute.xlu1 %2820  ;;  %2877 = vadd.xlane.f32.xlu1 %v2876_v13 }
 0x692   : > { %v2879_v11 = vsel %vm710_vm13, %v2821_v28, 0.0 }
 0x693   : > { %2880 = vadd.xlane.f32.xlu0 %v2879_v11  ;;  %v2815_v43 = vpop.permute.xlu0 %2814 }
 0x694   : > { %v2870_v29 = vsel %vm710_vm13, %v2815_v43, 0.0 }
 0x695   : > { %v2817_v31 = vpop.permute.xlu1 %2816  ;;  %2871 = vadd.xlane.f32.xlu1 %v2870_v29 }
 0x696   : > { %v2873_v41 = vsel %vm710_vm13, %v2817_v31, 0.0 }
 0x697   : > { %2874 = vadd.xlane.f32.xlu0 %v2873_v41 }
 0x69a   : > { %v2823_v32 = vpop.permute.xlu0 %2822 }
 0x69b   : > { %v2882_v9 = vsel %vm710_vm13, %v2823_v32, 0.0 }
 0x69c   : > { %v2825_v52 = vpop.permute.xlu1 %2824  ;;  %2883 = vadd.xlane.f32.xlu1 %v2882_v9 }
 0x69d   : > { %v2885_v51 = vsel %vm710_vm13, %v2825_v52, 0.0 }
 0x69e   : > { %2886 = vadd.xlane.f32.xlu0 %v2885_v51  ;;  %v2827_v58 = vpop.permute.xlu0 %2826 }
 0x69f   : > { %v2888_v3 = vsel %vm710_vm13, %v2827_v58, 0.0 }
 0x6a0   : > { %v2829_v36 = vpop.permute.xlu1 %2828  ;;  %2889 = vadd.xlane.f32.xlu1 %v2888_v3 }
 0x6a1   : > { %v2891_v1 = vsel %vm710_vm13, %v2829_v36, 0.0 }
 0x6a2   : > { %2892 = vadd.xlane.f32.xlu0 %v2891_v1 }
 0x6b1   : > { %3093 = vrot.lane.b32.xlu1 %v3507_v46, %s4198_s30 }
 0x6b8   : > { %3118 = vrot.lane.b32.xlu0 %v3508_v62, %s4198_s30  ;;  %s3532_s30 = sshll.u32 %s4178_s21, 4 }
 0x70c   : > { %v2854_v26 = vpop.xlane.xlu0 %2853 }
 0x70d   : > { %v2897_v10 = vmul.f32 0.06666667, %v2854_v26 }
 0x70f   : > { %4004 = vrsqrt.f32 %v2897_v10  ;;  %vm2927_vm1 = vcmp.eq.f32.partialorder %v2897_v10, inf  ;;  %vm2929_vm2 = vcmp.eq.f32.partialorder %v2897_v10, 0.0  ;;  %v2930_v61 = vand.u32 2147483648, %v2897_v10 }
 0x710   : > { %v2848_v2 = vpop.xlane.xlu0 %2847 }
 0x711   : > { %v2895_v6 = vmul.f32 0.06666667, %v2848_v2 }
 0x712   : > { %v2851_v39 = vpop.xlane.xlu1 %2850 }
 0x713   : > { %4006 = vrsqrt.f32 %v2895_v6  ;;  %v2896_v16 = vmul.f32 0.06666667, %v2851_v39  ;;  %vm2913_vm3 = vcmp.eq.f32.partialorder %v2895_v6, inf  ;;  %vm2915_vm4 = vcmp.eq.f32.partialorder %v2895_v6, 0.0 }
 0x714   : > { %v2857_v8 = vpop.xlane.xlu0 %2856  ;;  %v2916_v7 = vand.u32 2147483648, %v2895_v6 }
 0x715   : > { %v2898_v14 = vmul.f32 0.06666667, %v2857_v8  ;;  %4008 = vrsqrt.f32 %v2896_v16  ;;  %vm2920_vm5 = vcmp.eq.f32.partialorder %v2896_v16, inf  ;;  %vm2922_vm6 = vcmp.eq.f32.partialorder %v2896_v16, 0.0 }
 0x716   : > { %v2866_v50 = vpop.xlane.xlu1 %2865  ;;  %v2923_v20 = vand.u32 2147483648, %v2896_v16 }
 0x717   : > { %4010 = vrsqrt.f32 %v2898_v14  ;;  %v5364_v23 = vmul.f32 0.06666667, %v2866_v50  ;;  %vm2934_vm7 = vcmp.eq.f32.partialorder %v2898_v14, inf  ;;  %vm2936_vm8 = vcmp.eq.f32.partialorder %v2898_v14, 0.0 }
 0x718   : > { %v2869_v45 = vpop.xlane.xlu0 %2868  ;;  %v2937_v56 = vand.u32 2147483648, %v2898_v14 }
 0x719   : > { %v4005_v55 = vpop.eup %4004  ;;  %v5366_v21 = vmul.f32 0.06666667, %v2869_v45  ;;  %4012 = vrsqrt.f32 %v5364_v23  ;;  %vm2955_vm9 = vcmp.eq.f32.partialorder %v5364_v23, inf  ;;  %vm2957_vm10 = vcmp.eq.f32.partialorder %v5364_v23, 0.0 }
 0x71a   : > { %v2926_v38 = vmul.f32 %v4005_v55, %v2897_v10  ;;  %v2860_v5 = vpop.xlane.xlu1 %2859  ;;  %v2958_v44 = vand.u32 2147483648, %v5364_v23 }
 0x71b   : > { %4014 = vrsqrt.f32 %v5366_v21  ;;  %v5370_v30 = vmul.f32 0.06666667, %v2860_v5  ;;  %vm2962_vm11 = vcmp.eq.f32.partialorder %v5366_v21, inf  ;;  %vm2964_vm12 = vcmp.eq.f32.partialorder %v5366_v21, 0.0 }
 0x71c   : > { %v2928_v35 = vsel %vm2927_vm1, %v2897_v10, %v2926_v38  ;;  %v2863_v54 = vpop.xlane.xlu0 %2862  ;;  %v2965_v51 = vand.u32 2147483648, %v5366_v21 }
 0x71d   : > { %v4007_v19 = vpop.eup %4006  ;;  %v5372_v18 = vmul.f32 0.06666667, %v2863_v54  ;;  %4016 = vrsqrt.f32 %v5370_v30  ;;  %v2931_v25 = vsel %vm2929_vm2, %v2930_v61, %v2928_v35  ;;  %vm2941_vm14 = vcmp.eq.f32.partialorder %v5370_v30, inf }
 0x71e   : > { %v2912_v15 = vmul.f32 %v4007_v19, %v2895_v6  ;;  %v2878_v34 = vpop.xlane.xlu1 %2877  ;;  %v3025_v31 = vadd.f32 0.001, %v2931_v25  ;;  %vm2943_vm15 = vcmp.eq.f32.partialorder %v5370_v30, 0.0  ;;  %v2944_v26 = vand.u32 2147483648, %v5370_v30 }
 0x71f   : > { %4018 = vrsqrt.f32 %v5372_v18  ;;  %v4009_v60 = vpop.eup %4008  ;;  %v5382_v43 = vmul.f32 0.06666667, %v2878_v34  ;;  %vm2948_vm0 = vcmp.eq.f32.partialorder %v5372_v18, inf  ;;  %vm2950_vm1 = vcmp.eq.f32.partialorder %v5372_v18, 0.0 }
 0x720   : > { %v2914_v47 = vsel %vm2913_vm3, %v2895_v6, %v2912_v15  ;;  %v2881_v42 = vpop.xlane.xlu0 %2880  ;;  %v2919_v11 = vmul.f32 %v4009_v60, %v2896_v16 }
 0x721   : > { %v4011_v13 = vpop.eup %4010  ;;  %v2917_v28 = vsel %vm2915_vm4, %v2916_v7, %v2914_v47  ;;  %v5384_v29 = vmul.f32 0.06666667, %v2881_v42  ;;  %4020 = vrsqrt.f32 %v5382_v43  ;;  %vm2983_vm2 = vcmp.eq.f32.partialorder %v5382_v43, inf }
 0x722   : > { %v2933_v41 = vmul.f32 %v4011_v13, %v2898_v14  ;;  %v3023_v52 = vadd.f32 0.001, %v2917_v28  ;;  %v2921_v32 = vsel %vm2920_vm5, %v2896_v16, %v2919_v11  ;;  %v2872_v1 = vpop.xlane.xlu1 %2871  ;;  %vm2985_vm3 = vcmp.eq.f32.partialorder %v5382_v43, 0.0 }
 0x723   : > { %v4013_v9 = vpop.eup %4012  ;;  %v2924_v36 = vsel %vm2922_vm6, %v2923_v20, %v2921_v32  ;;  %4022 = vrsqrt.f32 %v5384_v29  ;;  %v5405_v16 = vmul.f32 0.06666667, %v2872_v1  ;;  %vm2990_vm4 = vcmp.eq.f32.partialorder %v5384_v29, inf }
 0x724   : > { %v2935_v58 = vsel %vm2934_vm7, %v2898_v14, %v2933_v41  ;;  %v2954_v62 = vmul.f32 %v4013_v9, %v5364_v23  ;;  %v2875_v10 = vpop.xlane.xlu0 %2874  ;;  %4024 = vrcp.f32 %v3025_v31  ;;  %v3024_v2 = vadd.f32 0.001, %v2924_v36 }
 0x725   : > { %v4015_v3 = vpop.eup %4014  ;;  %v2938_v46 = vsel %vm2936_vm8, %v2937_v56, %v2935_v58  ;;  %4026 = vrcp.f32 %v3023_v52  ;;  %v5412_v55 = vmul.f32 0.06666667, %v2875_v10  ;;  %vm2992_vm5 = vcmp.eq.f32.partialorder %v5384_v29, 0.0 }
 0x726   : > { %v2961_v6 = vmul.f32 %v4015_v3, %v5366_v21  ;;  %v2956_v39 = vsel %vm2955_vm9, %v5364_v23, %v2954_v62  ;;  %v3026_v14 = vadd.f32 0.001, %v2938_v46  ;;  %4028 = vrsqrt.f32 %v5405_v16 }
 0x727   : > { %v4017_v8 = vpop.eup %4016  ;;  %v2959_v50 = vsel %vm2957_vm10, %v2958_v44, %v2956_v39  ;;  %4030 = vrcp.f32 %v3024_v2  ;;  %v2951_v23 = vand.u32 2147483648, %v5372_v18  ;;  %v2993_v11 = vand.u32 2147483648, %v5384_v29 }
 0x728   : > { %v2963_v45 = vsel %vm2962_vm11, %v5366_v21, %v2961_v6  ;;  %v3029_v5 = vadd.f32 0.001, %v2959_v50  ;;  %v2940_v35 = vmul.f32 %v4017_v8, %v5370_v30  ;;  %v2986_v21 = vand.u32 2147483648, %v5382_v43 }
 0x729   : > { %v4019_v38 = vpop.eup %4018  ;;  %v2966_v61 = vsel %vm2964_vm12, %v2965_v51, %v2963_v45  ;;  %v2884_v7 = vpop.xlane.xlu1 %2883  ;;  %vm2969_vm6 = vcmp.eq.f32.partialorder %v5405_v16, inf  ;;  %vm2971_vm7 = vcmp.eq.f32.partialorder %v5405_v16, 0.0  ;;  %v2972_v9 = vand.u32 2147483648, %v5405_v16 }
 0x72a   : > { %v2947_v54 = vmul.f32 %v4019_v38, %v5372_v18  ;;  %4032 = vrcp.f32 %v3029_v5  ;;  %v2942_v19 = vsel %vm2941_vm14, %v5370_v30, %v2940_v35  ;;  %v3030_v20 = vadd.f32 0.001, %v2966_v61 }
 0x72b   : > { %v2887_v15 = vpop.xlane.xlu0 %2886  ;;  %4034 = vrcp.f32 %v3026_v14  ;;  %v2945_v34 = vsel %vm2943_vm15, %v2944_v26, %v2942_v19  ;;  %v4021_v56 = vpop.eup %4020  ;;  %v5437_v42 = vmul.f32 0.06666667, %v2884_v7  ;;  %vm2976_vm8 = vcmp.eq.f32.partialorder %v5412_v55, inf }
 0x72c   : > { %v2949_v25 = vsel %vm2948_vm0, %v5372_v18, %v2947_v54  ;;  %v3027_v60 = vadd.f32 0.001, %v2945_v34  ;;  %4036 = vrsqrt.f32 %v5412_v55  ;;  %v2982_v44 = vmul.f32 %v4021_v56, %v5382_v43 }
 0x72d   : > { %v2952_v47 = vsel %vm2950_vm1, %v2951_v23, %v2949_v25  ;;  %v5439_v30 = vmul.f32 0.06666667, %v2887_v15  ;;  %v4023_v13 = vpop.eup %4022  ;;  %v2890_v18 = vpop.xlane.xlu1 %2889  ;;  %vm2978_vm9 = vcmp.eq.f32.partialorder %v5412_v55, 0.0  ;;  %v2979_v46 = vand.u32 2147483648, %v5412_v55 }
 0x72e   : > { %4038 = vrcp.f32 %v3027_v60  ;;  %v3028_v28 = vadd.f32 0.001, %v2952_v47  ;;  %v4025_v31 = vpop.eup %4024  ;;  %v2984_v41 = vsel %vm2983_vm2, %v5382_v43, %v2982_v44  ;;  %v2989_v52 = vmul.f32 %v4023_v13, %v5384_v29 }
 0x72f   : > { %4040 = vrcp.f32 %v3030_v20  ;;  %v4027_v32 = vpop.eup %4026  ;;  %v2987_v51 = vsel %vm2985_vm3, %v2986_v21, %v2984_v41  ;;  %v2893_v36 = vpop.xlane.xlu0 %2892  ;;  %v5461_v62 = vmul.f32 0.06666667, %v2890_v18  ;;  %v3073_v39 = vmul.f32 %v4025_v31, %v5230_v49 }
 0x730   : > { %4042 = vrsqrt.f32 %v5437_v42  ;;  %v3033_v58 = vadd.f32 0.001, %v2987_v51  ;;  %v2991_v1 = vsel %vm2990_vm4, %v5384_v29, %v2989_v52  ;;  %v4029_v3 = vpop.eup %4028  ;;  %v5464_v2 = vmul.f32 0.06666667, %v2893_v36 }
 0x731   : > { %4044 = vrsqrt.f32 %v5439_v30  ;;  %v2994_v43 = vsel %vm2992_vm5, %v2993_v11, %v2991_v1  ;;  %v4031_v26 = vpop.eup %4030  ;;  %v2968_v10 = vmul.f32 %v4029_v3, %v5405_v16  ;;  %v5466_v6 = vpop.permute.xlu1 %3093  ;;  %vm2997_vm10 = vcmp.eq.f32.partialorder %v5437_v42, inf }
 0x732   : > { %4046 = vrcp.f32 %v3028_v28  ;;  %v3034_v14 = vadd.f32 0.001, %v2994_v43  ;;  %v3071_v29 = vmul.f32 %v4027_v32, %v5236_v0  ;;  %vm2999_vm11 = vcmp.eq.f32.partialorder %v5437_v42, 0.0 }
 0x733   : > { %4048 = vrcp.f32 %v3033_v58  ;;  %v2970_v45 = vsel %vm2969_vm6, %v5405_v16, %v2968_v10  ;;  %v3000_v38 = vand.u32 2147483648, %v5437_v42  ;;  %vm3004_vm12 = vcmp.eq.f32.partialorder %v5439_v30, inf  ;;  %v5478_v49 = vpop.permute.xlu0 %3118 }
 0x734   : > { %v4033_v8 = vpop.eup %4032  ;;  %4050 = vrsqrt.f32 %v5461_v62  ;;  %v2973_v61 = vsel %vm2971_vm7, %v2972_v9, %v2970_v45  ;;  %vm3006_vm14 = vcmp.eq.f32.partialorder %v5439_v30, 0.0  ;;  %v3007_v0 = vand.u32 2147483648, %v5439_v30 }
 0x735   : > { %v4035_v50 = vpop.eup %4034  ;;  %4052 = vrsqrt.f32 %v5464_v2  ;;  %v3098_v35 = vmul.f32 %v5466_v6, %v3073_v39  ;;  %v3031_v54 = vadd.f32 0.001, %v2973_v61  ;;  %v3096_v19 = vmul.f32 %v5466_v6, %v3071_v29 }
 0x736   : > { %v4037_v5 = vpop.eup %4036  ;;  %v3077_v21 = vmul.f32 %v4033_v8, %v5256_v12  ;;  %4054 = vrcp.f32 %v3034_v14  ;;  %v3074_v15 = vmul.f32 %v4035_v50, %v5249_v40  ;;  %v3072_v20 = vmul.f32 %v4031_v26, %v5243_v33 }
 0x737   : > { %v2975_v23 = vmul.f32 %v4037_v5, %v5412_v55  ;;  %v3123_v16 = vadd.f32 %v5478_v49, %v3098_v35  ;;  %4056 = vrcp.f32 %v3031_v54  ;;  %v3121_v56 = vadd.f32 %v5478_v49, %v3096_v19 }
 0x738   : > { %v4039_v7 = vpop.eup %4038  ;;  %v3102_v60 = vmul.f32 %v5466_v6, %v3077_v21  ;;  %vm3011_vm15 = vcmp.eq.f32.partialorder %v5461_v62, inf  ;;  %v3099_v33 = vmul.f32 %v5466_v6, %v3074_v15  ;;  %vm3013_vm0 = vcmp.eq.f32.partialorder %v5461_v62, 0.0 }
 0x739   : > { %v4041_v34 = vpop.eup %4040  ;;  %v2977_v25 = vsel %vm2976_vm8, %v5412_v55, %v2975_v23  ;;  %3157 = vrot.lane.b32.xlu0 %v3123_v16, %s4199_s26  ;;  %v3075_v40 = vmul.f32 %v4039_v7, %v5270_v24  ;;  %3153 = vrot.lane.b32.xlu1 %v3121_v56, %s4199_s26  ;;  %v3097_v41 = vmul.f32 %v5466_v6, %v3072_v20  ;;  %v3014_v51 = vand.u32 2147483648, %v5461_v62 }
 0x73a   : > { %v4043_v47 = vpop.eup %4042  ;;  %v2980_v12 = vsel %vm2978_vm9, %v2979_v46, %v2977_v25  ;;  %v3127_v11 = vadd.f32 %v5478_v49, %v3102_v60  ;;  %v3078_v52 = vmul.f32 %v4041_v34, %v5263_v17  ;;  %v3124_v9 = vadd.f32 %v5478_v49, %v3099_v33 }
 0x73b   : > { %v4045_v44 = vpop.eup %4044  ;;  %v3032_v13 = vadd.f32 0.001, %v2980_v12  ;;  %v2996_v28 = vmul.f32 %v4043_v47, %v5437_v42  ;;  %v3100_v31 = vmul.f32 %v5466_v6, %v3075_v40  ;;  %vm3018_vm1 = vcmp.eq.f32.partialorder %v5464_v2, inf }
 0x73c   : > { %v4047_v55 = vpop.eup %4046  ;;  %v3003_v18 = vmul.f32 %v4045_v44, %v5439_v30  ;;  %v3122_v39 = vadd.f32 %v5478_v49, %v3097_v41  ;;  %v3103_v14 = vmul.f32 %v5466_v6, %v3078_v52  ;;  %vm3020_vm2 = vcmp.eq.f32.partialorder %v5464_v2, 0.0 }
 0x73d   : > { %v4049_v24 = vpop.eup %4048  ;;  %4058 = vrcp.f32 %v3032_v13  ;;  %v2998_v32 = vsel %vm2997_vm10, %v5437_v42, %v2996_v28  ;;  %3165 = vrot.lane.b32.xlu0 %v3127_v11, %s4199_s26  ;;  %v3125_v17 = vadd.f32 %v5478_v49, %v3100_v31  ;;  %3159 = vrot.lane.b32.xlu1 %v3124_v9, %s4199_s26  ;;  %v3076_v29 = vmul.f32 %v4047_v55, %v5277_v63 }
 0x73e   : > { %v4051_v36 = vpop.eup %4050  ;;  %v3001_v58 = vsel %vm2999_vm11, %v3000_v38, %v2998_v32  ;;  %v3005_v1 = vsel %vm3004_vm12, %v5439_v30, %v3003_v18  ;;  %v3081_v3 = vmul.f32 %v4049_v24, %v5284_v57  ;;  %v3021_v38 = vand.u32 2147483648, %v5464_v2 }
 0x73f   : > { %v3035_v43 = vadd.f32 0.001, %v3001_v58  ;;  %v3008_v46 = vsel %vm3006_vm14, %v3007_v0, %v3005_v1  ;;  %v3010_v26 = vmul.f32 %v4051_v36, %v5461_v62  ;;  %v4053_v42 = vpop.eup %4052  ;;  %v3101_v19 = vmul.f32 %v5466_v6, %v3076_v29 }
 0x740   : > { %v3036_v10 = vadd.f32 0.001, %v3008_v46  ;;  %v3106_v8 = vmul.f32 %v5466_v6, %v3081_v3  ;;  %v3017_v30 = vmul.f32 %v4053_v42, %v5464_v2  ;;  %v4055_v50 = vpop.eup %4054 }
 0x741   : > { %4060 = vrcp.f32 %v3035_v43  ;;  %v3012_v57 = vsel %vm3011_vm15, %v5461_v62, %v3010_v26  ;;  %3161 = vrot.lane.b32.xlu0 %v3125_v17, %s4199_s26  ;;  %v4057_v61 = vpop.eup %4056  ;;  %3155 = vrot.lane.b32.xlu1 %v3122_v39, %s4199_s26  ;;  %v3128_v62 = vadd.f32 %v5478_v49, %v3103_v14  ;;  %v3082_v21 = vmul.f32 %v4055_v50, %v5291_v59 }
 0x742   : > { %4062 = vrcp.f32 %v3036_v10  ;;  %v3015_v45 = vsel %vm3013_vm0, %v3014_v51, %v3012_v57  ;;  %v3131_v5 = vadd.f32 %v5478_v49, %v3106_v8  ;;  %v3019_v35 = vsel %vm3018_vm1, %v5464_v2, %v3017_v30 }
 0x743   : > { %v3037_v0 = vadd.f32 0.001, %v3015_v45  ;;  %v3022_v63 = vsel %vm3020_vm2, %v3021_v38, %v3019_v35  ;;  %v3079_v54 = vmul.f32 %v4057_v61, %v5298_v22  ;;  %v3126_v15 = vadd.f32 %v5478_v49, %v3101_v19 }
 0x744   : > { %v3038_v23 = vadd.f32 0.001, %v3022_v63  ;;  %v3107_v22 = vmul.f32 %v5466_v6, %v3082_v21 }
 0x745   : > { %4064 = vrcp.f32 %v3037_v0  ;;  %3173 = vrot.lane.b32.xlu0 %v3131_v5, %s4199_s26  ;;  %v3104_v7 = vmul.f32 %v5466_v6, %v3079_v54  ;;  %3167 = vrot.lane.b32.xlu1 %v3128_v62, %s4199_s26 }
 0x746   : > { %4066 = vrcp.f32 %v3038_v23  ;;  %v3132_v56 = vadd.f32 %v5478_v49, %v3107_v22 }
 0x747   : > { %v4059_v16 = vpop.eup %4058  ;;  %v3129_v2 = vadd.f32 %v5478_v49, %v3104_v7 }
 0x748   : > { %v3080_v20 = vmul.f32 %v4059_v16, %v5305_v53 }
 0x749   : > { %3169 = vrot.lane.b32.xlu0 %v3129_v2, %s4199_s26  ;;  %3163 = vrot.lane.b32.xlu1 %v3126_v15, %s4199_s26 }
 0x74a   : > { %v3105_v60 = vmul.f32 %v5466_v6, %v3080_v20 }
 0x74b   : > { %v4061_v34 = vpop.eup %4060 }
 0x74c   : > { %v4063_v59 = vpop.eup %4062  ;;  %v3083_v25 = vmul.f32 %v4061_v34, %v5314_v4  ;;  %v3130_v13 = vadd.f32 %v5478_v49, %v3105_v60 }
 0x74d   : > { %v3084_v47 = vmul.f32 %v4063_v59, %v5318_v48  ;;  %3175 = vrot.lane.b32.xlu1 %v3132_v56, %s4199_s26 }
 0x74e   : > { %v3108_v12 = vmul.f32 %v5466_v6, %v3083_v25 }
 0x74f   : > { %v4065_v33 = vpop.eup %4064  ;;  %v3109_v4 = vmul.f32 %v5466_v6, %v3084_v47 }
 0x750   : > { %v3133_v53 = vadd.f32 %v5478_v49, %v3108_v12  ;;  %v3085_v40 = vmul.f32 %v4065_v33, %v5326_v37  ;;  %v4067_v44 = vpop.eup %4066 }
 0x751   : > { %v3086_v28 = vmul.f32 %v4067_v44, %v5330_v27  ;;  %3171 = vrot.lane.b32.xlu1 %v3130_v13, %s4199_s26  ;;  %v3134_v37 = vadd.f32 %v5478_v49, %v3109_v4 }
 0x752   : > { %3177 = vrot.lane.b32.xlu0 %v3133_v53, %s4199_s26  ;;  %v3110_v48 = vmul.f32 %v5466_v6, %v3085_v40 }
 0x753   : > { %v3111_v55 = vmul.f32 %v5466_v6, %v3086_v28 }
 0x754   : > { %v3135_v11 = vadd.f32 %v5478_v49, %v3110_v48 }
 0x755   : > { %3179 = vrot.lane.b32.xlu1 %v3134_v37, %s4199_s26  ;;  %v3136_v18 = vadd.f32 %v5478_v49, %v3111_v55 }
 0x756   : > { %3181 = vrot.lane.b32.xlu0 %v3135_v11, %s4199_s26 }
 0x759   : > { %3183 = vrot.lane.b32.xlu1 %v3136_v18, %s4199_s26  ;;  %s3512_s26 = sshll.u32 %s4182_s22, 5 }
 0x75a   : > { %s3231_s17 = sadd.s32 %s3532_s30, %s3512_s26  ;;  %s4106_s30 = scalar_lea.vmem %s4105_s27, 4096 }
 0x75b   : > { %s3513_s13 = sshll.u32 %s3231_s17, 7  ;;  %p4108_p7 = scmp.lt.s32.totalorder %s4106_s30, %s4100_s15 }
 0x75c   : > { %s5619_s9 = scalar_lea.hbm %s5682_s5, %s3513_s13 }
 0x75d   : > { %p4109_p9 = por %p4108_p7, %p4107_p6 }
 0x75f   : > { %p4110_p10 = pnand %p4109_p9, %p4103_p5 }
 0x7ab   : > { %v3158_v27 = vpop.permute.xlu0 %3157  ;;  %v3154_v31 = vpop.permute.xlu1 %3153 }
 0x7ac   : > { %3203 = vst.msk [vmem:[%s4315_s10 + $0x10] sm:$0xff] %vm710_vm13, %v3158_v27  ;;  %3201 = vst.msk [vmem:[%s4315_s10] sm:$0xff] %vm710_vm13, %v3154_v31 }
 0x7af   : > { %v3166_v6 = vpop.permute.xlu0 %3165  ;;  %v3160_v41 = vpop.permute.xlu1 %3159 }
 0x7b0   : > { %3207 = vst.msk [vmem:[%s4315_s10 + $0x30] sm:$0xff] %vm710_vm13, %v3166_v6  ;;  %3204 = vst.msk [vmem:[%s4315_s10 + $0x18] sm:$0xff] %vm710_vm13, %v3160_v41 }
 0x7b3   : > { %v3162_v49 = vpop.permute.xlu0 %3161  ;;  %v3156_v52 = vpop.permute.xlu1 %3155 }
 0x7b4   : > { %3205 = vst.msk [vmem:[%s4315_s10 + $0x20] sm:$0xff] %vm710_vm13, %v3162_v49  ;;  %3202 = vst.msk [vmem:[%s4315_s10 + $0x8] sm:$0xff] %vm710_vm13, %v3156_v52 }
 0x7b7   : > { %v3174_v24 = vpop.permute.xlu0 %3173  ;;  %v3168_v32 = vpop.permute.xlu1 %3167 }
 0x7b8   : > { %3211 = vst.msk [vmem:[%s4315_s10 + $0x50] sm:$0xff] %vm710_vm13, %v3174_v24  ;;  %3208 = vst.msk [vmem:[%s4315_s10 + $0x38] sm:$0xff] %vm710_vm13, %v3168_v32 }
 0x7bb   : > { %v3170_v51 = vpop.permute.xlu0 %3169  ;;  %v3164_v9 = vpop.permute.xlu1 %3163 }
 0x7bc   : > { %3209 = vst.msk [vmem:[%s4315_s10 + $0x40] sm:$0xff] %vm710_vm13, %v3170_v51  ;;  %3206 = vst.msk [vmem:[%s4315_s10 + $0x28] sm:$0xff] %vm710_vm13, %v3164_v9 }
 0x7bf   : > { %v3176_v36 = vpop.permute.xlu1 %3175 }
 0x7c0   : > { %3212 = vst.msk [vmem:[%s4315_s10 + $0x58] sm:$0xff] %vm710_vm13, %v3176_v36 }
 0x7c3   : > { %v3172_v1 = vpop.permute.xlu1 %3171 }
 0x7c4   : > { %v3178_v58 = vpop.permute.xlu0 %3177  ;;  %3210 = vst.msk [vmem:[%s4315_s10 + $0x48] sm:$0xff] %vm710_vm13, %v3172_v1 }
 0x7c5   : > { %3213 = vst.msk [vmem:[%s4315_s10 + $0x60] sm:$0xff] %vm710_vm13, %v3178_v58 }
 0x7c7   : > { %v3180_v3 = vpop.permute.xlu1 %3179 }
 0x7c8   : > { %v3182_v17 = vpop.permute.xlu0 %3181  ;;  %3214 = vst.msk [vmem:[%s4315_s10 + $0x68] sm:$0xff] %vm710_vm13, %v3180_v3 }
 0x7c9   : > { %3215 = vst.msk [vmem:[%s4315_s10 + $0x70] sm:$0xff] %vm710_vm13, %v3182_v17 }
 0x7cb   : > { %v3184_v43 = vpop.permute.xlu1 %3183 }
 0x7cc   : > { %3216 = vst.msk [vmem:[%s4315_s10 + $0x78] sm:$0xff] %vm710_vm13, %v3184_v43 }
 0x7cd   : > { %4113 = shalt.err (!%p4110_p10)
}
 0x7ce   : > { %s4114_s12 = scalar_lea.hbm %s5619_s9, 2048  ;;  %s4118_s17 = scalar_lea.hbm %s5682_s5, 8192 }
 0x7cf   : > { %p4115_p11 = scmp.ne.s32.totalorder %s5619_s9, %s4114_s12  ;;  %p4119_p0 = scmp.lt.u32.totalorder %s5619_s9, %s5682_s5 }
 0x7d0   : > { %p4120_p1 = scmp.lt.u32.totalorder %s4118_s17, %s4114_s12  ;;  %p4122_p4 = scmp.lt.u32.totalorder %s4114_s12, %s5619_s9 }
 0x7d1   : > { %p4116_p12 = pnand %p4115_p11, %p4284_p3 }
 0x7d2   : > { %p4121_p2 = por %p4120_p1, %p4119_p0 }
 0x7d3   : > { %p4117_p13 = pneg %p4116_p12 }
 0x7d4   : > { %p4123_p5 = por %p4122_p4, %p4121_p2 }
 0x7d6   : > { %p4124_p6 = pnand %p4123_p5, %p4117_p13 }
 0x7d8   : > { %4127 = shalt.err (!%p4124_p6)
}
 0x7d9   : > { %s4201_s22 = smov 128   ;;  %s4202_s15 = smov 8  }
 0x7da   : > { %3697 = dma.vmem_to_hbm [thread:$0]  (%p4284_p3), %s5614_s8, 2048, %s5619_s9, %s5625_s14, %s4201_s22, %s4201_s22, %s4202_s15  }
 0x7db PF: > { %p3703_p7 = scmp.ge.s32.totalorder %s4194_s25, 2  ;;  %s3249_s16 = sand.u32 1, %s4166_s18  }
 0x7dc   : > { %s3250_s27 = scalar_lea.sflag [#allocation5], %s3249_s16 }
 0x7dd   : > { %p3700_p9 = pnand %p3703_p7, %p4293_p8 }
 0x7df   : > { %4161 = dma.done.wait (!%p3700_p9), %s3250_s27, 2048  }
 0x7e0   : > { %4163 = vsyncadd (!%p3700_p9), %s3250_s27, 4294965248  ;;  %s18_s25 = sadd.s32 1, %s4194_s25   ;;  %s5689_s18 = smov %s4170_s19 }
 0x7e1   : > { %p15_p10 = scmp.ge.s32.totalorder %s18_s25, 6   ;;  %s5690_s19 = smov %s4174_s20 }
 0x7e2   : > { %s5691_s20 = smov %s4302_s11  ;;  %s5692_s21 = smov %s4186_s23 }
 0x7e3   : > { %s5693_s22 = smov %s4190_s24  ;;  %s5694_s23 = smov %s5697_s28 }
 0x7e4   : > { %s5695_s24 = smov %s5701_s29  ;;  %17 = sbr.rel (!%p15_p10) target bundleno = 5 (0x5), region = 89 }
 0x7eb   :  { %3255 = vsyncpa [#allocation5], 1 }
 0x7ec   :  { %3257 = vsyncpa [#allocation5 + $0x1], 1 }

</bundles_post_ra>
